<compile_context>
chip_gen: v5e
topology: v5e:2x2
jax: 0.10.0
libtpu: 0.0.40
codegen_flags: <defaults>
</compile_context>

<pallas_src>
import functools

import jax
import jax.numpy as jnp
from jax.experimental import pallas as pl
from jax.experimental.pallas import tpu as pltpu

# ------------------------------------------------------------------ config --
CFG = dict(
    img_size=16,        # SAM: 1024
    patch=4,            # SAM: 16
    in_chans=3,
    embed_dim=32,       # SAM vit_b: 768
    depth=4,            # SAM vit_b: 12
    num_heads=4,        # SAM vit_b: 12
    mlp_ratio=4,
    out_chans=16,       # SAM neck: 256
    window_size=2,      # SAM vit_b: 14
    global_attn_indexes=(1, 3),  # SAM vit_b: (2, 5, 8, 11)
)

LN_EPS = 1e-6
VMEM_LIMIT_BYTES = 32 * 1024 * 1024   # safe on v7x (64 MiB phys) and v5e/v6e
ROW_TILE_CAP = 512                    # ~85% HBM roofline row tile at SAM scale


def _row_tile(m, cap=ROW_TILE_CAP):
    """Largest row tile <= cap that divides m (multiple of 8 when < m)."""
    if m <= cap:
        return m
    for t in range(cap - cap % 8, 7, -8):
        if m % t == 0:
            return t
    return m


# ------------------------------------------------------------ gelu (exact) --
def _erf(x):
    # Abramowitz & Stegun 7.1.26 (|err| < 1.5e-7): matches torch.nn.GELU()
    # (exact erf).  exp() runs on the EUP slot; the polynomial is VALU filler.
    a1, a2, a3, a4, a5 = 0.254829592, -0.284496736, 1.421413741, -1.453152027, 1.061405429
    p = 0.3275911
    sgn = jnp.where(x >= 0.0, 1.0, -1.0)
    ax = jnp.abs(x)
    t = 1.0 / (1.0 + p * ax)
    poly = ((((a5 * t + a4) * t + a3) * t + a2) * t + a1) * t
    return sgn * (1.0 - poly * jnp.exp(-ax * ax))


def _gelu_exact(x):
    return 0.5 * x * (1.0 + _erf(x * 0.7071067811865476))


# -------------------------------------------------------- fused linear op --
def _fused_linear_kernel(*refs, has_ln, has_res, has_oln, activation, eps):
    """(LayerNorm?) -> bf16 matmul (f32 acc) -> +bias -> (GELU?) -> (+residual?)
    -> (LayerNorm?)  on one (tm, K) row tile."""
    it = iter(refs)
    x_ref, w_ref, b_ref = next(it), next(it), next(it)
    g_ref = b2_ref = res_ref = og_ref = ob_ref = None
    if has_ln:
        g_ref, b2_ref = next(it), next(it)
    if has_res:
        res_ref = next(it)
    if has_oln:
        og_ref, ob_ref = next(it), next(it)
    o_ref = next(it)

    x = x_ref[...].astype(jnp.float32)
    if has_ln:                                  # fused pre-LayerNorm (f32 stats)
        mu = jnp.mean(x, axis=-1, keepdims=True)
        var = jnp.mean(jnp.square(x - mu), axis=-1, keepdims=True)
        x = (x - mu) * jax.lax.rsqrt(var + eps)
        x = x * g_ref[...].astype(jnp.float32) + b2_ref[...].astype(jnp.float32)
    # bf16 operands feed the MXU at full rate; accumulate in f32.
    y = jnp.dot(x.astype(jnp.bfloat16), w_ref[...],
                preferred_element_type=jnp.float32)
    y = y + b_ref[...].astype(jnp.float32)
    if activation == "gelu":
        y = _gelu_exact(y)
    if has_res:                                 # fused residual add
        y = y + res_ref[...].astype(jnp.float32)
    if has_oln:                                 # fused post-LayerNorm (LayerNorm2d)
        mu = jnp.mean(y, axis=-1, keepdims=True)
        var = jnp.mean(jnp.square(y - mu), axis=-1, keepdims=True)
        y = (y - mu) * jax.lax.rsqrt(var + eps)
        y = y * og_ref[...].astype(jnp.float32) + ob_ref[...].astype(jnp.float32)
    o_ref[...] = y.astype(o_ref.dtype)


def fused_linear(x, w, b, *, ln=None, activation=None, residual=None, out_ln=None):
    """y = [LN](x) @ w + b, [gelu], [+residual], [LN].  x:(M,K) w:(K,N) b:(N,)."""
    m, k = x.shape
    n = w.shape[1]
    tm = _row_tile(m)
    inputs = [x, w.astype(jnp.bfloat16), b.reshape(1, n).astype(jnp.float32)]
    in_specs = [
        pl.BlockSpec((tm, k), lambda i: (i, 0)),       # row-tiled activations
        pl.BlockSpec((k, n), lambda i: (0, 0)),        # weight resident across tiles
        pl.BlockSpec((1, n), lambda i: (0, 0)),
    ]
    io_alias = {}
    if ln is not None:
        inputs += [ln[0].reshape(1, k), ln[1].reshape(1, k)]
        in_specs += [pl.BlockSpec((1, k), lambda i: (0, 0)),
                     pl.BlockSpec((1, k), lambda i: (0, 0))]
    if residual is not None:
        io_alias = {len(inputs): 0}                    # write output over the residual buffer
        inputs.append(residual)
        in_specs.append(pl.BlockSpec((tm, n), lambda i: (i, 0)))
    if out_ln is not None:
        inputs += [out_ln[0].reshape(1, n), out_ln[1].reshape(1, n)]
        in_specs += [pl.BlockSpec((1, n), lambda i: (0, 0)),
                     pl.BlockSpec((1, n), lambda i: (0, 0))]
    kernel = functools.partial(
        _fused_linear_kernel, has_ln=ln is not None, has_res=residual is not None,
        has_oln=out_ln is not None, activation=activation, eps=LN_EPS)
    return pl.pallas_call(
        kernel,
        out_shape=jax.ShapeDtypeStruct((m, n), jnp.float32),
        grid=(m // tm,),
        in_specs=in_specs,
        out_specs=pl.BlockSpec((tm, n), lambda i: (i, 0)),
        input_output_aliases=io_alias,
        compiler_params=pltpu.CompilerParams(
            dimension_semantics=("parallel",),
            vmem_limit_bytes=VMEM_LIMIT_BYTES),
    )(*inputs)


# ----------------------------------------------------- flash-ish attention --
def _attention_kernel(q_ref, k_ref, v_ref, rh_ref, rw_ref, eh_ref, ew_ref,
                      o_ref, m_sc, l_sc, acc_sc, *, scale):
    kv = pl.program_id(1)

    @pl.when(kv == 0)
    def _():
        m_sc[...] = jnp.full(m_sc.shape, -jnp.inf, jnp.float32)
        l_sc[...] = jnp.zeros(l_sc.shape, jnp.float32)
        acc_sc[...] = jnp.zeros(acc_sc.shape, jnp.float32)

    q = q_ref[0].astype(jnp.bfloat16)            # (N, hd)
    k = k_ref[0].astype(jnp.bfloat16)            # (tk, hd)
    v = v_ref[0].astype(jnp.bfloat16)            # (tk, hd)
    s = jnp.einsum("qd,kd->qk", q, k, preferred_element_type=jnp.float32) * scale
    # Decomposed rel-pos bias expanded on the fly for this KV tile
    # (never materialized as (BH, N, N) in HBM): two tiny one-hot matmuls.
    bias = (jnp.dot(rh_ref[0], eh_ref[...], preferred_element_type=jnp.float32) +
            jnp.dot(rw_ref[0], ew_ref[...], preferred_element_type=jnp.float32))
    s = s + bias

    m_prev = m_sc[...]
    m_new = jnp.maximum(m_prev, jnp.max(s, axis=-1, keepdims=True))
    alpha = jnp.exp(m_prev - m_new)
    p = jnp.exp(s - m_new)
    l_sc[...] = alpha * l_sc[...] + jnp.sum(p, axis=-1, keepdims=True)
    acc_sc[...] = alpha * acc_sc[...] + jnp.dot(
        p.astype(jnp.bfloat16), v, preferred_element_type=jnp.float32)
    m_sc[...] = m_new

    @pl.when(kv == pl.num_programs(1) - 1)
    def _():
        o_ref[0] = (acc_sc[...] * pl.reciprocal(l_sc[...], approx=True)
                    ).astype(o_ref.dtype)


def attention(q, k, v, rel_h, rel_w, scale):
    """q,k,v: (B*heads, N, hd); rel_h: (B*heads, N, kh); rel_w: (B*heads, N, kw)."""
    bh, n, hd = q.shape
    kh = rel_h.shape[-1]
    kw = rel_w.shape[-1]
    tk = n if n % 128 != 0 else min(n, 128)      # KV tile (whole N at toy shapes)
    # One-hot expansion matrices: bias[q, m] = rel_h[q, m//kw] + rel_w[q, m%kw].
    cols = jnp.arange(n, dtype=jnp.int32)
    eh = (cols[None, :] // kw == jnp.arange(kh, dtype=jnp.int32)[:, None]
          ).astype(jnp.float32)                  # (kh, N)
    ew = (cols[None, :] % kw == jnp.arange(kw, dtype=jnp.int32)[:, None]
          ).astype(jnp.float32)                  # (kw, N)
    return pl.pallas_call(
        functools.partial(_attention_kernel, scale=scale),
        out_shape=jax.ShapeDtypeStruct((bh, n, hd), jnp.float32),
        grid=(bh, n // tk),
        in_specs=[
            pl.BlockSpec((1, n, hd), lambda b, j: (b, 0, 0)),
            pl.BlockSpec((1, tk, hd), lambda b, j: (b, j, 0)),
            pl.BlockSpec((1, tk, hd), lambda b, j: (b, j, 0)),
            pl.BlockSpec((1, n, kh), lambda b, j: (b, 0, 0)),
            pl.BlockSpec((1, n, kw), lambda b, j: (b, 0, 0)),
            pl.BlockSpec((kh, tk), lambda b, j: (0, j)),
            pl.BlockSpec((kw, tk), lambda b, j: (0, j)),
        ],
        out_specs=pl.BlockSpec((1, n, hd), lambda b, j: (b, 0, 0)),
        scratch_shapes=[pltpu.VMEM((n, 1), jnp.float32),
                        pltpu.VMEM((n, 1), jnp.float32),
                        pltpu.VMEM((n, hd), jnp.float32)],
        compiler_params=pltpu.CompilerParams(
            dimension_semantics=("parallel", "arbitrary"),
            vmem_limit_bytes=VMEM_LIMIT_BYTES),
    )(q, k, v, rel_h, rel_w, eh, ew)


# -------------------------------------------------------------- max pooling --
def _maxpool_kernel(x_ref, o_ref):
    o_ref[...] = jnp.max(x_ref[...], axis=1)


def global_maxpool(x):
    """AdaptiveMaxPool2d(1).squeeze(): (B, H*W, C) -> (B, C)."""
    b, _, c = x.shape
    return pl.pallas_call(
        _maxpool_kernel,
        out_shape=jax.ShapeDtypeStruct((b, c), x.dtype),
        in_specs=[pl.BlockSpec(memory_space=pltpu.MemorySpace.VMEM)],
        out_specs=pl.BlockSpec(memory_space=pltpu.MemorySpace.VMEM),
        compiler_params=pltpu.CompilerParams(vmem_limit_bytes=VMEM_LIMIT_BYTES),
    )(x)


# ------------------------------------------------------------- glue pieces --
def patch_embed(x, w_torch, bias, patch):
    """Conv2d(kernel=stride=patch) as a Pallas matmul. x is NCHW."""
    b, c, h, w = x.shape
    hp, wp = h // patch, w // patch
    xr = x.reshape(b, c, hp, patch, wp, patch)
    xr = xr.transpose(0, 2, 4, 1, 3, 5).reshape(b * hp * wp, c * patch * patch)
    w2 = w_torch.reshape(w_torch.shape[0], -1).T          # (cin*kh*kw, D)
    y = fused_linear(xr, w2, bias)
    return y.reshape(b, hp, wp, -1)                        # (B, H', W', D)


def conv3x3_ln(x, w_torch, ln_g, ln_b):
    """3x3 'same' conv (bias-free) + fused LayerNorm2d epilogue."""
    # TODO(synk): at SAM scale, replace glue-side im2col with an in-kernel
    # 9-tap accumulation over shifted VMEM slices to avoid 9x activation HBM
    # traffic; at these shapes im2col is negligible.
    b, h, w, c = x.shape
    co = w_torch.shape[0]
    xp = jnp.pad(x, ((0, 0), (1, 1), (1, 1), (0, 0)))
    cols = [xp[:, kh:kh + h, kw:kw + w, :] for kh in range(3) for kw in range(3)]
    patches = jnp.concatenate(cols, axis=-1).reshape(b * h * w, 9 * c)
    w2 = jnp.transpose(w_torch, (2, 3, 1, 0)).reshape(9 * c, co)
    y = fused_linear(patches, w2, jnp.zeros((co,), jnp.float32),
                     out_ln=(ln_g, ln_b))
    return y.reshape(b, h, w, co)


def window_partition(x, ws):
    b, h, w, c = x.shape                                   # h, w divisible by ws here
    x = x.reshape(b, h // ws, ws, w // ws, ws, c)
    return x.transpose(0, 1, 3, 2, 4, 5).reshape(-1, ws, ws, c)


def window_unpartition(windows, ws, h, w, b):
    x = windows.reshape(b, h // ws, w // ws, ws, ws, -1)
    return x.transpose(0, 1, 3, 2, 4, 5).reshape(b, h, w, -1)


def _get_rel_pos(q_size, k_size, rel_pos):
    coords = jnp.arange(q_size)[:, None] - jnp.arange(k_size)[None, :] + (k_size - 1)
    return rel_pos[coords]                                 # (q, k, head_dim)


def rel_pos_terms(q, rel_pos_h, rel_pos_w, q_size, k_size):
    """Decomposed rel-pos terms (kept decomposed; expanded inside the kernel)."""
    q_h, q_w = q_size
    k_h, k_w = k_size
    rh = _get_rel_pos(q_h, k_h, rel_pos_h)
    rw = _get_rel_pos(q_w, k_w, rel_pos_w)
    bh_, n, dim = q.shape
    r_q = q.reshape(bh_, q_h, q_w, dim)
    rel_h = jnp.einsum("bhwc,hkc->bhwk", r_q, rh, precision=jax.lax.Precision.HIGHEST)
    rel_w = jnp.einsum("bhwc,wkc->bhwk", r_q, rw, precision=jax.lax.Precision.HIGHEST)
    return rel_h.reshape(bh_, n, k_h), rel_w.reshape(bh_, n, k_w)


def attention_block(xw, p, num_heads):
    """xw: pre-norm tokens (B_, H_, W_, C).  Returns proj(attn(LN(xw))) + xw."""
    b_, h_, w_, c = xw.shape
    hd = c // num_heads
    n = h_ * w_
    x2 = xw.reshape(b_ * n, c)
    # fused LayerNorm + qkv projection
    qkv = fused_linear(x2, p["qkv_w"], p["qkv_b"], ln=(p["norm1_w"], p["norm1_b"]))
    qkv = qkv.reshape(b_, n, 3, num_heads, hd).transpose(2, 0, 3, 1, 4)
    qkv = qkv.reshape(3, b_ * num_heads, n, hd)
    q, k, v = qkv[0], qkv[1], qkv[2]
    rel_h, rel_w = rel_pos_terms(q, p["rel_pos_h"], p["rel_pos_w"], (h_, w_), (h_, w_))
    o = attention(q, k, v, rel_h, rel_w, hd ** -0.5)
    o = o.reshape(b_, num_heads, n, hd).transpose(0, 2, 1, 3).reshape(b_ * n, c)
    # fused output projection + residual add (in place over x2's buffer)
    o = fused_linear(o, p["proj_w"], p["proj_b"], residual=x2)
    return o.reshape(b_, h_, w_, c)


def vit_block(x, p, num_heads, window_size):
    b, h, w, c = x.shape
    # LayerNorm commutes with window partition (per-token), so the residual in
    # window layout is the partitioned raw input itself.
    if window_size > 0:
        xw = window_partition(x, window_size)
        xa = attention_block(xw, p, num_heads)
        x = window_unpartition(xa, window_size, h, w, b)
    else:
        x = attention_block(x, p, num_heads)
    x2 = x.reshape(-1, c)
    # fused LayerNorm + fc1 + exact GELU, then fc2 + residual add
    h1 = fused_linear(x2, p["mlp_w1"], p["mlp_b1"],
                      ln=(p["norm2_w"], p["norm2_b"]), activation="gelu")
    out = fused_linear(h1, p["mlp_w2"], p["mlp_b2"], residual=x2)
    return out.reshape(b, h, w, c)


def pretrained_vit_b_encoder_forward(params, x, cfg=CFG):
    d = cfg["embed_dim"]
    co = cfg["out_chans"]
    tokens = patch_embed(x, params["patch_w"], params["patch_b"], cfg["patch"])
    tokens = tokens + params["pos_embed"]                  # absolute pos-embed (glue add)
    for i in range(cfg["depth"]):
        ws = 0 if i in cfg["global_attn_indexes"] else cfg["window_size"]
        tokens = vit_block(tokens, params["blocks"][i], cfg["num_heads"], ws)
    b, hp, wp, _ = tokens.shape
    # neck: Conv1x1(no bias)+LayerNorm2d fused, Conv3x3(no bias)+LayerNorm2d fused
    y = fused_linear(tokens.reshape(-1, d), params["neck_w1"],
                     jnp.zeros((co,), jnp.float32),
                     out_ln=(params["neck_ln1_w"], params["neck_ln1_b"]))
    y = conv3x3_ln(y.reshape(b, hp, wp, co), params["neck_w2"],
                   params["neck_ln2_w"], params["neck_ln2_b"])
    # AdaptiveMaxPool2d(1).squeeze(-1).squeeze(-1)
    return global_maxpool(y.reshape(b, hp * wp, co))       # (B, out_chans)


# ----------------------------------------------------------- deterministic --
def init_params(key, cfg=CFG):
    d, p, cin = cfg["embed_dim"], cfg["patch"], cfg["in_chans"]
    hp = cfg["img_size"] // p
    hd = d // cfg["num_heads"]
    mlp = cfg["mlp_ratio"] * d
    co = cfg["out_chans"]
    keys = iter(jax.random.split(key, 64))

    def w(shape, scale=0.02):
        return scale * jax.random.normal(next(keys), shape, dtype=jnp.float32)

    params = {
        "patch_w": w((d, cin, p, p)),
        "patch_b": jnp.zeros((d,), jnp.float32),
        "pos_embed": w((1, hp, hp, d)),
        "blocks": [],
        "neck_w1": w((d, co)),
        "neck_ln1_w": jnp.ones((co,), jnp.float32),
        "neck_ln1_b": jnp.zeros((co,), jnp.float32),
        "neck_w2": w((co, co, 3, 3)),
        "neck_ln2_w": jnp.ones((co,), jnp.float32),
        "neck_ln2_b": jnp.zeros((co,), jnp.float32),
    }
    for i in range(cfg["depth"]):
        s = hp if i in cfg["global_attn_indexes"] else cfg["window_size"]
        params["blocks"].append({
            "norm1_w": jnp.ones((d,), jnp.float32),
            "norm1_b": jnp.zeros((d,), jnp.float32),
            "qkv_w": w((d, 3 * d)),
            "qkv_b": jnp.zeros((3 * d,), jnp.float32),
            "proj_w": w((d, d)),
            "proj_b": jnp.zeros((d,), jnp.float32),
            "rel_pos_h": w((2 * s - 1, hd)),
            "rel_pos_w": w((2 * s - 1, hd)),
            "norm2_w": jnp.ones((d,), jnp.float32),
            "norm2_b": jnp.zeros((d,), jnp.float32),
            "mlp_w1": w((d, mlp)),
            "mlp_b1": jnp.zeros((mlp,), jnp.float32),
            "mlp_w2": w((mlp, d)),
            "mlp_b2": jnp.zeros((d,), jnp.float32),
        })
    return params
    # TODO(synk): weights are synthetic (deterministic PRNG), not the SAM
    # vit_b checkpoint the original module loads from disk.


if __name__ == "__main__":
    key = jax.random.PRNGKey(0)
    pkey, xkey = jax.random.split(key)
    params = init_params(pkey, CFG)
    x = jax.random.normal(
        xkey, (2, CFG["in_chans"], CFG["img_size"], CFG["img_size"]),
        dtype=jnp.float32)
    fwd = jax.jit(lambda pr, xx: pretrained_vit_b_encoder_forward(pr, xx, CFG))
    feat = jax.block_until_ready(fwd(params, x))
    assert feat.shape == (2, CFG["out_chans"]), feat.shape
    assert bool(jnp.all(jnp.isfinite(feat)))
    print("KERNEL_OK")
</pallas_src>

<mosaic_0001>
module attributes {stable_mosaic.version = 11 : i64} {
  func.func @_fused_linear_kernel(%arg0: i32, %arg1: memref<32x48xf32, #tpu.memory_space<vmem>>, %arg2: memref<48x32xbf16, #tpu.memory_space<vmem>>, %arg3: memref<1x32xf32, #tpu.memory_space<vmem>>, %arg4: memref<32x32xf32, #tpu.memory_space<vmem>>) attributes {dimension_semantics = [#tpu.dimension_semantics<parallel>], iteration_bounds = array<i64: 1>, scalar_prefetch = 0 : i64, scratch_operands = 0 : i64, tpu.core_type = #tpu.core_type<tc>, window_params = [{transform_indices = @transform_0, window_bounds = array<i64: 32, 48>}, {pipeline_mode = #tpu.pipeline_mode<synchronous>, transform_indices = @transform_1, window_bounds = array<i64: 48, 32>}, {pipeline_mode = #tpu.pipeline_mode<synchronous>, transform_indices = @transform_2, window_bounds = array<i64: 1, 32>}, {transform_indices = @transform_3, window_bounds = array<i64: 32, 32>}]} {
    %c0 = arith.constant 0 : index
    %c0_0 = arith.constant 0 : index
    %0 = vector.load %arg1[%c0, %c0_0] : memref<32x48xf32, #tpu.memory_space<vmem>>, vector<32x48xf32>
    %1 = arith.truncf %0 : vector<32x48xf32> to vector<32x48xbf16>
    %c0_1 = arith.constant 0 : index
    %c0_2 = arith.constant 0 : index
    %2 = vector.load %arg2[%c0_1, %c0_2] : memref<48x32xbf16, #tpu.memory_space<vmem>>, vector<48x32xbf16>
    %cst = arith.constant dense<0.000000e+00> : vector<32x32xf32>
    %3 = tpu.matmul %1, %2, %cst {dimension_numbers = #tpu.dot_dimension_numbers<[1], [0], [0], [1], [0, 0, 1, 1], [], []>} : vector<32x48xbf16>, vector<48x32xbf16>, vector<32x32xf32> -> vector<32x32xf32>
    %c0_3 = arith.constant 0 : index
    %c0_4 = arith.constant 0 : index
    %4 = vector.load %arg3[%c0_3, %c0_4] : memref<1x32xf32, #tpu.memory_space<vmem>>, vector<1x32xf32>
    %5 = vector.broadcast %4 : vector<1x32xf32> to vector<32x32xf32>
    %6 = arith.addf %3, %5 : vector<32x32xf32>
    %c0_5 = arith.constant 0 : index
    %c0_6 = arith.constant 0 : index
    %7 = vector.load %arg4[%c0_5, %c0_6] : memref<32x32xf32, #tpu.memory_space<vmem>>, vector<32x32xf32>
    tpu.vector_store %arg4[%c0_5, %c0_6], %6 {strides = array<i32>} : memref<32x32xf32, #tpu.memory_space<vmem>>, vector<32x32xf32>,
    return
  }
  func.func @transform_0(%arg0: i32) -> (i32, i32) {
    %c0_i32 = arith.constant 0 : i32
    %c0_i32_0 = arith.constant 0 : i32
    return %arg0, %c0_i32 : i32, i32
  }
  func.func @transform_1(%arg0: i32) -> (i32, i32) {
    %c0_i32 = arith.constant 0 : i32
    %c0_i32_0 = arith.constant 0 : i32
    %c0_i32_1 = arith.constant 0 : i32
    return %c0_i32, %c0_i32_0 : i32, i32
  }
  func.func @transform_2(%arg0: i32) -> (i32, i32) {
    %c0_i32 = arith.constant 0 : i32
    %c0_i32_0 = arith.constant 0 : i32
    %c0_i32_1 = arith.constant 0 : i32
    return %c0_i32, %c0_i32_0 : i32, i32
  }
  func.func @transform_3(%arg0: i32) -> (i32, i32) {
    %c0_i32 = arith.constant 0 : i32
    %c0_i32_0 = arith.constant 0 : i32
    return %arg0, %c0_i32 : i32, i32
  }
}

module attributes {stable_mosaic.version = 11 : i64} {
  func.func @_fused_linear_kernel(%arg0: i32, %arg1: memref<32x32xf32, #tpu.memory_space<vmem>>, %arg2: memref<32x96xbf16, #tpu.memory_space<vmem>>, %arg3: memref<1x96xf32, #tpu.memory_space<vmem>>, %arg4: memref<1x32xf32, #tpu.memory_space<vmem>>, %arg5: memref<1x32xf32, #tpu.memory_space<vmem>>, %arg6: memref<32x96xf32, #tpu.memory_space<vmem>>) attributes {dimension_semantics = [#tpu.dimension_semantics<parallel>], iteration_bounds = array<i64: 1>, scalar_prefetch = 0 : i64, scratch_operands = 0 : i64, tpu.core_type = #tpu.core_type<tc>, window_params = [{transform_indices = @transform_0, window_bounds = array<i64: 32, 32>}, {pipeline_mode = #tpu.pipeline_mode<synchronous>, transform_indices = @transform_1, window_bounds = array<i64: 32, 96>}, {pipeline_mode = #tpu.pipeline_mode<synchronous>, transform_indices = @transform_2, window_bounds = array<i64: 1, 96>}, {pipeline_mode = #tpu.pipeline_mode<synchronous>, transform_indices = @transform_3, window_bounds = array<i64: 1, 32>}, {pipeline_mode = #tpu.pipeline_mode<synchronous>, transform_indices = @transform_4, window_bounds = array<i64: 1, 32>}, {transform_indices = @transform_5, window_bounds = array<i64: 32, 96>}]} {
    %c0 = arith.constant 0 : index
    %c0_0 = arith.constant 0 : index
    %0 = vector.load %arg1[%c0, %c0_0] : memref<32x32xf32, #tpu.memory_space<vmem>>, vector<32x32xf32>
    %cst = arith.constant dense<0.000000e+00> : vector<32xf32>
    %1 = vector.multi_reduction <add>, %0, %cst [1] : vector<32x32xf32> to vector<32xf32>
    %2 = vector.shape_cast %1 : vector<32xf32> to vector<32x1xf32>
    %cst_1 = arith.constant 3.200000e+01 : f32
    %3 = vector.broadcast %cst_1 : f32 to vector<32x1xf32>
    %4 = arith.divf %2, %3 : vector<32x1xf32>
    %5 = vector.broadcast %4 : vector<32x1xf32> to vector<32x32xf32>
    %6 = arith.subf %0, %5 : vector<32x32xf32>
    %7 = arith.mulf %6, %6 : vector<32x32xf32>
    %cst_2 = arith.constant dense<0.000000e+00> : vector<32xf32>
    %8 = vector.multi_reduction <add>, %7, %cst_2 [1] : vector<32x32xf32> to vector<32xf32>
    %9 = vector.shape_cast %8 : vector<32xf32> to vector<32x1xf32>
    %cst_3 = arith.constant 3.200000e+01 : f32
    %10 = vector.broadcast %cst_3 : f32 to vector<32x1xf32>
    %11 = arith.divf %9, %10 : vector<32x1xf32>
    %12 = vector.broadcast %4 : vector<32x1xf32> to vector<32x32xf32>
    %13 = arith.subf %0, %12 : vector<32x32xf32>
    %cst_4 = arith.constant 9.99999997E-7 : f32
    %14 = vector.broadcast %cst_4 : f32 to vector<32x1xf32>
    %15 = arith.addf %11, %14 : vector<32x1xf32>
    %16 = math.rsqrt %15 : vector<32x1xf32>
    %17 = vector.broadcast %16 : vector<32x1xf32> to vector<32x32xf32>
    %18 = arith.mulf %13, %17 : vector<32x32xf32>
    %c0_5 = arith.constant 0 : index
    %c0_6 = arith.constant 0 : index
    %19 = vector.load %arg4[%c0_5, %c0_6] : memref<1x32xf32, #tpu.memory_space<vmem>>, vector<1x32xf32>
    %20 = vector.broadcast %19 : vector<1x32xf32> to vector<32x32xf32>
    %21 = arith.mulf %18, %20 : vector<32x32xf32>
    %c0_7 = arith.constant 0 : index
    %c0_8 = arith.constant 0 : index
    %22 = vector.load %arg5[%c0_7, %c0_8] : memref<1x32xf32, #tpu.memory_space<vmem>>, vector<1x32xf32>
    %23 = vector.broadcast %22 : vector<1x32xf32> to vector<32x32xf32>
    %24 = arith.addf %21, %23 : vector<32x32xf32>
    %25 = arith.truncf %24 : vector<32x32xf32> to vector<32x32xbf16>
    %c0_9 = arith.constant 0 : index
    %c0_10 = arith.constant 0 : index
    %26 = vector.load %arg2[%c0_9, %c0_10] : memref<32x96xbf16, #tpu.memory_space<vmem>>, vector<32x96xbf16>
    %cst_11 = arith.constant dense<0.000000e+00> : vector<32x96xf32>
    %27 = tpu.matmul %25, %26, %cst_11 {dimension_numbers = #tpu.dot_dimension_numbers<[1], [0], [0], [1], [0, 0, 1, 1], [], []>} : vector<32x32xbf16>, vector<32x96xbf16>, vector<32x96xf32> -> vector<32x96xf32>
    %c0_12 = arith.constant 0 : index
    %c0_13 = arith.constant 0 : index
    %28 = vector.load %arg3[%c0_12, %c0_13] : memref<1x96xf32, #tpu.memory_space<vmem>>, vector<1x96xf32>
    %29 = vector.broadcast %28 : vector<1x96xf32> to vector<32x96xf32>
    %30 = arith.addf %27, %29 : vector<32x96xf32>
    %c0_14 = arith.constant 0 : index
    %c0_15 = arith.constant 0 : index
    %31 = vector.load %arg6[%c0_14, %c0_15] : memref<32x96xf32, #tpu.memory_space<vmem>>, vector<32x96xf32>
    tpu.vector_store %arg6[%c0_14, %c0_15], %30 {strides = array<i32>} : memref<32x96xf32, #tpu.memory_space<vmem>>, vector<32x96xf32>,
    return
  }
  func.func @transform_0(%arg0: i32) -> (i32, i32) {
    %c0_i32 = arith.constant 0 : i32
    %c0_i32_0 = arith.constant 0 : i32
    return %arg0, %c0_i32 : i32, i32
  }
  func.func @transform_1(%arg0: i32) -> (i32, i32) {
    %c0_i32 = arith.constant 0 : i32
    %c0_i32_0 = arith.constant 0 : i32
    %c0_i32_1 = arith.constant 0 : i32
    return %c0_i32, %c0_i32_0 : i32, i32
  }
  func.func @transform_2(%arg0: i32) -> (i32, i32) {
    %c0_i32 = arith.constant 0 : i32
    %c0_i32_0 = arith.constant 0 : i32
    %c0_i32_1 = arith.constant 0 : i32
    return %c0_i32, %c0_i32_0 : i32, i32
  }
  func.func @transform_3(%arg0: i32) -> (i32, i32) {
    %c0_i32 = arith.constant 0 : i32
    %c0_i32_0 = arith.constant 0 : i32
    %c0_i32_1 = arith.constant 0 : i32
    return %c0_i32, %c0_i32_0 : i32, i32
  }
  func.func @transform_4(%arg0: i32) -> (i32, i32) {
    %c0_i32 = arith.constant 0 : i32
    %c0_i32_0 = arith.constant 0 : i32
    %c0_i32_1 = arith.constant 0 : i32
    return %c0_i32, %c0_i32_0 : i32, i32
  }
  func.func @transform_5(%arg0: i32) -> (i32, i32) {
    %c0_i32 = arith.constant 0 : i32
    %c0_i32_0 = arith.constant 0 : i32
    return %arg0, %c0_i32 : i32, i32
  }
}

module attributes {stable_mosaic.version = 11 : i64} {
  func.func @_attention_kernel(%arg0: i32, %arg1: i32, %arg2: memref<1x4x8xf32, #tpu.memory_space<vmem>>, %arg3: memref<1x4x8xf32, #tpu.memory_space<vmem>>, %arg4: memref<1x4x8xf32, #tpu.memory_space<vmem>>, %arg5: memref<1x4x2xf32, #tpu.memory_space<vmem>>, %arg6: memref<1x4x2xf32, #tpu.memory_space<vmem>>, %arg7: memref<2x4xf32, #tpu.memory_space<vmem>>, %arg8: memref<2x4xf32, #tpu.memory_space<vmem>>, %arg9: memref<1x4x8xf32, #tpu.memory_space<vmem>>, %arg10: memref<4x1xf32, #tpu.memory_space<vmem>>, %arg11: memref<4x1xf32, #tpu.memory_space<vmem>>, %arg12: memref<4x8xf32, #tpu.memory_space<vmem>>) attributes {dimension_semantics = [#tpu.dimension_semantics<parallel>, #tpu.dimension_semantics<arbitrary>], iteration_bounds = array<i64: 32, 1>, scalar_prefetch = 0 : i64, scratch_operands = 3 : i64, tpu.core_type = #tpu.core_type<tc>, window_params = [{transform_indices = @transform_0, window_bounds = array<i64: 1, 4, 8>}, {transform_indices = @transform_1, window_bounds = array<i64: 1, 4, 8>}, {transform_indices = @transform_2, window_bounds = array<i64: 1, 4, 8>}, {transform_indices = @transform_3, window_bounds = array<i64: 1, 4, 2>}, {transform_indices = @transform_4, window_bounds = array<i64: 1, 4, 2>}, {transform_indices = @transform_5, window_bounds = array<i64: 2, 4>}, {transform_indices = @transform_6, window_bounds = array<i64: 2, 4>}, {transform_indices = @transform_7, window_bounds = array<i64: 1, 4, 8>}]} {
    %c0_i32 = arith.constant 0 : i32
    %0 = arith.cmpi eq, %arg1, %c0_i32 : i32
    %1 = arith.extui %0 : i1 to i32
    %c0_i32_0 = arith.constant 0 : i32
    %2 = arith.cmpi ne, %1, %c0_i32_0 : i32
    scf.if %2 {
      %cst_39 = arith.constant 0xFF800000 : f32
      %51 = vector.broadcast %cst_39 : f32 to vector<4x1xf32>
      %c0_40 = arith.constant 0 : index
      %c0_41 = arith.constant 0 : index
      %52 = vector.load %arg10[%c0_40, %c0_41] : memref<4x1xf32, #tpu.memory_space<vmem>>, vector<4x1xf32>
      tpu.vector_store %arg10[%c0_40, %c0_41], %51 {strides = array<i32>} : memref<4x1xf32, #tpu.memory_space<vmem>>, vector<4x1xf32>,
      %cst_42 = arith.constant 0.000000e+00 : f32
      %53 = vector.broadcast %cst_42 : f32 to vector<4x1xf32>
      %c0_43 = arith.constant 0 : index
      %c0_44 = arith.constant 0 : index
      %54 = vector.load %arg11[%c0_43, %c0_44] : memref<4x1xf32, #tpu.memory_space<vmem>>, vector<4x1xf32>
      tpu.vector_store %arg11[%c0_43, %c0_44], %53 {strides = array<i32>} : memref<4x1xf32, #tpu.memory_space<vmem>>, vector<4x1xf32>,
      %cst_45 = arith.constant 0.000000e+00 : f32
      %55 = vector.broadcast %cst_45 : f32 to vector<4x8xf32>
      %c0_46 = arith.constant 0 : index
      %c0_47 = arith.constant 0 : index
      %56 = vector.load %arg12[%c0_46, %c0_47] : memref<4x8xf32, #tpu.memory_space<vmem>>, vector<4x8xf32>
      tpu.vector_store %arg12[%c0_46, %c0_47], %55 {strides = array<i32>} : memref<4x8xf32, #tpu.memory_space<vmem>>, vector<4x8xf32>,
    } else {
    }
    %c0 = arith.constant 0 : index
    %c0_1 = arith.constant 0 : index
    %c0_2 = arith.constant 0 : index
    %3 = vector.load %arg2[%c0, %c0_1, %c0_2] : memref<1x4x8xf32, #tpu.memory_space<vmem>>, vector<1x4x8xf32>
    %4 = vector.shape_cast %3 : vector<1x4x8xf32> to vector<4x8xf32>
    %5 = arith.truncf %4 : vector<4x8xf32> to vector<4x8xbf16>
    %c0_3 = arith.constant 0 : index
    %c0_4 = arith.constant 0 : index
    %c0_5 = arith.constant 0 : index
    %6 = vector.load %arg3[%c0_3, %c0_4, %c0_5] : memref<1x4x8xf32, #tpu.memory_space<vmem>>, vector<1x4x8xf32>
    %7 = vector.shape_cast %6 : vector<1x4x8xf32> to vector<4x8xf32>
    %8 = arith.truncf %7 : vector<4x8xf32> to vector<4x8xbf16>
    %c0_6 = arith.constant 0 : index
    %c0_7 = arith.constant 0 : index
    %c0_8 = arith.constant 0 : index
    %9 = vector.load %arg4[%c0_6, %c0_7, %c0_8] : memref<1x4x8xf32, #tpu.memory_space<vmem>>, vector<1x4x8xf32>
    %10 = vector.shape_cast %9 : vector<1x4x8xf32> to vector<4x8xf32>
    %11 = arith.truncf %10 : vector<4x8xf32> to vector<4x8xbf16>
    "tpu.trace_start"() <{level = 10 : i32, message = "qd,kd->qk"}> : () -> ()
    %cst = arith.constant dense<0.000000e+00> : vector<4x4xf32>
    %12 = tpu.matmul %5, %8, %cst {dimension_numbers = #tpu.dot_dimension_numbers<[1], [1], [0], [0], [0, 0, 1, 0], [], []>} : vector<4x8xbf16>, vector<4x8xbf16>, vector<4x4xf32> -> vector<4x4xf32>
    "tpu.trace_stop"() : () -> ()
    %cst_9 = arith.constant 0.353553385 : f32
    %13 = vector.broadcast %cst_9 : f32 to vector<4x4xf32>
    %14 = arith.mulf %12, %13 : vector<4x4xf32>
    %c0_10 = arith.constant 0 : index
    %c0_11 = arith.constant 0 : index
    %c0_12 = arith.constant 0 : index
    %15 = vector.load %arg5[%c0_10, %c0_11, %c0_12] : memref<1x4x2xf32, #tpu.memory_space<vmem>>, vector<1x4x2xf32>
    %16 = vector.shape_cast %15 : vector<1x4x2xf32> to vector<4x2xf32>
    %c0_13 = arith.constant 0 : index
    %c0_14 = arith.constant 0 : index
    %17 = vector.load %arg7[%c0_13, %c0_14] : memref<2x4xf32, #tpu.memory_space<vmem>>, vector<2x4xf32>
    %cst_15 = arith.constant dense<0.000000e+00> : vector<4x4xf32>
    %18 = tpu.matmul %16, %17, %cst_15 {dimension_numbers = #tpu.dot_dimension_numbers<[1], [0], [0], [1], [0, 0, 1, 1], [], []>} : vector<4x2xf32>, vector<2x4xf32>, vector<4x4xf32> -> vector<4x4xf32>
    %c0_16 = arith.constant 0 : index
    %c0_17 = arith.constant 0 : index
    %c0_18 = arith.constant 0 : index
    %19 = vector.load %arg6[%c0_16, %c0_17, %c0_18] : memref<1x4x2xf32, #tpu.memory_space<vmem>>, vector<1x4x2xf32>
    %20 = vector.shape_cast %19 : vector<1x4x2xf32> to vector<4x2xf32>
    %c0_19 = arith.constant 0 : index
    %c0_20 = arith.constant 0 : index
    %21 = vector.load %arg8[%c0_19, %c0_20] : memref<2x4xf32, #tpu.memory_space<vmem>>, vector<2x4xf32>
    %cst_21 = arith.constant dense<0.000000e+00> : vector<4x4xf32>
    %22 = tpu.matmul %20, %21, %cst_21 {dimension_numbers = #tpu.dot_dimension_numbers<[1], [0], [0], [1], [0, 0, 1, 1], [], []>} : vector<4x2xf32>, vector<2x4xf32>, vector<4x4xf32> -> vector<4x4xf32>
    %23 = arith.addf %18, %22 : vector<4x4xf32>
    %24 = arith.addf %14, %23 : vector<4x4xf32>
    %c0_22 = arith.constant 0 : index
    %c0_23 = arith.constant 0 : index
    %25 = vector.load %arg10[%c0_22, %c0_23] : memref<4x1xf32, #tpu.memory_space<vmem>>, vector<4x1xf32>
    %cst_24 = arith.constant dense<0xFF800000> : vector<4xf32>
    %26 = vector.multi_reduction <maximumf>, %24, %cst_24 [1] : vector<4x4xf32> to vector<4xf32>
    %27 = vector.shape_cast %26 : vector<4xf32> to vector<4x1xf32>
    %28 = arith.maximumf %25, %27 : vector<4x1xf32>
    %29 = arith.subf %25, %28 : vector<4x1xf32>
    %30 = math.exp %29 : vector<4x1xf32>
    %31 = vector.broadcast %28 : vector<4x1xf32> to vector<4x4xf32>
    %32 = arith.subf %24, %31 : vector<4x4xf32>
    %33 = math.exp %32 : vector<4x4xf32>
    %c0_25 = arith.constant 0 : index
    %c0_26 = arith.constant 0 : index
    %34 = vector.load %arg11[%c0_25, %c0_26] : memref<4x1xf32, #tpu.memory_space<vmem>>, vector<4x1xf32>
    %35 = arith.mulf %30, %34 : vector<4x1xf32>
    %cst_27 = arith.constant dense<0.000000e+00> : vector<4xf32>
    %36 = vector.multi_reduction <add>, %33, %cst_27 [1] : vector<4x4xf32> to vector<4xf32>
    %37 = vector.shape_cast %36 : vector<4xf32> to vector<4x1xf32>
    %38 = arith.addf %35, %37 : vector<4x1xf32>
    %c0_28 = arith.constant 0 : index
    %c0_29 = arith.constant 0 : index
    %39 = vector.load %arg11[%c0_28, %c0_29] : memref<4x1xf32, #tpu.memory_space<vmem>>, vector<4x1xf32>
    tpu.vector_store %arg11[%c0_28, %c0_29], %38 {strides = array<i32>} : memref<4x1xf32, #tpu.memory_space<vmem>>, vector<4x1xf32>,
    %c0_30 = arith.constant 0 : index
    %c0_31 = arith.constant 0 : index
    %40 = vector.load %arg12[%c0_30, %c0_31] : memref<4x8xf32, #tpu.memory_space<vmem>>, vector<4x8xf32>
    %41 = vector.broadcast %30 : vector<4x1xf32> to vector<4x8xf32>
    %42 = arith.mulf %41, %40 : vector<4x8xf32>
    %43 = arith.truncf %33 : vector<4x4xf32> to vector<4x4xbf16>
    %cst_32 = arith.constant dense<0.000000e+00> : vector<4x8xf32>
    %44 = tpu.matmul %43, %11, %cst_32 {dimension_numbers = #tpu.dot_dimension_numbers<[1], [0], [0], [1], [0, 0, 1, 1], [], []>} : vector<4x4xbf16>, vector<4x8xbf16>, vector<4x8xf32> -> vector<4x8xf32>
    %45 = arith.addf %42, %44 : vector<4x8xf32>
    %c0_33 = arith.constant 0 : index
    %c0_34 = arith.constant 0 : index
    %46 = vector.load %arg12[%c0_33, %c0_34] : memref<4x8xf32, #tpu.memory_space<vmem>>, vector<4x8xf32>
    tpu.vector_store %arg12[%c0_33, %c0_34], %45 {strides = array<i32>} : memref<4x8xf32, #tpu.memory_space<vmem>>, vector<4x8xf32>,
    %c0_35 = arith.constant 0 : index
    %c0_36 = arith.constant 0 : index
    %47 = vector.load %arg10[%c0_35, %c0_36] : memref<4x1xf32, #tpu.memory_space<vmem>>, vector<4x1xf32>
    tpu.vector_store %arg10[%c0_35, %c0_36], %28 {strides = array<i32>} : memref<4x1xf32, #tpu.memory_space<vmem>>, vector<4x1xf32>,
    %c0_i32_37 = arith.constant 0 : i32
    %48 = arith.cmpi eq, %arg1, %c0_i32_37 : i32
    %49 = arith.extui %48 : i1 to i32
    %c0_i32_38 = arith.constant 0 : i32
    %50 = arith.cmpi ne, %49, %c0_i32_38 : i32
    scf.if %50 {
      %c0_39 = arith.constant 0 : index
      %c0_40 = arith.constant 0 : index
      %51 = vector.load %arg12[%c0_39, %c0_40] : memref<4x8xf32, #tpu.memory_space<vmem>>, vector<4x8xf32>
      %c0_41 = arith.constant 0 : index
      %c0_42 = arith.constant 0 : index
      %52 = vector.load %arg11[%c0_41, %c0_42] : memref<4x1xf32, #tpu.memory_space<vmem>>, vector<4x1xf32>
      %53 = tpu.reciprocal %52 {approx = true} : vector<4x1xf32> -> vector<4x1xf32>
      %54 = vector.broadcast %53 : vector<4x1xf32> to vector<4x8xf32>
      %55 = arith.mulf %51, %54 : vector<4x8xf32>
      %c0_43 = arith.constant 0 : index
      %c0_44 = arith.constant 0 : index
      %c0_45 = arith.constant 0 : index
      %56 = vector.load %arg9[%c0_43, %c0_44, %c0_45] : memref<1x4x8xf32, #tpu.memory_space<vmem>>, vector<1x4x8xf32>
      %57 = vector.shape_cast %56 : vector<1x4x8xf32> to vector<4x8xf32>
      %58 = vector.shape_cast %55 : vector<4x8xf32> to vector<1x4x8xf32>
      tpu.vector_store %arg9[%c0_43, %c0_44, %c0_45], %58 {strides = array<i32>} : memref<1x4x8xf32, #tpu.memory_space<vmem>>, vector<1x4x8xf32>,
    } else {
    }
    return
  }
  func.func @transform_0(%arg0: i32, %arg1: i32) -> (i32, i32, i32) {
    %c0_i32 = arith.constant 0 : i32
    %c0_i32_0 = arith.constant 0 : i32
    %c0_i32_1 = arith.constant 0 : i32
    return %arg0, %c0_i32, %c0_i32_0 : i32, i32, i32
  }
  func.func @transform_1(%arg0: i32, %arg1: i32) -> (i32, i32, i32) {
    %c0_i32 = arith.constant 0 : i32
    %c0_i32_0 = arith.constant 0 : i32
    return %arg0, %arg1, %c0_i32 : i32, i32, i32
  }
  func.func @transform_2(%arg0: i32, %arg1: i32) -> (i32, i32, i32) {
    %c0_i32 = arith.constant 0 : i32
    %c0_i32_0 = arith.constant 0 : i32
    return %arg0, %arg1, %c0_i32 : i32, i32, i32
  }
  func.func @transform_3(%arg0: i32, %arg1: i32) -> (i32, i32, i32) {
    %c0_i32 = arith.constant 0 : i32
    %c0_i32_0 = arith.constant 0 : i32
    %c0_i32_1 = arith.constant 0 : i32
    return %arg0, %c0_i32, %c0_i32_0 : i32, i32, i32
  }
  func.func @transform_4(%arg0: i32, %arg1: i32) -> (i32, i32, i32) {
    %c0_i32 = arith.constant 0 : i32
    %c0_i32_0 = arith.constant 0 : i32
    %c0_i32_1 = arith.constant 0 : i32
    return %arg0, %c0_i32, %c0_i32_0 : i32, i32, i32
  }
  func.func @transform_5(%arg0: i32, %arg1: i32) -> (i32, i32) {
    %c0_i32 = arith.constant 0 : i32
    %c0_i32_0 = arith.constant 0 : i32
    return %c0_i32, %arg1 : i32, i32
  }
  func.func @transform_6(%arg0: i32, %arg1: i32) -> (i32, i32) {
    %c0_i32 = arith.constant 0 : i32
    %c0_i32_0 = arith.constant 0 : i32
    return %c0_i32, %arg1 : i32, i32
  }
  func.func @transform_7(%arg0: i32, %arg1: i32) -> (i32, i32, i32) {
    %c0_i32 = arith.constant 0 : i32
    %c0_i32_0 = arith.constant 0 : i32
    %c0_i32_1 = arith.constant 0 : i32
    return %arg0, %c0_i32, %c0_i32_0 : i32, i32, i32
  }
}

module attributes {stable_mosaic.version = 11 : i64} {
  func.func @_fused_linear_kernel(%arg0: i32, %arg1: memref<32x32xf32, #tpu.memory_space<vmem>>, %arg2: memref<32x32xbf16, #tpu.memory_space<vmem>>, %arg3: memref<1x32xf32, #tpu.memory_space<vmem>>, %arg4: memref<32x32xf32, #tpu.memory_space<vmem>>, %arg5: memref<32x32xf32, #tpu.memory_space<vmem>>) attributes {dimension_semantics = [#tpu.dimension_semantics<parallel>], iteration_bounds = array<i64: 1>, scalar_prefetch = 0 : i64, scratch_operands = 0 : i64, tpu.core_type = #tpu.core_type<tc>, window_params = [{transform_indices = @transform_0, window_bounds = array<i64: 32, 32>}, {pipeline_mode = #tpu.pipeline_mode<synchronous>, transform_indices = @transform_1, window_bounds = array<i64: 32, 32>}, {pipeline_mode = #tpu.pipeline_mode<synchronous>, transform_indices = @transform_2, window_bounds = array<i64: 1, 32>}, {transform_indices = @transform_3, window_bounds = array<i64: 32, 32>}, {transform_indices = @transform_4, window_bounds = array<i64: 32, 32>}]} {
    %c0 = arith.constant 0 : index
    %c0_0 = arith.constant 0 : index
    %0 = vector.load %arg1[%c0, %c0_0] : memref<32x32xf32, #tpu.memory_space<vmem>>, vector<32x32xf32>
    %1 = arith.truncf %0 : vector<32x32xf32> to vector<32x32xbf16>
    %c0_1 = arith.constant 0 : index
    %c0_2 = arith.constant 0 : index
    %2 = vector.load %arg2[%c0_1, %c0_2] : memref<32x32xbf16, #tpu.memory_space<vmem>>, vector<32x32xbf16>
    %cst = arith.constant dense<0.000000e+00> : vector<32x32xf32>
    %3 = tpu.matmul %1, %2, %cst {dimension_numbers = #tpu.dot_dimension_numbers<[1], [0], [0], [1], [0, 0, 1, 1], [], []>} : vector<32x32xbf16>, vector<32x32xbf16>, vector<32x32xf32> -> vector<32x32xf32>
    %c0_3 = arith.constant 0 : index
    %c0_4 = arith.constant 0 : index
    %4 = vector.load %arg3[%c0_3, %c0_4] : memref<1x32xf32, #tpu.memory_space<vmem>>, vector<1x32xf32>
    %5 = vector.broadcast %4 : vector<1x32xf32> to vector<32x32xf32>
    %6 = arith.addf %3, %5 : vector<32x32xf32>
    %c0_5 = arith.constant 0 : index
    %c0_6 = arith.constant 0 : index
    %7 = vector.load %arg4[%c0_5, %c0_6] : memref<32x32xf32, #tpu.memory_space<vmem>>, vector<32x32xf32>
    %8 = arith.addf %6, %7 : vector<32x32xf32>
    %c0_7 = arith.constant 0 : index
    %c0_8 = arith.constant 0 : index
    %9 = vector.load %arg5[%c0_7, %c0_8] : memref<32x32xf32, #tpu.memory_space<vmem>>, vector<32x32xf32>
    tpu.vector_store %arg5[%c0_7, %c0_8], %8 {strides = array<i32>} : memref<32x32xf32, #tpu.memory_space<vmem>>, vector<32x32xf32>,
    return
  }
  func.func @transform_0(%arg0: i32) -> (i32, i32) {
    %c0_i32 = arith.constant 0 : i32
    %c0_i32_0 = arith.constant 0 : i32
    return %arg0, %c0_i32 : i32, i32
  }
  func.func @transform_1(%arg0: i32) -> (i32, i32) {
    %c0_i32 = arith.constant 0 : i32
    %c0_i32_0 = arith.constant 0 : i32
    %c0_i32_1 = arith.constant 0 : i32
    return %c0_i32, %c0_i32_0 : i32, i32
  }
  func.func @transform_2(%arg0: i32) -> (i32, i32) {
    %c0_i32 = arith.constant 0 : i32
    %c0_i32_0 = arith.constant 0 : i32
    %c0_i32_1 = arith.constant 0 : i32
    return %c0_i32, %c0_i32_0 : i32, i32
  }
  func.func @transform_3(%arg0: i32) -> (i32, i32) {
    %c0_i32 = arith.constant 0 : i32
    %c0_i32_0 = arith.constant 0 : i32
    return %arg0, %c0_i32 : i32, i32
  }
  func.func @transform_4(%arg0: i32) -> (i32, i32) {
    %c0_i32 = arith.constant 0 : i32
    %c0_i32_0 = arith.constant 0 : i32
    return %arg0, %c0_i32 : i32, i32
  }
}

module attributes {stable_mosaic.version = 11 : i64} {
  func.func @_fused_linear_kernel(%arg0: i32, %arg1: memref<32x32xf32, #tpu.memory_space<vmem>>, %arg2: memref<32x128xbf16, #tpu.memory_space<vmem>>, %arg3: memref<1x128xf32, #tpu.memory_space<vmem>>, %arg4: memref<1x32xf32, #tpu.memory_space<vmem>>, %arg5: memref<1x32xf32, #tpu.memory_space<vmem>>, %arg6: memref<32x128xf32, #tpu.memory_space<vmem>>) attributes {dimension_semantics = [#tpu.dimension_semantics<parallel>], iteration_bounds = array<i64: 1>, scalar_prefetch = 0 : i64, scratch_operands = 0 : i64, tpu.core_type = #tpu.core_type<tc>, window_params = [{transform_indices = @transform_0, window_bounds = array<i64: 32, 32>}, {pipeline_mode = #tpu.pipeline_mode<synchronous>, transform_indices = @transform_1, window_bounds = array<i64: 32, 128>}, {pipeline_mode = #tpu.pipeline_mode<synchronous>, transform_indices = @transform_2, window_bounds = array<i64: 1, 128>}, {pipeline_mode = #tpu.pipeline_mode<synchronous>, transform_indices = @transform_3, window_bounds = array<i64: 1, 32>}, {pipeline_mode = #tpu.pipeline_mode<synchronous>, transform_indices = @transform_4, window_bounds = array<i64: 1, 32>}, {transform_indices = @transform_5, window_bounds = array<i64: 32, 128>}]} {
    %c0 = arith.constant 0 : index
    %c0_0 = arith.constant 0 : index
    %0 = vector.load %arg1[%c0, %c0_0] : memref<32x32xf32, #tpu.memory_space<vmem>>, vector<32x32xf32>
    %cst = arith.constant dense<0.000000e+00> : vector<32xf32>
    %1 = vector.multi_reduction <add>, %0, %cst [1] : vector<32x32xf32> to vector<32xf32>
    %2 = vector.shape_cast %1 : vector<32xf32> to vector<32x1xf32>
    %cst_1 = arith.constant 3.200000e+01 : f32
    %3 = vector.broadcast %cst_1 : f32 to vector<32x1xf32>
    %4 = arith.divf %2, %3 : vector<32x1xf32>
    %5 = vector.broadcast %4 : vector<32x1xf32> to vector<32x32xf32>
    %6 = arith.subf %0, %5 : vector<32x32xf32>
    %7 = arith.mulf %6, %6 : vector<32x32xf32>
    %cst_2 = arith.constant dense<0.000000e+00> : vector<32xf32>
    %8 = vector.multi_reduction <add>, %7, %cst_2 [1] : vector<32x32xf32> to vector<32xf32>
    %9 = vector.shape_cast %8 : vector<32xf32> to vector<32x1xf32>
    %cst_3 = arith.constant 3.200000e+01 : f32
    %10 = vector.broadcast %cst_3 : f32 to vector<32x1xf32>
    %11 = arith.divf %9, %10 : vector<32x1xf32>
    %12 = vector.broadcast %4 : vector<32x1xf32> to vector<32x32xf32>
    %13 = arith.subf %0, %12 : vector<32x32xf32>
    %cst_4 = arith.constant 9.99999997E-7 : f32
    %14 = vector.broadcast %cst_4 : f32 to vector<32x1xf32>
    %15 = arith.addf %11, %14 : vector<32x1xf32>
    %16 = math.rsqrt %15 : vector<32x1xf32>
    %17 = vector.broadcast %16 : vector<32x1xf32> to vector<32x32xf32>
    %18 = arith.mulf %13, %17 : vector<32x32xf32>
    %c0_5 = arith.constant 0 : index
    %c0_6 = arith.constant 0 : index
    %19 = vector.load %arg4[%c0_5, %c0_6] : memref<1x32xf32, #tpu.memory_space<vmem>>, vector<1x32xf32>
    %20 = vector.broadcast %19 : vector<1x32xf32> to vector<32x32xf32>
    %21 = arith.mulf %18, %20 : vector<32x32xf32>
    %c0_7 = arith.constant 0 : index
    %c0_8 = arith.constant 0 : index
    %22 = vector.load %arg5[%c0_7, %c0_8] : memref<1x32xf32, #tpu.memory_space<vmem>>, vector<1x32xf32>
    %23 = vector.broadcast %22 : vector<1x32xf32> to vector<32x32xf32>
    %24 = arith.addf %21, %23 : vector<32x32xf32>
    %25 = arith.truncf %24 : vector<32x32xf32> to vector<32x32xbf16>
    %c0_9 = arith.constant 0 : index
    %c0_10 = arith.constant 0 : index
    %26 = vector.load %arg2[%c0_9, %c0_10] : memref<32x128xbf16, #tpu.memory_space<vmem>>, vector<32x128xbf16>
    %cst_11 = arith.constant dense<0.000000e+00> : vector<32x128xf32>
    %27 = tpu.matmul %25, %26, %cst_11 {dimension_numbers = #tpu.dot_dimension_numbers<[1], [0], [0], [1], [0, 0, 1, 1], [], []>} : vector<32x32xbf16>, vector<32x128xbf16>, vector<32x128xf32> -> vector<32x128xf32>
    %c0_12 = arith.constant 0 : index
    %c0_13 = arith.constant 0 : index
    %28 = vector.load %arg3[%c0_12, %c0_13] : memref<1x128xf32, #tpu.memory_space<vmem>>, vector<1x128xf32>
    %29 = vector.broadcast %28 : vector<1x128xf32> to vector<32x128xf32>
    %30 = arith.addf %27, %29 : vector<32x128xf32>
    %cst_14 = arith.constant 5.000000e-01 : f32
    %31 = vector.broadcast %cst_14 : f32 to vector<32x128xf32>
    %32 = arith.mulf %31, %30 : vector<32x128xf32>
    %cst_15 = arith.constant 0.707106769 : f32
    %33 = vector.broadcast %cst_15 : f32 to vector<32x128xf32>
    %34 = arith.mulf %30, %33 : vector<32x128xf32>
    %cst_16 = arith.constant 0.000000e+00 : f32
    %35 = vector.broadcast %cst_16 : f32 to vector<32x128xf32>
    %36 = arith.cmpf oge, %34, %35 : vector<32x128xf32>
    %cst_17 = arith.constant 1.000000e+00 : f32
    %cst_18 = arith.constant -1.000000e+00 : f32
    %37 = vector.broadcast %cst_17 : f32 to vector<32x128xf32>
    %38 = vector.broadcast %cst_18 : f32 to vector<32x128xf32>
    %39 = arith.select %36, %37, %38 : vector<32x128xi1>, vector<32x128xf32>
    %40 = math.absf %34 : vector<32x128xf32>
    %cst_19 = arith.constant 0.327591091 : f32
    %41 = vector.broadcast %cst_19 : f32 to vector<32x128xf32>
    %42 = arith.mulf %41, %40 : vector<32x128xf32>
    %cst_20 = arith.constant 1.000000e+00 : f32
    %43 = vector.broadcast %cst_20 : f32 to vector<32x128xf32>
    %44 = arith.addf %43, %42 : vector<32x128xf32>
    %cst_21 = arith.constant 1.000000e+00 : f32
    %45 = vector.broadcast %cst_21 : f32 to vector<32x128xf32>
    %46 = arith.divf %45, %44 : vector<32x128xf32>
    %cst_22 = arith.constant 1.06140542 : f32
    %47 = vector.broadcast %cst_22 : f32 to vector<32x128xf32>
    %48 = arith.mulf %47, %46 : vector<32x128xf32>
    %cst_23 = arith.constant -1.45315206 : f32
    %49 = vector.broadcast %cst_23 : f32 to vector<32x128xf32>
    %50 = arith.addf %48, %49 : vector<32x128xf32>
    %51 = arith.mulf %50, %46 : vector<32x128xf32>
    %cst_24 = arith.constant 1.42141378 : f32
    %52 = vector.broadcast %cst_24 : f32 to vector<32x128xf32>
    %53 = arith.addf %51, %52 : vector<32x128xf32>
    %54 = arith.mulf %53, %46 : vector<32x128xf32>
    %cst_25 = arith.constant -0.284496725 : f32
    %55 = vector.broadcast %cst_25 : f32 to vector<32x128xf32>
    %56 = arith.addf %54, %55 : vector<32x128xf32>
    %57 = arith.mulf %56, %46 : vector<32x128xf32>
    %cst_26 = arith.constant 0.254829586 : f32
    %58 = vector.broadcast %cst_26 : f32 to vector<32x128xf32>
    %59 = arith.addf %57, %58 : vector<32x128xf32>
    %60 = arith.mulf %59, %46 : vector<32x128xf32>
    %cst_27 = arith.constant 0.000000e+00 : f32
    %61 = vector.broadcast %cst_27 : f32 to vector<32x128xf32>
    %62 = arith.subf %61, %40 : vector<32x128xf32>
    %63 = arith.mulf %62, %40 : vector<32x128xf32>
    %64 = math.exp %63 : vector<32x128xf32>
    %65 = arith.mulf %60, %64 : vector<32x128xf32>
    %cst_28 = arith.constant 1.000000e+00 : f32
    %66 = vector.broadcast %cst_28 : f32 to vector<32x128xf32>
    %67 = arith.subf %66, %65 : vector<32x128xf32>
    %68 = arith.mulf %39, %67 : vector<32x128xf32>
    %cst_29 = arith.constant 1.000000e+00 : f32
    %69 = vector.broadcast %cst_29 : f32 to vector<32x128xf32>
    %70 = arith.addf %69, %68 : vector<32x128xf32>
    %71 = arith.mulf %32, %70 : vector<32x128xf32>
    %c0_30 = arith.constant 0 : index
    %c0_31 = arith.constant 0 : index
    %72 = vector.load %arg6[%c0_30, %c0_31] : memref<32x128xf32, #tpu.memory_space<vmem>>, vector<32x128xf32>
    tpu.vector_store %arg6[%c0_30, %c0_31], %71 {strides = array<i32>} : memref<32x128xf32, #tpu.memory_space<vmem>>, vector<32x128xf32>,
    return
  }
  func.func @transform_0(%arg0: i32) -> (i32, i32) {
    %c0_i32 = arith.constant 0 : i32
    %c0_i32_0 = arith.constant 0 : i32
    return %arg0, %c0_i32 : i32, i32
  }
  func.func @transform_1(%arg0: i32) -> (i32, i32) {
    %c0_i32 = arith.constant 0 : i32
    %c0_i32_0 = arith.constant 0 : i32
    %c0_i32_1 = arith.constant 0 : i32
    return %c0_i32, %c0_i32_0 : i32, i32
  }
  func.func @transform_2(%arg0: i32) -> (i32, i32) {
    %c0_i32 = arith.constant 0 : i32
    %c0_i32_0 = arith.constant 0 : i32
    %c0_i32_1 = arith.constant 0 : i32
    return %c0_i32, %c0_i32_0 : i32, i32
  }
  func.func @transform_3(%arg0: i32) -> (i32, i32) {
    %c0_i32 = arith.constant 0 : i32
    %c0_i32_0 = arith.constant 0 : i32
    %c0_i32_1 = arith.constant 0 : i32
    return %c0_i32, %c0_i32_0 : i32, i32
  }
  func.func @transform_4(%arg0: i32) -> (i32, i32) {
    %c0_i32 = arith.constant 0 : i32
    %c0_i32_0 = arith.constant 0 : i32
    %c0_i32_1 = arith.constant 0 : i32
    return %c0_i32, %c0_i32_0 : i32, i32
  }
  func.func @transform_5(%arg0: i32) -> (i32, i32) {
    %c0_i32 = arith.constant 0 : i32
    %c0_i32_0 = arith.constant 0 : i32
    return %arg0, %c0_i32 : i32, i32
  }
}

module attributes {stable_mosaic.version = 11 : i64} {
  func.func @_fused_linear_kernel(%arg0: i32, %arg1: memref<32x128xf32, #tpu.memory_space<vmem>>, %arg2: memref<128x32xbf16, #tpu.memory_space<vmem>>, %arg3: memref<1x32xf32, #tpu.memory_space<vmem>>, %arg4: memref<32x32xf32, #tpu.memory_space<vmem>>, %arg5: memref<32x32xf32, #tpu.memory_space<vmem>>) attributes {dimension_semantics = [#tpu.dimension_semantics<parallel>], iteration_bounds = array<i64: 1>, scalar_prefetch = 0 : i64, scratch_operands = 0 : i64, tpu.core_type = #tpu.core_type<tc>, window_params = [{transform_indices = @transform_0, window_bounds = array<i64: 32, 128>}, {pipeline_mode = #tpu.pipeline_mode<synchronous>, transform_indices = @transform_1, window_bounds = array<i64: 128, 32>}, {pipeline_mode = #tpu.pipeline_mode<synchronous>, transform_indices = @transform_2, window_bounds = array<i64: 1, 32>}, {transform_indices = @transform_3, window_bounds = array<i64: 32, 32>}, {transform_indices = @transform_4, window_bounds = array<i64: 32, 32>}]} {
    %c0 = arith.constant 0 : index
    %c0_0 = arith.constant 0 : index
    %0 = vector.load %arg1[%c0, %c0_0] : memref<32x128xf32, #tpu.memory_space<vmem>>, vector<32x128xf32>
    %1 = arith.truncf %0 : vector<32x128xf32> to vector<32x128xbf16>
    %c0_1 = arith.constant 0 : index
    %c0_2 = arith.constant 0 : index
    %2 = vector.load %arg2[%c0_1, %c0_2] : memref<128x32xbf16, #tpu.memory_space<vmem>>, vector<128x32xbf16>
    %cst = arith.constant dense<0.000000e+00> : vector<32x32xf32>
    %3 = tpu.matmul %1, %2, %cst {dimension_numbers = #tpu.dot_dimension_numbers<[1], [0], [0], [1], [0, 0, 1, 1], [], []>} : vector<32x128xbf16>, vector<128x32xbf16>, vector<32x32xf32> -> vector<32x32xf32>
    %c0_3 = arith.constant 0 : index
    %c0_4 = arith.constant 0 : index
    %4 = vector.load %arg3[%c0_3, %c0_4] : memref<1x32xf32, #tpu.memory_space<vmem>>, vector<1x32xf32>
    %5 = vector.broadcast %4 : vector<1x32xf32> to vector<32x32xf32>
    %6 = arith.addf %3, %5 : vector<32x32xf32>
    %c0_5 = arith.constant 0 : index
    %c0_6 = arith.constant 0 : index
    %7 = vector.load %arg4[%c0_5, %c0_6] : memref<32x32xf32, #tpu.memory_space<vmem>>, vector<32x32xf32>
    %8 = arith.addf %6, %7 : vector<32x32xf32>
    %c0_7 = arith.constant 0 : index
    %c0_8 = arith.constant 0 : index
    %9 = vector.load %arg5[%c0_7, %c0_8] : memref<32x32xf32, #tpu.memory_space<vmem>>, vector<32x32xf32>
    tpu.vector_store %arg5[%c0_7, %c0_8], %8 {strides = array<i32>} : memref<32x32xf32, #tpu.memory_space<vmem>>, vector<32x32xf32>,
    return
  }
  func.func @transform_0(%arg0: i32) -> (i32, i32) {
    %c0_i32 = arith.constant 0 : i32
    %c0_i32_0 = arith.constant 0 : i32
    return %arg0, %c0_i32 : i32, i32
  }
  func.func @transform_1(%arg0: i32) -> (i32, i32) {
    %c0_i32 = arith.constant 0 : i32
    %c0_i32_0 = arith.constant 0 : i32
    %c0_i32_1 = arith.constant 0 : i32
    return %c0_i32, %c0_i32_0 : i32, i32
  }
  func.func @transform_2(%arg0: i32) -> (i32, i32) {
    %c0_i32 = arith.constant 0 : i32
    %c0_i32_0 = arith.constant 0 : i32
    %c0_i32_1 = arith.constant 0 : i32
    return %c0_i32, %c0_i32_0 : i32, i32
  }
  func.func @transform_3(%arg0: i32) -> (i32, i32) {
    %c0_i32 = arith.constant 0 : i32
    %c0_i32_0 = arith.constant 0 : i32
    return %arg0, %c0_i32 : i32, i32
  }
  func.func @transform_4(%arg0: i32) -> (i32, i32) {
    %c0_i32 = arith.constant 0 : i32
    %c0_i32_0 = arith.constant 0 : i32
    return %arg0, %c0_i32 : i32, i32
  }
}

module attributes {stable_mosaic.version = 11 : i64} {
  func.func @_attention_kernel(%arg0: i32, %arg1: i32, %arg2: memref<1x16x8xf32, #tpu.memory_space<vmem>>, %arg3: memref<1x16x8xf32, #tpu.memory_space<vmem>>, %arg4: memref<1x16x8xf32, #tpu.memory_space<vmem>>, %arg5: memref<1x16x4xf32, #tpu.memory_space<vmem>>, %arg6: memref<1x16x4xf32, #tpu.memory_space<vmem>>, %arg7: memref<4x16xf32, #tpu.memory_space<vmem>>, %arg8: memref<4x16xf32, #tpu.memory_space<vmem>>, %arg9: memref<1x16x8xf32, #tpu.memory_space<vmem>>, %arg10: memref<16x1xf32, #tpu.memory_space<vmem>>, %arg11: memref<16x1xf32, #tpu.memory_space<vmem>>, %arg12: memref<16x8xf32, #tpu.memory_space<vmem>>) attributes {dimension_semantics = [#tpu.dimension_semantics<parallel>, #tpu.dimension_semantics<arbitrary>], iteration_bounds = array<i64: 8, 1>, scalar_prefetch = 0 : i64, scratch_operands = 3 : i64, tpu.core_type = #tpu.core_type<tc>, window_params = [{transform_indices = @transform_0, window_bounds = array<i64: 1, 16, 8>}, {transform_indices = @transform_1, window_bounds = array<i64: 1, 16, 8>}, {transform_indices = @transform_2, window_bounds = array<i64: 1, 16, 8>}, {transform_indices = @transform_3, window_bounds = array<i64: 1, 16, 4>}, {transform_indices = @transform_4, window_bounds = array<i64: 1, 16, 4>}, {transform_indices = @transform_5, window_bounds = array<i64: 4, 16>}, {transform_indices = @transform_6, window_bounds = array<i64: 4, 16>}, {transform_indices = @transform_7, window_bounds = array<i64: 1, 16, 8>}]} {
    %c0_i32 = arith.constant 0 : i32
    %0 = arith.cmpi eq, %arg1, %c0_i32 : i32
    %1 = arith.extui %0 : i1 to i32
    %c0_i32_0 = arith.constant 0 : i32
    %2 = arith.cmpi ne, %1, %c0_i32_0 : i32
    scf.if %2 {
      %cst_39 = arith.constant 0xFF800000 : f32
      %51 = vector.broadcast %cst_39 : f32 to vector<16x1xf32>
      %c0_40 = arith.constant 0 : index
      %c0_41 = arith.constant 0 : index
      %52 = vector.load %arg10[%c0_40, %c0_41] : memref<16x1xf32, #tpu.memory_space<vmem>>, vector<16x1xf32>
      tpu.vector_store %arg10[%c0_40, %c0_41], %51 {strides = array<i32>} : memref<16x1xf32, #tpu.memory_space<vmem>>, vector<16x1xf32>,
      %cst_42 = arith.constant 0.000000e+00 : f32
      %53 = vector.broadcast %cst_42 : f32 to vector<16x1xf32>
      %c0_43 = arith.constant 0 : index
      %c0_44 = arith.constant 0 : index
      %54 = vector.load %arg11[%c0_43, %c0_44] : memref<16x1xf32, #tpu.memory_space<vmem>>, vector<16x1xf32>
      tpu.vector_store %arg11[%c0_43, %c0_44], %53 {strides = array<i32>} : memref<16x1xf32, #tpu.memory_space<vmem>>, vector<16x1xf32>,
      %cst_45 = arith.constant 0.000000e+00 : f32
      %55 = vector.broadcast %cst_45 : f32 to vector<16x8xf32>
      %c0_46 = arith.constant 0 : index
      %c0_47 = arith.constant 0 : index
      %56 = vector.load %arg12[%c0_46, %c0_47] : memref<16x8xf32, #tpu.memory_space<vmem>>, vector<16x8xf32>
      tpu.vector_store %arg12[%c0_46, %c0_47], %55 {strides = array<i32>} : memref<16x8xf32, #tpu.memory_space<vmem>>, vector<16x8xf32>,
    } else {
    }
    %c0 = arith.constant 0 : index
    %c0_1 = arith.constant 0 : index
    %c0_2 = arith.constant 0 : index
    %3 = vector.load %arg2[%c0, %c0_1, %c0_2] : memref<1x16x8xf32, #tpu.memory_space<vmem>>, vector<1x16x8xf32>
    %4 = vector.shape_cast %3 : vector<1x16x8xf32> to vector<16x8xf32>
    %5 = arith.truncf %4 : vector<16x8xf32> to vector<16x8xbf16>
    %c0_3 = arith.constant 0 : index
    %c0_4 = arith.constant 0 : index
    %c0_5 = arith.constant 0 : index
    %6 = vector.load %arg3[%c0_3, %c0_4, %c0_5] : memref<1x16x8xf32, #tpu.memory_space<vmem>>, vector<1x16x8xf32>
    %7 = vector.shape_cast %6 : vector<1x16x8xf32> to vector<16x8xf32>
    %8 = arith.truncf %7 : vector<16x8xf32> to vector<16x8xbf16>
    %c0_6 = arith.constant 0 : index
    %c0_7 = arith.constant 0 : index
    %c0_8 = arith.constant 0 : index
    %9 = vector.load %arg4[%c0_6, %c0_7, %c0_8] : memref<1x16x8xf32, #tpu.memory_space<vmem>>, vector<1x16x8xf32>
    %10 = vector.shape_cast %9 : vector<1x16x8xf32> to vector<16x8xf32>
    %11 = arith.truncf %10 : vector<16x8xf32> to vector<16x8xbf16>
    "tpu.trace_start"() <{level = 10 : i32, message = "qd,kd->qk"}> : () -> ()
    %cst = arith.constant dense<0.000000e+00> : vector<16x16xf32>
    %12 = tpu.matmul %5, %8, %cst {dimension_numbers = #tpu.dot_dimension_numbers<[1], [1], [0], [0], [0, 0, 1, 0], [], []>} : vector<16x8xbf16>, vector<16x8xbf16>, vector<16x16xf32> -> vector<16x16xf32>
    "tpu.trace_stop"() : () -> ()
    %cst_9 = arith.constant 0.353553385 : f32
    %13 = vector.broadcast %cst_9 : f32 to vector<16x16xf32>
    %14 = arith.mulf %12, %13 : vector<16x16xf32>
    %c0_10 = arith.constant 0 : index
    %c0_11 = arith.constant 0 : index
    %c0_12 = arith.constant 0 : index
    %15 = vector.load %arg5[%c0_10, %c0_11, %c0_12] : memref<1x16x4xf32, #tpu.memory_space<vmem>>, vector<1x16x4xf32>
    %16 = vector.shape_cast %15 : vector<1x16x4xf32> to vector<16x4xf32>
    %c0_13 = arith.constant 0 : index
    %c0_14 = arith.constant 0 : index
    %17 = vector.load %arg7[%c0_13, %c0_14] : memref<4x16xf32, #tpu.memory_space<vmem>>, vector<4x16xf32>
    %cst_15 = arith.constant dense<0.000000e+00> : vector<16x16xf32>
    %18 = tpu.matmul %16, %17, %cst_15 {dimension_numbers = #tpu.dot_dimension_numbers<[1], [0], [0], [1], [0, 0, 1, 1], [], []>} : vector<16x4xf32>, vector<4x16xf32>, vector<16x16xf32> -> vector<16x16xf32>
    %c0_16 = arith.constant 0 : index
    %c0_17 = arith.constant 0 : index
    %c0_18 = arith.constant 0 : index
    %19 = vector.load %arg6[%c0_16, %c0_17, %c0_18] : memref<1x16x4xf32, #tpu.memory_space<vmem>>, vector<1x16x4xf32>
    %20 = vector.shape_cast %19 : vector<1x16x4xf32> to vector<16x4xf32>
    %c0_19 = arith.constant 0 : index
    %c0_20 = arith.constant 0 : index
    %21 = vector.load %arg8[%c0_19, %c0_20] : memref<4x16xf32, #tpu.memory_space<vmem>>, vector<4x16xf32>
    %cst_21 = arith.constant dense<0.000000e+00> : vector<16x16xf32>
    %22 = tpu.matmul %20, %21, %cst_21 {dimension_numbers = #tpu.dot_dimension_numbers<[1], [0], [0], [1], [0, 0, 1, 1], [], []>} : vector<16x4xf32>, vector<4x16xf32>, vector<16x16xf32> -> vector<16x16xf32>
    %23 = arith.addf %18, %22 : vector<16x16xf32>
    %24 = arith.addf %14, %23 : vector<16x16xf32>
    %c0_22 = arith.constant 0 : index
    %c0_23 = arith.constant 0 : index
    %25 = vector.load %arg10[%c0_22, %c0_23] : memref<16x1xf32, #tpu.memory_space<vmem>>, vector<16x1xf32>
    %cst_24 = arith.constant dense<0xFF800000> : vector<16xf32>
    %26 = vector.multi_reduction <maximumf>, %24, %cst_24 [1] : vector<16x16xf32> to vector<16xf32>
    %27 = vector.shape_cast %26 : vector<16xf32> to vector<16x1xf32>
    %28 = arith.maximumf %25, %27 : vector<16x1xf32>
    %29 = arith.subf %25, %28 : vector<16x1xf32>
    %30 = math.exp %29 : vector<16x1xf32>
    %31 = vector.broadcast %28 : vector<16x1xf32> to vector<16x16xf32>
    %32 = arith.subf %24, %31 : vector<16x16xf32>
    %33 = math.exp %32 : vector<16x16xf32>
    %c0_25 = arith.constant 0 : index
    %c0_26 = arith.constant 0 : index
    %34 = vector.load %arg11[%c0_25, %c0_26] : memref<16x1xf32, #tpu.memory_space<vmem>>, vector<16x1xf32>
    %35 = arith.mulf %30, %34 : vector<16x1xf32>
    %cst_27 = arith.constant dense<0.000000e+00> : vector<16xf32>
    %36 = vector.multi_reduction <add>, %33, %cst_27 [1] : vector<16x16xf32> to vector<16xf32>
    %37 = vector.shape_cast %36 : vector<16xf32> to vector<16x1xf32>
    %38 = arith.addf %35, %37 : vector<16x1xf32>
    %c0_28 = arith.constant 0 : index
    %c0_29 = arith.constant 0 : index
    %39 = vector.load %arg11[%c0_28, %c0_29] : memref<16x1xf32, #tpu.memory_space<vmem>>, vector<16x1xf32>
    tpu.vector_store %arg11[%c0_28, %c0_29], %38 {strides = array<i32>} : memref<16x1xf32, #tpu.memory_space<vmem>>, vector<16x1xf32>,
    %c0_30 = arith.constant 0 : index
    %c0_31 = arith.constant 0 : index
    %40 = vector.load %arg12[%c0_30, %c0_31] : memref<16x8xf32, #tpu.memory_space<vmem>>, vector<16x8xf32>
    %41 = vector.broadcast %30 : vector<16x1xf32> to vector<16x8xf32>
    %42 = arith.mulf %41, %40 : vector<16x8xf32>
    %43 = arith.truncf %33 : vector<16x16xf32> to vector<16x16xbf16>
    %cst_32 = arith.constant dense<0.000000e+00> : vector<16x8xf32>
    %44 = tpu.matmul %43, %11, %cst_32 {dimension_numbers = #tpu.dot_dimension_numbers<[1], [0], [0], [1], [0, 0, 1, 1], [], []>} : vector<16x16xbf16>, vector<16x8xbf16>, vector<16x8xf32> -> vector<16x8xf32>
    %45 = arith.addf %42, %44 : vector<16x8xf32>
    %c0_33 = arith.constant 0 : index
    %c0_34 = arith.constant 0 : index
    %46 = vector.load %arg12[%c0_33, %c0_34] : memref<16x8xf32, #tpu.memory_space<vmem>>, vector<16x8xf32>
    tpu.vector_store %arg12[%c0_33, %c0_34], %45 {strides = array<i32>} : memref<16x8xf32, #tpu.memory_space<vmem>>, vector<16x8xf32>,
    %c0_35 = arith.constant 0 : index
    %c0_36 = arith.constant 0 : index
    %47 = vector.load %arg10[%c0_35, %c0_36] : memref<16x1xf32, #tpu.memory_space<vmem>>, vector<16x1xf32>
    tpu.vector_store %arg10[%c0_35, %c0_36], %28 {strides = array<i32>} : memref<16x1xf32, #tpu.memory_space<vmem>>, vector<16x1xf32>,
    %c0_i32_37 = arith.constant 0 : i32
    %48 = arith.cmpi eq, %arg1, %c0_i32_37 : i32
    %49 = arith.extui %48 : i1 to i32
    %c0_i32_38 = arith.constant 0 : i32
    %50 = arith.cmpi ne, %49, %c0_i32_38 : i32
    scf.if %50 {
      %c0_39 = arith.constant 0 : index
      %c0_40 = arith.constant 0 : index
      %51 = vector.load %arg12[%c0_39, %c0_40] : memref<16x8xf32, #tpu.memory_space<vmem>>, vector<16x8xf32>
      %c0_41 = arith.constant 0 : index
      %c0_42 = arith.constant 0 : index
      %52 = vector.load %arg11[%c0_41, %c0_42] : memref<16x1xf32, #tpu.memory_space<vmem>>, vector<16x1xf32>
      %53 = tpu.reciprocal %52 {approx = true} : vector<16x1xf32> -> vector<16x1xf32>
      %54 = vector.broadcast %53 : vector<16x1xf32> to vector<16x8xf32>
      %55 = arith.mulf %51, %54 : vector<16x8xf32>
      %c0_43 = arith.constant 0 : index
      %c0_44 = arith.constant 0 : index
      %c0_45 = arith.constant 0 : index
      %56 = vector.load %arg9[%c0_43, %c0_44, %c0_45] : memref<1x16x8xf32, #tpu.memory_space<vmem>>, vector<1x16x8xf32>
      %57 = vector.shape_cast %56 : vector<1x16x8xf32> to vector<16x8xf32>
      %58 = vector.shape_cast %55 : vector<16x8xf32> to vector<1x16x8xf32>
      tpu.vector_store %arg9[%c0_43, %c0_44, %c0_45], %58 {strides = array<i32>} : memref<1x16x8xf32, #tpu.memory_space<vmem>>, vector<1x16x8xf32>,
    } else {
    }
    return
  }
  func.func @transform_0(%arg0: i32, %arg1: i32) -> (i32, i32, i32) {
    %c0_i32 = arith.constant 0 : i32
    %c0_i32_0 = arith.constant 0 : i32
    %c0_i32_1 = arith.constant 0 : i32
    return %arg0, %c0_i32, %c0_i32_0 : i32, i32, i32
  }
  func.func @transform_1(%arg0: i32, %arg1: i32) -> (i32, i32, i32) {
    %c0_i32 = arith.constant 0 : i32
    %c0_i32_0 = arith.constant 0 : i32
    return %arg0, %arg1, %c0_i32 : i32, i32, i32
  }
  func.func @transform_2(%arg0: i32, %arg1: i32) -> (i32, i32, i32) {
    %c0_i32 = arith.constant 0 : i32
    %c0_i32_0 = arith.constant 0 : i32
    return %arg0, %arg1, %c0_i32 : i32, i32, i32
  }
  func.func @transform_3(%arg0: i32, %arg1: i32) -> (i32, i32, i32) {
    %c0_i32 = arith.constant 0 : i32
    %c0_i32_0 = arith.constant 0 : i32
    %c0_i32_1 = arith.constant 0 : i32
    return %arg0, %c0_i32, %c0_i32_0 : i32, i32, i32
  }
  func.func @transform_4(%arg0: i32, %arg1: i32) -> (i32, i32, i32) {
    %c0_i32 = arith.constant 0 : i32
    %c0_i32_0 = arith.constant 0 : i32
    %c0_i32_1 = arith.constant 0 : i32
    return %arg0, %c0_i32, %c0_i32_0 : i32, i32, i32
  }
  func.func @transform_5(%arg0: i32, %arg1: i32) -> (i32, i32) {
    %c0_i32 = arith.constant 0 : i32
    %c0_i32_0 = arith.constant 0 : i32
    return %c0_i32, %arg1 : i32, i32
  }
  func.func @transform_6(%arg0: i32, %arg1: i32) -> (i32, i32) {
    %c0_i32 = arith.constant 0 : i32
    %c0_i32_0 = arith.constant 0 : i32
    return %c0_i32, %arg1 : i32, i32
  }
  func.func @transform_7(%arg0: i32, %arg1: i32) -> (i32, i32, i32) {
    %c0_i32 = arith.constant 0 : i32
    %c0_i32_0 = arith.constant 0 : i32
    %c0_i32_1 = arith.constant 0 : i32
    return %arg0, %c0_i32, %c0_i32_0 : i32, i32, i32
  }
}

module attributes {stable_mosaic.version = 11 : i64} {
  func.func @_fused_linear_kernel(%arg0: i32, %arg1: memref<32x32xf32, #tpu.memory_space<vmem>>, %arg2: memref<32x16xbf16, #tpu.memory_space<vmem>>, %arg3: memref<1x16xf32, #tpu.memory_space<vmem>>, %arg4: memref<1x16xf32, #tpu.memory_space<vmem>>, %arg5: memref<1x16xf32, #tpu.memory_space<vmem>>, %arg6: memref<32x16xf32, #tpu.memory_space<vmem>>) attributes {dimension_semantics = [#tpu.dimension_semantics<parallel>], iteration_bounds = array<i64: 1>, scalar_prefetch = 0 : i64, scratch_operands = 0 : i64, tpu.core_type = #tpu.core_type<tc>, window_params = [{transform_indices = @transform_0, window_bounds = array<i64: 32, 32>}, {pipeline_mode = #tpu.pipeline_mode<synchronous>, transform_indices = @transform_1, window_bounds = array<i64: 32, 16>}, {pipeline_mode = #tpu.pipeline_mode<synchronous>, transform_indices = @transform_2, window_bounds = array<i64: 1, 16>}, {pipeline_mode = #tpu.pipeline_mode<synchronous>, transform_indices = @transform_3, window_bounds = array<i64: 1, 16>}, {pipeline_mode = #tpu.pipeline_mode<synchronous>, transform_indices = @transform_4, window_bounds = array<i64: 1, 16>}, {transform_indices = @transform_5, window_bounds = array<i64: 32, 16>}]} {
    %c0 = arith.constant 0 : index
    %c0_0 = arith.constant 0 : index
    %0 = vector.load %arg1[%c0, %c0_0] : memref<32x32xf32, #tpu.memory_space<vmem>>, vector<32x32xf32>
    %1 = arith.truncf %0 : vector<32x32xf32> to vector<32x32xbf16>
    %c0_1 = arith.constant 0 : index
    %c0_2 = arith.constant 0 : index
    %2 = vector.load %arg2[%c0_1, %c0_2] : memref<32x16xbf16, #tpu.memory_space<vmem>>, vector<32x16xbf16>
    %cst = arith.constant dense<0.000000e+00> : vector<32x16xf32>
    %3 = tpu.matmul %1, %2, %cst {dimension_numbers = #tpu.dot_dimension_numbers<[1], [0], [0], [1], [0, 0, 1, 1], [], []>} : vector<32x32xbf16>, vector<32x16xbf16>, vector<32x16xf32> -> vector<32x16xf32>
    %c0_3 = arith.constant 0 : index
    %c0_4 = arith.constant 0 : index
    %4 = vector.load %arg3[%c0_3, %c0_4] : memref<1x16xf32, #tpu.memory_space<vmem>>, vector<1x16xf32>
    %5 = vector.broadcast %4 : vector<1x16xf32> to vector<32x16xf32>
    %6 = arith.addf %3, %5 : vector<32x16xf32>
    %cst_5 = arith.constant dense<0.000000e+00> : vector<32xf32>
    %7 = vector.multi_reduction <add>, %6, %cst_5 [1] : vector<32x16xf32> to vector<32xf32>
    %8 = vector.shape_cast %7 : vector<32xf32> to vector<32x1xf32>
    %cst_6 = arith.constant 1.600000e+01 : f32
    %9 = vector.broadcast %cst_6 : f32 to vector<32x1xf32>
    %10 = arith.divf %8, %9 : vector<32x1xf32>
    %11 = vector.broadcast %10 : vector<32x1xf32> to vector<32x16xf32>
    %12 = arith.subf %6, %11 : vector<32x16xf32>
    %13 = arith.mulf %12, %12 : vector<32x16xf32>
    %cst_7 = arith.constant dense<0.000000e+00> : vector<32xf32>
    %14 = vector.multi_reduction <add>, %13, %cst_7 [1] : vector<32x16xf32> to vector<32xf32>
    %15 = vector.shape_cast %14 : vector<32xf32> to vector<32x1xf32>
    %cst_8 = arith.constant 1.600000e+01 : f32
    %16 = vector.broadcast %cst_8 : f32 to vector<32x1xf32>
    %17 = arith.divf %15, %16 : vector<32x1xf32>
    %18 = vector.broadcast %10 : vector<32x1xf32> to vector<32x16xf32>
    %19 = arith.subf %6, %18 : vector<32x16xf32>
    %cst_9 = arith.constant 9.99999997E-7 : f32
    %20 = vector.broadcast %cst_9 : f32 to vector<32x1xf32>
    %21 = arith.addf %17, %20 : vector<32x1xf32>
    %22 = math.rsqrt %21 : vector<32x1xf32>
    %23 = vector.broadcast %22 : vector<32x1xf32> to vector<32x16xf32>
    %24 = arith.mulf %19, %23 : vector<32x16xf32>
    %c0_10 = arith.constant 0 : index
    %c0_11 = arith.constant 0 : index
    %25 = vector.load %arg4[%c0_10, %c0_11] : memref<1x16xf32, #tpu.memory_space<vmem>>, vector<1x16xf32>
    %26 = vector.broadcast %25 : vector<1x16xf32> to vector<32x16xf32>
    %27 = arith.mulf %24, %26 : vector<32x16xf32>
    %c0_12 = arith.constant 0 : index
    %c0_13 = arith.constant 0 : index
    %28 = vector.load %arg5[%c0_12, %c0_13] : memref<1x16xf32, #tpu.memory_space<vmem>>, vector<1x16xf32>
    %29 = vector.broadcast %28 : vector<1x16xf32> to vector<32x16xf32>
    %30 = arith.addf %27, %29 : vector<32x16xf32>
    %c0_14 = arith.constant 0 : index
    %c0_15 = arith.constant 0 : index
    %31 = vector.load %arg6[%c0_14, %c0_15] : memref<32x16xf32, #tpu.memory_space<vmem>>, vector<32x16xf32>
    tpu.vector_store %arg6[%c0_14, %c0_15], %30 {strides = array<i32>} : memref<32x16xf32, #tpu.memory_space<vmem>>, vector<32x16xf32>,
    return
  }
  func.func @transform_0(%arg0: i32) -> (i32, i32) {
    %c0_i32 = arith.constant 0 : i32
    %c0_i32_0 = arith.constant 0 : i32
    return %arg0, %c0_i32 : i32, i32
  }
  func.func @transform_1(%arg0: i32) -> (i32, i32) {
    %c0_i32 = arith.constant 0 : i32
    %c0_i32_0 = arith.constant 0 : i32
    %c0_i32_1 = arith.constant 0 : i32
    return %c0_i32, %c0_i32_0 : i32, i32
  }
  func.func @transform_2(%arg0: i32) -> (i32, i32) {
    %c0_i32 = arith.constant 0 : i32
    %c0_i32_0 = arith.constant 0 : i32
    %c0_i32_1 = arith.constant 0 : i32
    return %c0_i32, %c0_i32_0 : i32, i32
  }
  func.func @transform_3(%arg0: i32) -> (i32, i32) {
    %c0_i32 = arith.constant 0 : i32
    %c0_i32_0 = arith.constant 0 : i32
    %c0_i32_1 = arith.constant 0 : i32
    return %c0_i32, %c0_i32_0 : i32, i32
  }
  func.func @transform_4(%arg0: i32) -> (i32, i32) {
    %c0_i32 = arith.constant 0 : i32
    %c0_i32_0 = arith.constant 0 : i32
    %c0_i32_1 = arith.constant 0 : i32
    return %c0_i32, %c0_i32_0 : i32, i32
  }
  func.func @transform_5(%arg0: i32) -> (i32, i32) {
    %c0_i32 = arith.constant 0 : i32
    %c0_i32_0 = arith.constant 0 : i32
    return %arg0, %c0_i32 : i32, i32
  }
}

module attributes {stable_mosaic.version = 11 : i64} {
  func.func @_maxpool_kernel(%arg0: memref<2x16x16xf32, #tpu.memory_space<vmem>>, %arg1: memref<2x16xf32, #tpu.memory_space<vmem>>) attributes {dimension_semantics = [], scalar_prefetch = 0 : i64, scratch_operands = 0 : i64, tpu.core_type = #tpu.core_type<tc>} {
    %c0 = arith.constant 0 : index
    %c0_0 = arith.constant 0 : index
    %c0_1 = arith.constant 0 : index
    %0 = vector.load %arg0[%c0, %c0_0, %c0_1] : memref<2x16x16xf32, #tpu.memory_space<vmem>>, vector<2x16x16xf32>
    %cst = arith.constant dense<0xFF800000> : vector<2x16xf32>
    %1 = vector.multi_reduction <maximumf>, %0, %cst [1] : vector<2x16x16xf32> to vector<2x16xf32>
    %c0_2 = arith.constant 0 : index
    %c0_3 = arith.constant 0 : index
    %2 = vector.load %arg1[%c0_2, %c0_3] : memref<2x16xf32, #tpu.memory_space<vmem>>, vector<2x16xf32>
    tpu.vector_store %arg1[%c0_2, %c0_3], %1 {strides = array<i32>} : memref<2x16xf32, #tpu.memory_space<vmem>>, vector<2x16xf32>,
    return
  }
}

module attributes {stable_mosaic.version = 11 : i64} {
  func.func @_fused_linear_kernel(%arg0: i32, %arg1: memref<32x144xf32, #tpu.memory_space<vmem>>, %arg2: memref<144x16xbf16, #tpu.memory_space<vmem>>, %arg3: memref<1x16xf32, #tpu.memory_space<vmem>>, %arg4: memref<1x16xf32, #tpu.memory_space<vmem>>, %arg5: memref<1x16xf32, #tpu.memory_space<vmem>>, %arg6: memref<32x16xf32, #tpu.memory_space<vmem>>) attributes {dimension_semantics = [#tpu.dimension_semantics<parallel>], iteration_bounds = array<i64: 1>, scalar_prefetch = 0 : i64, scratch_operands = 0 : i64, tpu.core_type = #tpu.core_type<tc>, window_params = [{transform_indices = @transform_0, window_bounds = array<i64: 32, 144>}, {pipeline_mode = #tpu.pipeline_mode<synchronous>, transform_indices = @transform_1, window_bounds = array<i64: 144, 16>}, {pipeline_mode = #tpu.pipeline_mode<synchronous>, transform_indices = @transform_2, window_bounds = array<i64: 1, 16>}, {pipeline_mode = #tpu.pipeline_mode<synchronous>, transform_indices = @transform_3, window_bounds = array<i64: 1, 16>}, {pipeline_mode = #tpu.pipeline_mode<synchronous>, transform_indices = @transform_4, window_bounds = array<i64: 1, 16>}, {transform_indices = @transform_5, window_bounds = array<i64: 32, 16>}]} {
    %c0 = arith.constant 0 : index
    %c0_0 = arith.constant 0 : index
    %0 = vector.load %arg1[%c0, %c0_0] : memref<32x144xf32, #tpu.memory_space<vmem>>, vector<32x144xf32>
    %1 = arith.truncf %0 : vector<32x144xf32> to vector<32x144xbf16>
    %c0_1 = arith.constant 0 : index
    %c0_2 = arith.constant 0 : index
    %2 = vector.load %arg2[%c0_1, %c0_2] : memref<144x16xbf16, #tpu.memory_space<vmem>>, vector<144x16xbf16>
    %cst = arith.constant dense<0.000000e+00> : vector<32x16xf32>
    %3 = tpu.matmul %1, %2, %cst {dimension_numbers = #tpu.dot_dimension_numbers<[1], [0], [0], [1], [0, 0, 1, 1], [], []>} : vector<32x144xbf16>, vector<144x16xbf16>, vector<32x16xf32> -> vector<32x16xf32>
    %c0_3 = arith.constant 0 : index
    %c0_4 = arith.constant 0 : index
    %4 = vector.load %arg3[%c0_3, %c0_4] : memref<1x16xf32, #tpu.memory_space<vmem>>, vector<1x16xf32>
    %5 = vector.broadcast %4 : vector<1x16xf32> to vector<32x16xf32>
    %6 = arith.addf %3, %5 : vector<32x16xf32>
    %cst_5 = arith.constant dense<0.000000e+00> : vector<32xf32>
    %7 = vector.multi_reduction <add>, %6, %cst_5 [1] : vector<32x16xf32> to vector<32xf32>
    %8 = vector.shape_cast %7 : vector<32xf32> to vector<32x1xf32>
    %cst_6 = arith.constant 1.600000e+01 : f32
    %9 = vector.broadcast %cst_6 : f32 to vector<32x1xf32>
    %10 = arith.divf %8, %9 : vector<32x1xf32>
    %11 = vector.broadcast %10 : vector<32x1xf32> to vector<32x16xf32>
    %12 = arith.subf %6, %11 : vector<32x16xf32>
    %13 = arith.mulf %12, %12 : vector<32x16xf32>
    %cst_7 = arith.constant dense<0.000000e+00> : vector<32xf32>
    %14 = vector.multi_reduction <add>, %13, %cst_7 [1] : vector<32x16xf32> to vector<32xf32>
    %15 = vector.shape_cast %14 : vector<32xf32> to vector<32x1xf32>
    %cst_8 = arith.constant 1.600000e+01 : f32
    %16 = vector.broadcast %cst_8 : f32 to vector<32x1xf32>
    %17 = arith.divf %15, %16 : vector<32x1xf32>
    %18 = vector.broadcast %10 : vector<32x1xf32> to vector<32x16xf32>
    %19 = arith.subf %6, %18 : vector<32x16xf32>
    %cst_9 = arith.constant 9.99999997E-7 : f32
    %20 = vector.broadcast %cst_9 : f32 to vector<32x1xf32>
    %21 = arith.addf %17, %20 : vector<32x1xf32>
    %22 = math.rsqrt %21 : vector<32x1xf32>
    %23 = vector.broadcast %22 : vector<32x1xf32> to vector<32x16xf32>
    %24 = arith.mulf %19, %23 : vector<32x16xf32>
    %c0_10 = arith.constant 0 : index
    %c0_11 = arith.constant 0 : index
    %25 = vector.load %arg4[%c0_10, %c0_11] : memref<1x16xf32, #tpu.memory_space<vmem>>, vector<1x16xf32>
    %26 = vector.broadcast %25 : vector<1x16xf32> to vector<32x16xf32>
    %27 = arith.mulf %24, %26 : vector<32x16xf32>
    %c0_12 = arith.constant 0 : index
    %c0_13 = arith.constant 0 : index
    %28 = vector.load %arg5[%c0_12, %c0_13] : memref<1x16xf32, #tpu.memory_space<vmem>>, vector<1x16xf32>
    %29 = vector.broadcast %28 : vector<1x16xf32> to vector<32x16xf32>
    %30 = arith.addf %27, %29 : vector<32x16xf32>
    %c0_14 = arith.constant 0 : index
    %c0_15 = arith.constant 0 : index
    %31 = vector.load %arg6[%c0_14, %c0_15] : memref<32x16xf32, #tpu.memory_space<vmem>>, vector<32x16xf32>
    tpu.vector_store %arg6[%c0_14, %c0_15], %30 {strides = array<i32>} : memref<32x16xf32, #tpu.memory_space<vmem>>, vector<32x16xf32>,
    return
  }
  func.func @transform_0(%arg0: i32) -> (i32, i32) {
    %c0_i32 = arith.constant 0 : i32
    %c0_i32_0 = arith.constant 0 : i32
    return %arg0, %c0_i32 : i32, i32
  }
  func.func @transform_1(%arg0: i32) -> (i32, i32) {
    %c0_i32 = arith.constant 0 : i32
    %c0_i32_0 = arith.constant 0 : i32
    %c0_i32_1 = arith.constant 0 : i32
    return %c0_i32, %c0_i32_0 : i32, i32
  }
  func.func @transform_2(%arg0: i32) -> (i32, i32) {
    %c0_i32 = arith.constant 0 : i32
    %c0_i32_0 = arith.constant 0 : i32
    %c0_i32_1 = arith.constant 0 : i32
    return %c0_i32, %c0_i32_0 : i32, i32
  }
  func.func @transform_3(%arg0: i32) -> (i32, i32) {
    %c0_i32 = arith.constant 0 : i32
    %c0_i32_0 = arith.constant 0 : i32
    %c0_i32_1 = arith.constant 0 : i32
    return %c0_i32, %c0_i32_0 : i32, i32
  }
  func.func @transform_4(%arg0: i32) -> (i32, i32) {
    %c0_i32 = arith.constant 0 : i32
    %c0_i32_0 = arith.constant 0 : i32
    %c0_i32_1 = arith.constant 0 : i32
    return %c0_i32, %c0_i32_0 : i32, i32
  }
  func.func @transform_5(%arg0: i32) -> (i32, i32) {
    %c0_i32 = arith.constant 0 : i32
    %c0_i32_0 = arith.constant 0 : i32
    return %arg0, %c0_i32 : i32, i32
  }
}

</mosaic_0001>

<bundles_post_ra>
// kernel: _lambda_.24
= control target key start
LH: loop header
LB: loop body
LE: loop exit
PB: predicated region body
PF: predicated region fallthrough
CT: control target
= control target key end

     0   :  { %vm49_vm0 = vcmask 392192   ;;  %vm75_vm1 = vcmask 261120   ;;  %s161_s1 = inlined_call_operand.vmem [shape: bf16[48,32], index: 1, kind: input, shape index: {}]   ;;  %s162_s2 = inlined_call_operand.vmem [shape: f32[1,32], index: 2, kind: input, shape index: {}]   ;;  %s163_s0 = inlined_call_operand.vmem [shape: f32[32,48], index: 0, kind: input, shape index: {}]   ;;  %s164_s3 = inlined_call_operand.vmem [shape: f32[32,32], index: 3, kind: output, shape index: {}]  }
   0x1   :  { %v100_v0 = vld [vmem:[%s161_s1 + $0x10] sm:$0xff]  ;;  %v99_v1 = vld [vmem:[%s161_s1 + $0x8] sm:$0xff]  ;;  %v98_v2 = vld [vmem:[%s161_s1] sm:$0xff] }
   0x2   :  { %61 = vmatpush.bf16.msra.mxu0 %v100_v0  ;;  %101 = vmatpush.bf16.msra.mxu1 %v100_v0  ;;  %v15_v3 = vld [vmem:[%s163_s0] sm:$0xff]  ;;  %v16_v4 = vld [vmem:[%s163_s0 + $0x8] sm:$0xff]  ;;  %v17_v5 = vld [vmem:[%s163_s0 + $0x10] sm:$0xff] }
   0x3   :  { %v18_v6 = vld [vmem:[%s163_s0 + $0x18] sm:$0xff]  ;;  %v19_v7 = vpack.c.bf16 %v16_v4, %v15_v3  ;;  %v104_v9 = vld [vmem:[%s162_s2] ss:$0 sm:$0xff] }
   0x4   :  { %v20_v8 = vpack.c.bf16 %v18_v6, %v17_v5 }
   0x6   :  { %62 = vmatpush.bf16.msra.mxu0 %v99_v1  ;;  %102 = vmatpush.bf16.msra.mxu1 %v99_v1 }
   0xa   :  { %63 = vmatpush.bf16.msra.mxu0 %v98_v2  ;;  %103 = vmatpush.bf16.msra.mxu1 %v98_v2 }
   0xd   :  { %96 = vmatmul.msk.bf16.vlgmr.msra.gmra.mxu0 %vm49_vm0, %v19_v7  ;;  %97 = vmatmul.msk.bf16.vlgmr.msra.gmra.mxu1 %vm49_vm0, %v20_v8 }
  0x8a   :  { %v65_v10 = vpop.f32.mrf.mxu0  ;;  %v70_v11 = vpop.f32.mrf.mxu1 }
  0x8b   :  { %v66_v12 = vadd.f32 %v104_v9, %v65_v10  ;;  %v71_v13 = vadd.f32 %v104_v9, %v70_v11 }
  0x8d   :  { %76 = vst.msk [vmem:[%s164_s3] sm:$0xff] %vm75_vm1, %v66_v12 }
  0x8e   :  { %78 = vst.msk [vmem:[%s164_s3 + $0x10] sm:$0xff] %vm75_vm1, %v71_v13 }
  0x92   :  { %v67_v14 = vpop.f32.mrf.mxu0  ;;  %v72_v15 = vpop.f32.mrf.mxu1 }
  0x93   :  { %v68_v16 = vadd.f32 %v104_v9, %v67_v14  ;;  %v73_v17 = vadd.f32 %v104_v9, %v72_v15 }
  0x95   :  { %77 = vst.msk [vmem:[%s164_s3 + $0x8] sm:$0xff] %vm75_vm1, %v68_v16 }
  0x96   :  { %79 = vst.msk [vmem:[%s164_s3 + $0x18] sm:$0xff] %vm75_vm1, %v73_v17 }

// kernel: _lambda_.25
= control target key start
LH: loop header
LB: loop body
LE: loop exit
PB: predicated region body
PF: predicated region fallthrough
CT: control target
= control target key end

     0   :  { %vm25_vm0 = vcmask 261120   ;;  %v221_v8 = vmov 32.0   ;;  %vm184_vm14 = vcmask 785408   ;;  %s321_s0 = inlined_call_operand.vmem [shape: f32[32,32], index: 0, kind: input, shape index: {}]   ;;  %s322_s3 = inlined_call_operand.vmem [shape: f32[1,32], index: 3, kind: input, shape index: {}]   ;;  %s323_s4 = inlined_call_operand.vmem [shape: f32[1,32], index: 4, kind: input, shape index: {}]   ;;  %s324_s2 = inlined_call_operand.vmem [shape: f32[1,96], index: 2, kind: input, shape index: {}]   ;;  %s325_s1 = inlined_call_operand.vmem [shape: bf16[32,96], index: 1, kind: input, shape index: {}]   ;;  %s326_s5 = inlined_call_operand.vmem [shape: f32[32,96], index: 5, kind: output, shape index: {}]  }
   0x1   :  { %v23_v0 = vld [vmem:[%s321_s0 + $0x10] sm:$0xff]  ;;  %v21_v1 = vld [vmem:[%s321_s0] sm:$0xff]  ;;  %v24_v4 = vld [vmem:[%s321_s0 + $0x18] sm:$0xff]  ;;  %211 = vrcp.f32 %v221_v8 }
   0x2   :  { %v32_v2 = vsel %vm25_vm0, %v23_v0, 0.0  ;;  %v26_v3 = vsel %vm25_vm0, %v21_v1, 0.0  ;;  %v22_v5 = vld [vmem:[%s321_s0 + $0x8] sm:$0xff]  ;;  %v35_v6 = vsel %vm25_vm0, %v24_v4, 0.0  ;;  %v203_v40 = vld [vmem:[%s325_s1] sm:$0xff] }
   0x3   :  { %33 = vadd.xlane.f32.xlu1 %v32_v2  ;;  %27 = vadd.xlane.f32.xlu0 %v26_v3  ;;  %v29_v7 = vsel %vm25_vm0, %v22_v5, 0.0  ;;  %v204_v35 = vld [vmem:[%s325_s1 + $0x8] sm:$0xff] }
   0x4   :  { %171 = vmatpush.bf16.msra.mxu0 %v204_v35  ;;  %205 = vmatpush.bf16.msra.mxu1 %v204_v35 }
   0x7   :  { %v212_v9 = vpop.eup %211 }
   0x8   :  { %v39_v10 = vmul.f32 32.0, %v212_v9  ;;  %vm43_vm1 = vweird.f32 %v212_v9  ;;  %172 = vmatpush.bf16.msra.mxu0 %v203_v40  ;;  %206 = vmatpush.bf16.msra.mxu1 %v203_v40 }
   0xa   :  { %v40_v11 = vsub.f32 1.0, %v39_v10  ;;  %v208_v10 = vld [vmem:[%s322_s3] ss:$0 sm:$0xff] }
   0xb   :  { %36 = vadd.xlane.f32.xlu1 %v35_v6  ;;  %30 = vadd.xlane.f32.xlu0 %v29_v7 }
   0xc   :  { %v41_v12 = vmul.f32 %v212_v9, %v40_v11 }
   0xe   :  { %v42_v13 = vadd.f32 %v212_v9, %v41_v12 }
  0x10   :  { %v44_v14 = vsel %vm43_vm1, %v212_v9, %v42_v13 }
  0x76   :  { %v34_v15 = vpop.xlane.xlu1 %33  ;;  %v28_v16 = vpop.xlane.xlu0 %27 }
  0x77   :  { %v47_v17 = vmul.f32 %v44_v14, %v34_v15  ;;  %v45_v18 = vmul.f32 %v44_v14, %v28_v16 }
  0x79   :  { %v268_v19 = vsub.f32 %v23_v0, %v47_v17  ;;  %v270_v20 = vsub.f32 %v21_v1, %v45_v18  ;;  %v209_v17 = vld [vmem:[%s323_s4] ss:$0 sm:$0xff] }
  0x7b   :  { %v55_v21 = vmul.f32 %v268_v19, %v268_v19  ;;  %v53_v22 = vmul.f32 %v270_v20, %v270_v20 }
  0x7d   :  { %v63_v23 = vsel %vm25_vm0, %v55_v21, 0.0  ;;  %v57_v24 = vsel %vm25_vm0, %v53_v22, 0.0 }
  0x7e   :  { %v37_v25 = vpop.xlane.xlu1 %36  ;;  %64 = vadd.xlane.f32.xlu0 %v63_v23  ;;  %58 = vadd.xlane.f32.xlu2 %v57_v24  ;;  %v31_v26 = vpop.xlane.xlu0 %30 }
  0x7f   :  { %v48_v27 = vmul.f32 %v44_v14, %v37_v25  ;;  %v46_v28 = vmul.f32 %v44_v14, %v31_v26 }
  0x81   :  { %v278_v29 = vsub.f32 %v24_v4, %v48_v27  ;;  %v280_v30 = vsub.f32 %v22_v5, %v46_v28 }
  0x83   :  { %v56_v31 = vmul.f32 %v278_v29, %v278_v29  ;;  %v54_v32 = vmul.f32 %v280_v30, %v280_v30 }
  0x85   :  { %v66_v33 = vsel %vm25_vm0, %v56_v31, 0.0  ;;  %v60_v34 = vsel %vm25_vm0, %v54_v32, 0.0 }
  0x86   :  { %67 = vadd.xlane.f32.xlu1 %v66_v33  ;;  %61 = vadd.xlane.f32.xlu2 %v60_v34 }
  0xf1   :  { %v59_v36 = vpop.xlane.xlu2 %58  ;;  %v65_v37 = vpop.xlane.xlu0 %64 }
  0xf2   :  { %v69_v38 = vmul.f32 %v59_v36, %v44_v14  ;;  %v71_v39 = vmul.f32 %v65_v37, %v44_v14 }
  0xf4   :  { %v73_v41 = vadd.f32 1e-06, %v69_v38  ;;  %v75_v42 = vadd.f32 1e-06, %v71_v39 }
  0xf6   :  { %213 = vrsqrt.f32 %v73_v41  ;;  %vm103_vm4 = vweird.f32 %v75_v42  ;;  %vm83_vm5 = vweird.f32 %v73_v41 }
  0xf7   :  { %215 = vrsqrt.f32 %v75_v42 }
  0xf9   :  { %v68_v43 = vpop.xlane.xlu1 %67  ;;  %v62_v44 = vpop.xlane.xlu2 %61 }
  0xfa   :  { %v72_v45 = vmul.f32 %v68_v43, %v44_v14  ;;  %v70_v46 = vmul.f32 %v62_v44, %v44_v14 }
  0xfc   :  { %v214_v47 = vpop.eup %213  ;;  %v76_v48 = vadd.f32 1e-06, %v72_v45  ;;  %v74_v49 = vadd.f32 1e-06, %v70_v46 }
  0xfd   :  { %v216_v50 = vpop.eup %215  ;;  %v78_v51 = vmul.f32 %v214_v47, %v73_v41  ;;  %vm84_vm3 = vweird.f32 %v214_v47 }
  0xfe   :  { %v98_v52 = vmul.f32 %v216_v50, %v75_v42  ;;  %217 = vrsqrt.f32 %v76_v48  ;;  %vm104_vm2 = vweird.f32 %v216_v50  ;;  %vm85_vm7 = vmor %vm83_vm5, %vm84_vm3  ;;  %vm113_vm10 = vweird.f32 %v76_v48 }
  0xff   :  { %v79_v53 = vmul.f32 %v214_v47, %v78_v51  ;;  %219 = vrsqrt.f32 %v74_v49  ;;  %vm105_vm6 = vmor %vm103_vm4, %vm104_vm2  ;;  %vm93_vm12 = vweird.f32 %v74_v49 }
 0x100   :  { %v99_v54 = vmul.f32 %v216_v50, %v98_v52 }
 0x101   :  { %v80_v55 = vmul.f32 0.5, %v79_v53 }
 0x102   :  { %v100_v56 = vmul.f32 0.5, %v99_v54 }
 0x103   :  { %v81_v57 = vsub.f32 1.5, %v80_v55 }
 0x104   :  { %v218_v58 = vpop.eup %217  ;;  %v101_v59 = vsub.f32 1.5, %v100_v56 }
 0x105   :  { %v220_v60 = vpop.eup %219  ;;  %v108_v61 = vmul.f32 %v218_v58, %v76_v48  ;;  %v82_v62 = vmul.f32 %v214_v47, %v81_v57  ;;  %vm114_vm8 = vweird.f32 %v218_v58 }
 0x106   :  { %v102_v63 = vmul.f32 %v216_v50, %v101_v59  ;;  %v88_v0 = vmul.f32 %v220_v60, %v74_v49  ;;  %vm94_vm9 = vweird.f32 %v220_v60  ;;  %vm115_vm11 = vmor %vm113_vm10, %vm114_vm8 }
 0x107   :  { %v109_v1 = vmul.f32 %v218_v58, %v108_v61  ;;  %v86_v5 = vsel %vm85_vm7, %v214_v47, %v82_v62  ;;  %vm95_vm13 = vmor %vm93_vm12, %vm94_vm9 }
 0x108   :  { %v89_v2 = vmul.f32 %v220_v60, %v88_v0  ;;  %v106_v3 = vsel %vm105_vm6, %v216_v50, %v102_v63  ;;  %v117_v11 = vmul.f32 %v86_v5, %v270_v20 }
 0x109   :  { %v110_v4 = vmul.f32 0.5, %v109_v1  ;;  %v119_v8 = vmul.f32 %v106_v3, %v268_v19 }
 0x10a   :  { %v90_v6 = vmul.f32 0.5, %v89_v2  ;;  %v125_v21 = vmul.f32 %v208_v10, %v117_v11 }
 0x10b   :  { %v111_v7 = vsub.f32 1.5, %v110_v4  ;;  %v127_v18 = vmul.f32 %v208_v10, %v119_v8 }
 0x10c   :  { %v91_v9 = vsub.f32 1.5, %v90_v6  ;;  %v133_v25 = vadd.f32 %v209_v17, %v125_v21 }
 0x10d   :  { %v112_v12 = vmul.f32 %v218_v58, %v111_v7  ;;  %v135_v23 = vadd.f32 %v209_v17, %v127_v18 }
 0x10e   :  { %v92_v13 = vmul.f32 %v220_v60, %v91_v9 }
 0x10f   :  { %v116_v14 = vsel %vm115_vm11, %v218_v58, %v112_v12 }
 0x110   :  { %v120_v15 = vmul.f32 %v116_v14, %v278_v29  ;;  %v96_v16 = vsel %vm95_vm13, %v220_v60, %v92_v13  ;;  %v210_v29 = vld [vmem:[%s324_s2] ss:$0 sm:$0xff] }
 0x111   :  { %v118_v19 = vmul.f32 %v96_v16, %v280_v30 }
 0x112   :  { %v128_v22 = vmul.f32 %v208_v10, %v120_v15 }
 0x113   :  { %v126_v20 = vmul.f32 %v208_v10, %v118_v19 }
 0x114   :  { %v136_v24 = vadd.f32 %v209_v17, %v128_v22 }
 0x115   :  { %v134_v26 = vadd.f32 %v209_v17, %v126_v20 }
 0x116   :  { %v138_v27 = vpack.c.bf16 %v136_v24, %v135_v23 }
 0x117   :  { %v137_v28 = vpack.c.bf16 %v134_v26, %v133_v25 }
 0x118   :  { %202 = vmatmul.msk.bf16.vlgmr.msra.gmra.mxu1 %vm25_vm0, %v138_v27 }
 0x119   :  { %201 = vmatmul.msk.bf16.vlgmr.msra.gmra.mxu0 %vm25_vm0, %v137_v28 }
 0x195   :  { %v179_v31 = vpop.f32.mrf.mxu1 }
 0x196   :  { %v174_v30 = vpop.f32.mrf.mxu0  ;;  %v180_v32 = vadd.f32 %v210_v29, %v179_v31 }
 0x197   :  { %v175_v33 = vadd.f32 %v210_v29, %v174_v30 }
 0x198   :  { %187 = vst.msk [vmem:[%s326_s5 + $0x10] sm:$0xff] %vm184_vm14, %v180_v32 }
 0x199   :  { %185 = vst.msk [vmem:[%s326_s5] sm:$0xff] %vm184_vm14, %v175_v33 }
 0x19d   :  { %v181_v34 = vpop.f32.mrf.mxu1 }
 0x19e   :  { %v176_v35 = vpop.f32.mrf.mxu0  ;;  %v182_v36 = vadd.f32 %v210_v29, %v181_v34 }
 0x19f   :  { %v177_v37 = vadd.f32 %v210_v29, %v176_v35 }
 0x1a0   :  { %188 = vst.msk [vmem:[%s326_s5 + $0x18] sm:$0xff] %vm184_vm14, %v182_v36 }
 0x1a1   :  { %186 = vst.msk [vmem:[%s326_s5 + $0x8] sm:$0xff] %vm184_vm14, %v177_v37 }

// kernel: _lambda_.27
= control target key start
LH: loop header
LB: loop body
LE: loop exit
PB: predicated region body
PF: predicated region fallthrough
CT: control target
= control target key end

     0   :  { %vm44_vm0 = vcmask 261120   ;;  %s177_s1 = inlined_call_operand.vmem [shape: bf16[32,32], index: 1, kind: input, shape index: {}]   ;;  %s178_s0 = inlined_call_operand.vmem [shape: f32[32,32], index: 0, kind: input, shape index: {}]   ;;  %s179_s2 = inlined_call_operand.vmem [shape: f32[1,32], index: 2, kind: input, shape index: {}]   ;;  %s180_s3 = inlined_call_operand.vmem [shape: f32[32,32], index: 3, kind: input, shape index: {}, may-alias: {3,4}]   ;;  %s181_s4 = inlined_call_operand.vmem [shape: f32[32,32], index: 4, kind: output, shape index: {}, may-alias: {3,4}]  }
   0x1   :  { %v97_v0 = vld [vmem:[%s177_s1 + $0x8] sm:$0xff]  ;;  %v96_v1 = vld [vmem:[%s177_s1] sm:$0xff]  ;;  %v20_v4 = vld [vmem:[%s178_s0 + $0x10] sm:$0xff] }
   0x2   :  { %v18_v2 = vld [vmem:[%s178_s0] sm:$0xff]  ;;  %v19_v3 = vld [vmem:[%s178_s0 + $0x8] sm:$0xff]  ;;  %57 = vmatpush.bf16.msra.mxu0 %v97_v0  ;;  %98 = vmatpush.bf16.msra.mxu1 %v97_v0  ;;  %v21_v5 = vld [vmem:[%s178_s0 + $0x18] sm:$0xff] }
   0x3   :  { %v22_v6 = vpack.c.bf16 %v19_v3, %v18_v2  ;;  %v23_v7 = vpack.c.bf16 %v21_v5, %v20_v4  ;;  %v100_v8 = vld [vmem:[%s179_s2] ss:$0 sm:$0xff]  ;;  %v72_v12 = vld [vmem:[%s180_s3 + $0x10] sm:$0xff] }
   0x4   :  { %v70_v10 = vld [vmem:[%s180_s3] sm:$0xff] }
   0x6   :  { %58 = vmatpush.bf16.msra.mxu0 %v96_v1  ;;  %99 = vmatpush.bf16.msra.mxu1 %v96_v1 }
   0x9   :  { %94 = vmatmul.msk.bf16.vlgmr.msra.gmra.mxu0 %vm44_vm0, %v22_v6  ;;  %95 = vmatmul.msk.bf16.vlgmr.msra.gmra.mxu1 %vm44_vm0, %v23_v7 }
  0x86   :  { %v60_v9 = vpop.f32.mrf.mxu0  ;;  %v65_v11 = vpop.f32.mrf.mxu1 }
  0x87   :  { %v61_v13 = vadd.f32 %v100_v8, %v60_v9  ;;  %v66_v14 = vadd.f32 %v100_v8, %v65_v11 }
  0x89   :  { %v74_v15 = vadd.f32 %v70_v10, %v61_v13  ;;  %v76_v16 = vadd.f32 %v72_v12, %v66_v14 }
  0x8b   :  { %78 = vst.msk [vmem:[%s181_s4] sm:$0xff] %vm44_vm0, %v74_v15 }
  0x8c   :  { %80 = vst.msk [vmem:[%s181_s4 + $0x10] sm:$0xff] %vm44_vm0, %v76_v16 }
  0x8e   :  { %v62_v17 = vpop.f32.mrf.mxu0  ;;  %v67_v19 = vpop.f32.mrf.mxu1 }
  0x8f   :  { %v63_v21 = vadd.f32 %v100_v8, %v62_v17  ;;  %v68_v22 = vadd.f32 %v100_v8, %v67_v19 }
  0x93   :  { %v71_v18 = vld [vmem:[%s180_s3 + $0x8] sm:$0xff]  ;;  %v73_v20 = vld [vmem:[%s180_s3 + $0x18] sm:$0xff] }
  0x94   :  { %v75_v23 = vadd.f32 %v71_v18, %v63_v21  ;;  %v77_v24 = vadd.f32 %v73_v20, %v68_v22 }
  0x96   :  { %79 = vst.msk [vmem:[%s181_s4 + $0x8] sm:$0xff] %vm44_vm0, %v75_v23 }
  0x97   :  { %81 = vst.msk [vmem:[%s181_s4 + $0x18] sm:$0xff] %vm44_vm0, %v77_v24 }

// kernel: _lambda_.26
= control target key start
LH: loop header
LB: loop body
LE: loop exit
PB: predicated region body
PF: predicated region fallthrough
CT: control target
= control target key end

     0   :  { %s846_s24 = smov 0   ;;  %s848_s25 = smov 0   ;;  %s917_s0 = inlined_call_operand.vmem [shape: f32[32,4,8], index: 0, kind: input, shape index: {}]   ;;  %s918_s1 = inlined_call_operand.vmem [shape: f32[32,4,8], index: 1, kind: input, shape index: {}]   ;;  %s919_s2 = inlined_call_operand.vmem [shape: f32[32,4,8], index: 2, kind: input, shape index: {}]   ;;  %s920_s3 = inlined_call_operand.vmem [shape: f32[32,4,2], index: 3, kind: input, shape index: {}]   ;;  %s921_s4 = inlined_call_operand.vmem [shape: f32[32,4,2], index: 4, kind: input, shape index: {}]   ;;  %s922_s5 = inlined_call_operand.vmem [shape: f32[2,4], index: 5, kind: input, shape index: {}]   ;;  %s923_s6 = inlined_call_operand.vmem [shape: f32[2,4], index: 6, kind: input, shape index: {}]   ;;  %s924_s7 = inlined_call_operand.vmem [shape: f32[32,4,8], index: 7, kind: output, shape index: {}]  }
   0x1   :  { %s850_s26 = smov 0  }
   0x2 LB: > { %s29_s27 = sadd.s32 1, %s797_s25  ;;  %p728_p0 = scmp.ge.s32.totalorder %s801_s26, 1  ;;  %s801_s26 = sphi %s850_s26, %s17_s26   ;;  %s797_s25 = sphi %s848_s25, %s926_s25   ;;  %s793_s24 = sphi %s846_s24, %s925_s24  }
   0x3   : > { %p31_p1 = scmp.ge.s32.totalorder %s29_s27, 32  ;;  %p312_p2 = scmp.lt.s32.totalorder %s801_s26, 33 }
   0x5   : > { %s928_s27 = smov (%p31_p1, %s29_s27), 0  ;;  %p313_p3 = pnand %p728_p0, %p312_p2 }
   0x6   : > { %p372_p4 = scmp.lt.s32.totalorder (!%p313_p3), %s793_s24, 31 }
   0x7   : > { %316 = sbr.rel (%p313_p3) target bundleno = 629 (0x275), region = 48 }
   0xc   : > { %v448_v0 = vld [vmem:[%s922_s5] sm:$0x3]  ;;  %vm455_vm0 = vcmask 1041408   ;;  %s930_s24 = smov (!%p372_p4, %s793_s24), 31  ;;  %vm451_vm1 = vcmask 15360   ;;  %vm426_vm2 = vcmask 64512  }
   0xd   : > { %738 = vmatpush.msk.msra.mxu2 %vm455_vm0, %v448_v0  ;;  %v450_v1 = vld [vmem:[%s923_s6] sm:$0x3]  ;;  %s872_s9 = sshll.u32 %s930_s24, 2  ;;  %vm415_vm3 = vcmask 3072   ;;  %v803_v9 = vmov -inf   ;;  %vm507_vm4 = vcmask 27648  }
   0xe   : > { %736 = vmatpush.msk.msra.mxu1 %vm455_vm0, %v450_v1  ;;  %s382_s12 = scalar_lea.vmem %s918_s1, %s872_s9  ;;  %s393_s15 = scalar_lea.vmem %s920_s3, %s872_s9  ;;  %416 = vst.msk [vmem:[#allocation2] sm:$0xf] %vm415_vm3, %v803_v9  ;;  %v804_v18 = vmov 0   ;;  %v805_v19 = vmov 0.0   ;;  %vm539_vm5 = vcmask 31744   ;;  %vm418_vm6 = vcmask 60416  }
   0xf   : > { %v422_v2 = vld [vmem:[%s382_s12] sm:$0xf]  ;;  %s397_s18 = scalar_lea.vmem %s921_s4, %s872_s9  ;;  %s375_s21 = scalar_lea.vmem %s917_s0, %s872_s9  ;;  %770 = vset.pattern.permute.xlu0 %v804_v18  ;;  %771 = vset.pattern.permute.xlu1 %v804_v18  ;;  %417 = vst.msk [vmem:[#allocation3] sm:$0xf] %vm415_vm3, %v805_v19 }
  0x10   : > { %v447_v3 = vld [vmem:[%s393_s15] sm:$0xf]  ;;  %v423_v4 = vpack.c.bf16 %v422_v2, %v422_v2  ;;  %772 = vset.pattern.permute.xlu2 %v804_v18  ;;  %s389_s24 = scalar_lea.vmem %s919_s2, %s872_s9  ;;  %419 = vst.msk [vmem:[#allocation4] sm:$0xf] %vm418_vm6, %v805_v19  ;;  %s409_s30 = scalar_lea.vmem %s924_s7, %s872_s9 }
  0x11   : > { %739 = vmatmul.msk.f32.vlgmr.msra.gmra.mxu2 %vm451_vm1, %v447_v3  ;;  %v449_v5 = vld [vmem:[%s397_s18] sm:$0xf] }
  0x12   : > { %737 = vmatmul.msk.f32.vlgmr.msra.gmra.mxu1 %vm451_vm1, %v449_v5  ;;  %v431_v6 = vsel %vm426_vm2, %v423_v4, 0  ;;  %v420_v7 = vld [vmem:[%s375_s21] sm:$0xf] }
  0x13   : > { %440 = vmatpush.bf16.xpose.msra.mxu0 %v431_v6  ;;  %v421_v8 = vpack.c.bf16 %v420_v7, %v420_v7  ;;  %v424_v24 = vld [vmem:[%s389_s24] sm:$0xf] }
  0x14   : > { %v425_v25 = vpack.c.bf16 %v424_v24, %v424_v24 }
  0x15   : > { %v506_v20 = vld [vmem:[#allocation2] sm:$0xf] }
  0x16   : > { %v544_v26 = vsel %vm455_vm0, %v425_v25, 0  ;;  %v523_v35 = vld [vmem:[#allocation3] sm:$0xf] }
  0x17   : > { %553 = vmatpush.bf16.msra.mxu3 %v544_v26  ;;  %v531_v42 = vld [vmem:[#allocation4] sm:$0xf] }
  0x1a   : > { %735 = vmatmul.msk.bf16.vlgmr.msra.gmra.mxu0 %vm426_vm2, %v421_v8 }
  0x8f   : > { %v476_v10 = vpop.f32.mrf.mxu1 }
  0x94   : > { %v502_v11 = vpop.f32.mrf.mxu2 }
  0x95   : > { %v503_v12 = vadd.f32 %v502_v11, %v476_v10 }
  0x97   : > { %v442_v13 = vpop.f32.mrf.mxu0 }
  0x98   : > { %v446_v14 = vmul.f32 0.35355338, %v442_v13 }
  0x9a   : > { %v505_v15 = vadd.f32 %v503_v12, %v446_v14 }
  0x9c   : > { %v508_v16 = vsel %vm507_vm4, %v505_v15, -inf }
  0x9d   : > { %509 = vmax.xlane.f32.xlu0 %v508_v16 }
  0x9f   : > { %v444_v17 = vpop.f32.mrf.mxu0 }
 0x110   : > { %v510_v21 = vpop.xlane.xlu0 %509 }
 0x111   : > { %v511_v22 = vmax.f32 %v506_v20, %v510_v21 }
 0x113   : > { %v512_v23 = vsub.f32 %v506_v20, %v511_v22  ;;  %562 = vst.msk [vmem:[#allocation2] sm:$0xf] %vm415_vm3, %v511_v22  ;;  %517 = vperm.xlu0 %770, %v511_v22  }
 0x115   : > { %v513_v33 = vmul.f32 1.442695, %v512_v23 }
 0x185   : > { %v518_v27 = vpop.permute.xlu0 %517 }
 0x186   : > { %v520_v28 = vsub.f32 %v505_v15, %v518_v27 }
 0x188   : > { %v521_v29 = vmul.f32 1.442695, %v520_v28 }
 0x18a   : > { %773 = vpow2.f32 %v521_v29 }
 0x18b   : > { %775 = vpow2.f32 %v513_v33 }
 0x190   : > { %v774_v30 = vpop.eup %773 }
 0x191   : > { %v525_v31 = vsel %vm507_vm4, %v774_v30, 0.0  ;;  %v538_v32 = vpack.c.bf16 %v774_v30, %v774_v30  ;;  %v776_v34 = vpop.eup %775 }
 0x192   : > { %526 = vadd.xlane.f32.xlu1 %v525_v31  ;;  %v524_v36 = vmul.f32 %v776_v34, %v523_v35 }
 0x193   : > { %740 = vmatmul.msk.bf16.vlgmr.msra.gmra.mxu3 %vm539_vm5, %v538_v32 }
 0x1ab   : > { %534 = vperm.xlu1 %771, %v776_v34  }
 0x205   : > { %v527_v37 = vpop.xlane.xlu1 %526 }
 0x206   : > { %v528_v38 = vadd.f32 %v527_v37, %v524_v36 }
 0x208   : > { %530 = vst.msk [vmem:[#allocation3] sm:$0xf] %vm415_vm3, %v528_v38 }
 0x20f   : > { %v567_v39 = vld [vmem:[#allocation3] sm:$0xf] }
 0x210   : > { %777 = vrcp.f32 %v567_v39 }
 0x216   : > { %v778_v40 = vpop.eup %777  ;;  %v555_v41 = vpop.f32.mrf.mxu3 }
 0x217   : > { %571 = vperm.xlu2 %772, %v778_v40  }
 0x21d   : > { %v535_v43 = vpop.permute.xlu1 %534 }
 0x21e   : > { %v537_v44 = vmul.f32 %v535_v43, %v531_v42  ;;  %v557_v45 = vpop.f32.mrf.mxu3 }
 0x220   : > { %v559_v46 = vadd.f32 %v555_v41, %v537_v44 }
 0x222   : > { %561 = vst.msk [vmem:[#allocation4] sm:$0xf] %vm418_vm6, %v559_v46 }
 0x229   : > { %v566_v47 = vld [vmem:[#allocation4] sm:$0xf] }
 0x271   : > { %v572_v48 = vpop.permute.xlu2 %571 }
 0x272   : > { %v574_v49 = vmul.f32 %v572_v48, %v566_v47 }
 0x274   : > { %575 = vst.msk [vmem:[%s409_s30] sm:$0xf] %vm418_vm6, %v574_v49 }
 0x275 PF: > { %s17_s26 = sadd.s32 1, %s801_s26   ;;  %s925_s24 = smov %s797_s25 }
 0x276   : > { %p14_p5 = scmp.ge.s32.totalorder %s17_s26, 34   ;;  %s926_s25 = smov %s928_s27 }
 0x278   :  { %16 = sbr.rel (!%p14_p5) target bundleno = 2 (0x2), region = 104 }

// kernel: _lambda_.29
= control target key start
LH: loop header
LB: loop body
LE: loop exit
PB: predicated region body
PF: predicated region fallthrough
CT: control target
= control target key end

     0   :  { %vm118_vm0 = vcmask 261120   ;;  %s264_s1 = inlined_call_operand.vmem [shape: bf16[128,32], index: 1, kind: input, shape index: {}]   ;;  %s265_s2 = inlined_call_operand.vmem [shape: f32[1,32], index: 2, kind: input, shape index: {}]   ;;  %s266_s0 = inlined_call_operand.vmem [shape: f32[32,128], index: 0, kind: input, shape index: {}]   ;;  %s267_s3 = inlined_call_operand.vmem [shape: f32[32,32], index: 3, kind: input, shape index: {}, may-alias: {3,4}]   ;;  %s268_s4 = inlined_call_operand.vmem [shape: f32[32,32], index: 4, kind: output, shape index: {}, may-alias: {3,4}]  }
   0x1   :  { %v166_v0 = vld [vmem:[%s264_s1 + $0x38] sm:$0xff]  ;;  %v165_v1 = vld [vmem:[%s264_s1 + $0x30] sm:$0xff]  ;;  %v164_v2 = vld [vmem:[%s264_s1 + $0x28] sm:$0xff] }
   0x2   :  { %91 = vmatpush.bf16.msra.mxu0 %v166_v0  ;;  %167 = vmatpush.bf16.msra.mxu1 %v166_v0  ;;  %v163_v3 = vld [vmem:[%s264_s1 + $0x20] sm:$0xff]  ;;  %v162_v4 = vld [vmem:[%s264_s1 + $0x18] sm:$0xff]  ;;  %v161_v5 = vld [vmem:[%s264_s1 + $0x10] sm:$0xff] }
   0x3   :  { %v160_v6 = vld [vmem:[%s264_s1 + $0x8] sm:$0xff]  ;;  %v159_v7 = vld [vmem:[%s264_s1] sm:$0xff]  ;;  %v19_v10 = vld [vmem:[%s266_s0 + $0x10] sm:$0xff] }
   0x4   :  { %v17_v8 = vld [vmem:[%s266_s0] sm:$0xff]  ;;  %v18_v9 = vld [vmem:[%s266_s0 + $0x8] sm:$0xff]  ;;  %v20_v11 = vld [vmem:[%s266_s0 + $0x18] sm:$0xff] }
   0x5   :  { %v21_v12 = vpack.c.bf16 %v18_v9, %v17_v8  ;;  %v22_v13 = vpack.c.bf16 %v20_v11, %v19_v10  ;;  %v175_v14 = vld [vmem:[%s265_s2] ss:$0 sm:$0xff]  ;;  %v112_v18 = vld [vmem:[%s267_s3 + $0x10] sm:$0xff] }
   0x6   :  { %92 = vmatpush.bf16.msra.mxu0 %v165_v1  ;;  %168 = vmatpush.bf16.msra.mxu1 %v165_v1  ;;  %v110_v16 = vld [vmem:[%s267_s3] sm:$0xff] }
   0xa   :  { %93 = vmatpush.bf16.msra.mxu0 %v164_v2  ;;  %169 = vmatpush.bf16.msra.mxu1 %v164_v2 }
   0xe   :  { %94 = vmatpush.bf16.msra.mxu0 %v163_v3  ;;  %170 = vmatpush.bf16.msra.mxu1 %v163_v3 }
  0x12   :  { %95 = vmatpush.bf16.msra.mxu0 %v162_v4  ;;  %171 = vmatpush.bf16.msra.mxu1 %v162_v4 }
  0x16   :  { %96 = vmatpush.bf16.msra.mxu0 %v161_v5  ;;  %172 = vmatpush.bf16.msra.mxu1 %v161_v5 }
  0x1a   :  { %97 = vmatpush.bf16.msra.mxu0 %v160_v6  ;;  %173 = vmatpush.bf16.msra.mxu1 %v160_v6 }
  0x1e   :  { %98 = vmatpush.bf16.msra.mxu0 %v159_v7  ;;  %174 = vmatpush.bf16.msra.mxu1 %v159_v7 }
  0x21   :  { %99 = vmatmul.bf16.vlgmr.msra.gmra.mxu0 %v21_v12  ;;  %104 = vmatmul.bf16.vlgmr.msra.gmra.mxu1 %v22_v13 }
  0x9e   :  { %v100_v15 = vpop.f32.mrf.mxu0  ;;  %v105_v17 = vpop.f32.mrf.mxu1 }
  0x9f   :  { %v101_v19 = vadd.f32 %v175_v14, %v100_v15  ;;  %v106_v20 = vadd.f32 %v175_v14, %v105_v17 }
  0xa1   :  { %v114_v21 = vadd.f32 %v110_v16, %v101_v19  ;;  %v116_v22 = vadd.f32 %v112_v18, %v106_v20 }
  0xa3   :  { %119 = vst.msk [vmem:[%s268_s4] sm:$0xff] %vm118_vm0, %v114_v21 }
  0xa4   :  { %121 = vst.msk [vmem:[%s268_s4 + $0x10] sm:$0xff] %vm118_vm0, %v116_v22 }
  0xa6   :  { %v102_v23 = vpop.f32.mrf.mxu0  ;;  %v107_v25 = vpop.f32.mrf.mxu1 }
  0xa7   :  { %v103_v27 = vadd.f32 %v175_v14, %v102_v23  ;;  %v108_v28 = vadd.f32 %v175_v14, %v107_v25 }
  0xab   :  { %v111_v24 = vld [vmem:[%s267_s3 + $0x8] sm:$0xff]  ;;  %v113_v26 = vld [vmem:[%s267_s3 + $0x18] sm:$0xff] }
  0xac   :  { %v115_v29 = vadd.f32 %v111_v24, %v103_v27  ;;  %v117_v30 = vadd.f32 %v113_v26, %v108_v28 }
  0xae   :  { %120 = vst.msk [vmem:[%s268_s4 + $0x8] sm:$0xff] %vm118_vm0, %v115_v29 }
  0xaf   :  { %122 = vst.msk [vmem:[%s268_s4 + $0x18] sm:$0xff] %vm118_vm0, %v117_v30 }

// kernel: _lambda_.28
= control target key start
LH: loop header
LB: loop body
LE: loop exit
PB: predicated region body
PF: predicated region fallthrough
CT: control target
= control target key end

     0   :  { %vm25_vm0 = vcmask 261120   ;;  %v397_v8 = vmov 32.0   ;;  %s555_s0 = inlined_call_operand.vmem [shape: f32[32,32], index: 0, kind: input, shape index: {}]   ;;  %s556_s3 = inlined_call_operand.vmem [shape: f32[1,32], index: 3, kind: input, shape index: {}]   ;;  %s557_s4 = inlined_call_operand.vmem [shape: f32[1,32], index: 4, kind: input, shape index: {}]   ;;  %s558_s2 = inlined_call_operand.vmem [shape: f32[1,128], index: 2, kind: input, shape index: {}]   ;;  %s559_s1 = inlined_call_operand.vmem [shape: bf16[32,128], index: 1, kind: input, shape index: {}]   ;;  %s560_s5 = inlined_call_operand.vmem [shape: f32[32,128], index: 5, kind: output, shape index: {}]  }
   0x1   :  { %v23_v0 = vld [vmem:[%s555_s0 + $0x10] sm:$0xff]  ;;  %v21_v1 = vld [vmem:[%s555_s0] sm:$0xff]  ;;  %v24_v4 = vld [vmem:[%s555_s0 + $0x18] sm:$0xff]  ;;  %371 = vrcp.f32 %v397_v8 }
   0x2   :  { %v32_v2 = vsel %vm25_vm0, %v23_v0, 0.0  ;;  %v26_v3 = vsel %vm25_vm0, %v21_v1, 0.0  ;;  %v22_v5 = vld [vmem:[%s555_s0 + $0x8] sm:$0xff]  ;;  %v35_v6 = vsel %vm25_vm0, %v24_v4, 0.0  ;;  %v362_v40 = vld [vmem:[%s559_s1] sm:$0xff] }
   0x3   :  { %33 = vadd.xlane.f32.xlu1 %v32_v2  ;;  %27 = vadd.xlane.f32.xlu0 %v26_v3  ;;  %v29_v7 = vsel %vm25_vm0, %v22_v5, 0.0  ;;  %v363_v35 = vld [vmem:[%s559_s1 + $0x8] sm:$0xff] }
   0x4   :  { %171 = vmatpush.bf16.msra.mxu0 %v363_v35  ;;  %364 = vmatpush.bf16.msra.mxu1 %v363_v35 }
   0x7   :  { %v372_v9 = vpop.eup %371 }
   0x8   :  { %v39_v10 = vmul.f32 32.0, %v372_v9  ;;  %vm43_vm1 = vweird.f32 %v372_v9  ;;  %172 = vmatpush.bf16.msra.mxu0 %v362_v40  ;;  %365 = vmatpush.bf16.msra.mxu1 %v362_v40 }
   0xa   :  { %v40_v11 = vsub.f32 1.0, %v39_v10  ;;  %v368_v10 = vld [vmem:[%s556_s3] ss:$0 sm:$0xff] }
   0xb   :  { %36 = vadd.xlane.f32.xlu1 %v35_v6  ;;  %30 = vadd.xlane.f32.xlu0 %v29_v7 }
   0xc   :  { %v41_v12 = vmul.f32 %v372_v9, %v40_v11 }
   0xe   :  { %v42_v13 = vadd.f32 %v372_v9, %v41_v12 }
  0x10   :  { %v44_v14 = vsel %vm43_vm1, %v372_v9, %v42_v13 }
  0x76   :  { %v34_v15 = vpop.xlane.xlu1 %33  ;;  %v28_v16 = vpop.xlane.xlu0 %27 }
  0x77   :  { %v47_v17 = vmul.f32 %v44_v14, %v34_v15  ;;  %v45_v18 = vmul.f32 %v44_v14, %v28_v16 }
  0x79   :  { %v445_v19 = vsub.f32 %v23_v0, %v47_v17  ;;  %v447_v20 = vsub.f32 %v21_v1, %v45_v18  ;;  %v369_v17 = vld [vmem:[%s557_s4] ss:$0 sm:$0xff] }
  0x7b   :  { %v55_v21 = vmul.f32 %v445_v19, %v445_v19  ;;  %v53_v22 = vmul.f32 %v447_v20, %v447_v20 }
  0x7d   :  { %v63_v23 = vsel %vm25_vm0, %v55_v21, 0.0  ;;  %v57_v24 = vsel %vm25_vm0, %v53_v22, 0.0 }
  0x7e   :  { %v37_v25 = vpop.xlane.xlu1 %36  ;;  %64 = vadd.xlane.f32.xlu0 %v63_v23  ;;  %58 = vadd.xlane.f32.xlu2 %v57_v24  ;;  %v31_v26 = vpop.xlane.xlu0 %30 }
  0x7f   :  { %v48_v27 = vmul.f32 %v44_v14, %v37_v25  ;;  %v46_v28 = vmul.f32 %v44_v14, %v31_v26 }
  0x81   :  { %v455_v29 = vsub.f32 %v24_v4, %v48_v27  ;;  %v457_v30 = vsub.f32 %v22_v5, %v46_v28 }
  0x83   :  { %v56_v31 = vmul.f32 %v455_v29, %v455_v29  ;;  %v54_v32 = vmul.f32 %v457_v30, %v457_v30 }
  0x85   :  { %v66_v33 = vsel %vm25_vm0, %v56_v31, 0.0  ;;  %v60_v34 = vsel %vm25_vm0, %v54_v32, 0.0 }
  0x86   :  { %67 = vadd.xlane.f32.xlu1 %v66_v33  ;;  %61 = vadd.xlane.f32.xlu2 %v60_v34 }
  0xf1   :  { %v59_v36 = vpop.xlane.xlu2 %58  ;;  %v65_v37 = vpop.xlane.xlu0 %64 }
  0xf2   :  { %v69_v38 = vmul.f32 %v59_v36, %v44_v14  ;;  %v71_v39 = vmul.f32 %v65_v37, %v44_v14 }
  0xf4   :  { %v73_v41 = vadd.f32 1e-06, %v69_v38  ;;  %v75_v42 = vadd.f32 1e-06, %v71_v39 }
  0xf6   :  { %373 = vrsqrt.f32 %v73_v41  ;;  %vm103_vm4 = vweird.f32 %v75_v42  ;;  %vm83_vm5 = vweird.f32 %v73_v41 }
  0xf7   :  { %375 = vrsqrt.f32 %v75_v42 }
  0xf9   :  { %v68_v43 = vpop.xlane.xlu1 %67  ;;  %v62_v44 = vpop.xlane.xlu2 %61 }
  0xfa   :  { %v72_v45 = vmul.f32 %v68_v43, %v44_v14  ;;  %v70_v46 = vmul.f32 %v62_v44, %v44_v14 }
  0xfc   :  { %v374_v47 = vpop.eup %373  ;;  %v76_v48 = vadd.f32 1e-06, %v72_v45  ;;  %v74_v49 = vadd.f32 1e-06, %v70_v46 }
  0xfd   :  { %v376_v50 = vpop.eup %375  ;;  %v78_v51 = vmul.f32 %v374_v47, %v73_v41  ;;  %vm84_vm3 = vweird.f32 %v374_v47 }
  0xfe   :  { %v98_v52 = vmul.f32 %v376_v50, %v75_v42  ;;  %377 = vrsqrt.f32 %v76_v48  ;;  %vm104_vm2 = vweird.f32 %v376_v50  ;;  %vm85_vm7 = vmor %vm83_vm5, %vm84_vm3  ;;  %vm113_vm10 = vweird.f32 %v76_v48 }
  0xff   :  { %v79_v53 = vmul.f32 %v374_v47, %v78_v51  ;;  %379 = vrsqrt.f32 %v74_v49  ;;  %vm105_vm6 = vmor %vm103_vm4, %vm104_vm2  ;;  %vm93_vm12 = vweird.f32 %v74_v49 }
 0x100   :  { %v99_v54 = vmul.f32 %v376_v50, %v98_v52 }
 0x101   :  { %v80_v55 = vmul.f32 0.5, %v79_v53 }
 0x102   :  { %v100_v56 = vmul.f32 0.5, %v99_v54 }
 0x103   :  { %v81_v57 = vsub.f32 1.5, %v80_v55 }
 0x104   :  { %v378_v58 = vpop.eup %377  ;;  %v101_v59 = vsub.f32 1.5, %v100_v56 }
 0x105   :  { %v380_v60 = vpop.eup %379  ;;  %v108_v61 = vmul.f32 %v378_v58, %v76_v48  ;;  %v82_v62 = vmul.f32 %v374_v47, %v81_v57  ;;  %vm114_vm8 = vweird.f32 %v378_v58 }
 0x106   :  { %v102_v63 = vmul.f32 %v376_v50, %v101_v59  ;;  %v88_v0 = vmul.f32 %v380_v60, %v74_v49  ;;  %vm94_vm9 = vweird.f32 %v380_v60  ;;  %vm115_vm11 = vmor %vm113_vm10, %vm114_vm8 }
 0x107   :  { %v109_v1 = vmul.f32 %v378_v58, %v108_v61  ;;  %v86_v5 = vsel %vm85_vm7, %v374_v47, %v82_v62  ;;  %vm95_vm13 = vmor %vm93_vm12, %vm94_vm9 }
 0x108   :  { %v89_v2 = vmul.f32 %v380_v60, %v88_v0  ;;  %v106_v3 = vsel %vm105_vm6, %v376_v50, %v102_v63  ;;  %v117_v11 = vmul.f32 %v86_v5, %v447_v20 }
 0x109   :  { %v110_v4 = vmul.f32 0.5, %v109_v1  ;;  %v119_v8 = vmul.f32 %v106_v3, %v445_v19 }
 0x10a   :  { %v90_v6 = vmul.f32 0.5, %v89_v2  ;;  %v125_v21 = vmul.f32 %v368_v10, %v117_v11 }
 0x10b   :  { %v111_v7 = vsub.f32 1.5, %v110_v4  ;;  %v127_v18 = vmul.f32 %v368_v10, %v119_v8 }
 0x10c   :  { %v91_v9 = vsub.f32 1.5, %v90_v6  ;;  %v133_v25 = vadd.f32 %v369_v17, %v125_v21 }
 0x10d   :  { %v112_v12 = vmul.f32 %v378_v58, %v111_v7  ;;  %v135_v23 = vadd.f32 %v369_v17, %v127_v18 }
 0x10e   :  { %v92_v13 = vmul.f32 %v380_v60, %v91_v9 }
 0x10f   :  { %v116_v14 = vsel %vm115_vm11, %v378_v58, %v112_v12 }
 0x110   :  { %v120_v15 = vmul.f32 %v116_v14, %v455_v29  ;;  %v96_v16 = vsel %vm95_vm13, %v380_v60, %v92_v13  ;;  %v370_v29 = vld [vmem:[%s558_s2] ss:$0 sm:$0xff] }
 0x111   :  { %v118_v19 = vmul.f32 %v96_v16, %v457_v30 }
 0x112   :  { %v128_v22 = vmul.f32 %v368_v10, %v120_v15 }
 0x113   :  { %v126_v20 = vmul.f32 %v368_v10, %v118_v19 }
 0x114   :  { %v136_v24 = vadd.f32 %v369_v17, %v128_v22 }
 0x115   :  { %v134_v26 = vadd.f32 %v369_v17, %v126_v20 }
 0x116   :  { %v138_v27 = vpack.c.bf16 %v136_v24, %v135_v23 }
 0x117   :  { %v137_v28 = vpack.c.bf16 %v134_v26, %v133_v25 }
 0x118   :  { %361 = vmatmul.msk.bf16.vlgmr.msra.gmra.mxu1 %vm25_vm0, %v138_v27 }
 0x119   :  { %360 = vmatmul.msk.bf16.vlgmr.msra.gmra.mxu0 %vm25_vm0, %v137_v28 }
 0x195   :  { %v179_v31 = vpop.f32.mrf.mxu1 }
 0x196   :  { %v174_v32 = vpop.f32.mrf.mxu0  ;;  %v486_v30 = vadd.f32 %v370_v29, %v179_v31 }
 0x197   :  { %v488_v33 = vadd.f32 %v370_v29, %v174_v32 }
 0x198   :  { %v491_v34 = vmul.f32 0.70710677, %v486_v30 }
 0x199   :  { %v494_v35 = vmul.f32 0.70710677, %v488_v33 }
 0x19a   :  { %v202_v36 = vand.u32 2147483647, %v491_v34 }
 0x19b   :  { %v200_v37 = vand.u32 2147483647, %v494_v35 }
 0x19c   :  { %v206_v38 = vmul.f32 0.3275911, %v202_v36  ;;  %v310_v48 = vsub.f32 0.0, %v202_v36 }
 0x19d   :  { %v204_v39 = vmul.f32 0.3275911, %v200_v37  ;;  %v181_v40 = vpop.f32.mrf.mxu1  ;;  %v308_v57 = vsub.f32 0.0, %v200_v37 }
 0x19e   :  { %v210_v41 = vadd.f32 1.0, %v206_v38  ;;  %v176_v42 = vpop.f32.mrf.mxu0  ;;  %v500_v45 = vadd.f32 %v370_v29, %v181_v40  ;;  %v314_v59 = vmul.f32 %v310_v48, %v202_v36 }
 0x19f   :  { %v208_v43 = vadd.f32 1.0, %v204_v39  ;;  %v498_v44 = vadd.f32 %v370_v29, %v176_v42  ;;  %v312_v9 = vmul.f32 %v308_v57, %v200_v37 }
 0x1a0   :  { %381 = vrcp.f32 %v210_v41  ;;  %v506_v47 = vmul.f32 0.70710677, %v500_v45  ;;  %v251_v62 = vand.u32 2147483647, %v210_v41  ;;  %v253_v63 = vand.u32 2147483648, %v210_v41 }
 0x1a1   :  { %383 = vrcp.f32 %v208_v43  ;;  %v503_v46 = vmul.f32 0.70710677, %v498_v44  ;;  %v223_v1 = vand.u32 2147483648, %v208_v43  ;;  %v221_v4 = vand.u32 2147483647, %v208_v43 }
 0x1a2   :  { %v512_v51 = vand.u32 2147483647, %v506_v47  ;;  %vm247_vm0 = vweird.f32 %v210_v41  ;;  %vm217_vm1 = vweird.f32 %v208_v43  ;;  %v254_v7 = vor.u32 1.1754944e-38, %v253_v63 }
 0x1a3   :  { %v509_v49 = vand.u32 2147483647, %v503_v46  ;;  %v224_v8 = vor.u32 1.1754944e-38, %v223_v1  ;;  %vm252_vm4 = vcmp.eq.f32.partialorder %v251_v62, 8.507059e+37  ;;  %vm222_vm5 = vcmp.eq.f32.partialorder %v221_v4, 8.507059e+37 }
 0x1a4   :  { %v207_v56 = vmul.f32 0.3275911, %v512_v51  ;;  %v320_v13 = vmul.f32 1.442695, %v314_v59  ;;  %v316_v23 = vmul.f32 1.442695, %v312_v9 }
 0x1a5   :  { %v205_v54 = vmul.f32 0.3275911, %v509_v49 }
 0x1a6   :  { %v382_v50 = vpop.eup %381  ;;  %v518_v0 = vadd.f32 1.0, %v207_v56 }
 0x1a7   :  { %v384_v52 = vpop.eup %383  ;;  %v243_v53 = vmul.f32 %v382_v50, %v210_v41  ;;  %v516_v60 = vadd.f32 1.0, %v205_v54  ;;  %vm248_vm14 = vweird.f32 %v382_v50  ;;  %v309_v41 = vsub.f32 0.0, %v509_v49 }
 0x1a8   :  { %v213_v55 = vmul.f32 %v384_v52, %v208_v43  ;;  %vm218_vm15 = vweird.f32 %v384_v52  ;;  %vm249_vm2 = vmor %vm247_vm0, %vm248_vm14  ;;  %v268_v32 = vand.u32 2147483648, %v518_v0  ;;  %v266_v38 = vand.u32 2147483647, %v518_v0 }
 0x1a9   :  { %v244_v58 = vsub.f32 1.0, %v243_v53  ;;  %385 = vrcp.f32 %v516_v60  ;;  %vm219_vm3 = vmor %vm217_vm1, %vm218_vm15  ;;  %v236_v26 = vand.u32 2147483647, %v516_v60  ;;  %v238_v27 = vand.u32 2147483648, %v516_v60 }
 0x1aa   :  { %v214_v61 = vsub.f32 1.0, %v213_v55  ;;  %387 = vrcp.f32 %v518_v0  ;;  %vm232_vm8 = vweird.f32 %v516_v60  ;;  %vm262_vm10 = vweird.f32 %v518_v0 }
 0x1ab   :  { %v245_v2 = vmul.f32 %v382_v50, %v244_v58  ;;  %389 = vpow2.f32 %v320_v13  ;;  %v239_v43 = vor.u32 1.1754944e-38, %v238_v27  ;;  %vm237_vm11 = vcmp.eq.f32.partialorder %v236_v26, 8.507059e+37 }
 0x1ac   :  { %v215_v3 = vmul.f32 %v384_v52, %v214_v61  ;;  %v269_v54 = vor.u32 1.1754944e-38, %v268_v32  ;;  %vm267_vm13 = vcmp.eq.f32.partialorder %v266_v38, 8.507059e+37  ;;  %v311_v61 = vsub.f32 0.0, %v512_v51 }
 0x1ad   :  { %v246_v5 = vadd.f32 %v382_v50, %v245_v2  ;;  %391 = vpow2.f32 %v316_v23  ;;  %vm194_vm14 = vcmp.ge.f32.partialorder %v491_v34, 0.0  ;;  %vm192_vm15 = vcmp.ge.f32.partialorder %v494_v35, 0.0 }
 0x1ae   :  { %v216_v6 = vadd.f32 %v384_v52, %v215_v3  ;;  %v313_v3 = vmul.f32 %v309_v41, %v509_v49  ;;  %v398_v23 = vmov -1.0   ;;  %v186_v27 = vmul.f32 0.5, %v486_v30 }
 0x1af   :  { %v250_v10 = vsel %vm249_vm2, %v382_v50, %v246_v5  ;;  %v386_v14 = vpop.eup %385  ;;  %vm193_vm0 = vcmp.ge.f32.partialorder %v503_v46, 0.0  ;;  %vm195_vm1 = vcmp.ge.f32.partialorder %v506_v47, 0.0 }
 0x1b0   :  { %v220_v11 = vsel %vm219_vm3, %v384_v52, %v216_v6  ;;  %v255_v12 = vsel %vm252_vm4, %v254_v7, %v250_v10  ;;  %v388_v17 = vpop.eup %387  ;;  %v228_v19 = vmul.f32 %v386_v14, %v516_v60  ;;  %vm233_vm6 = vweird.f32 %v386_v14 }
 0x1b1   :  { %v225_v15 = vsel %vm222_vm5, %v224_v8, %v220_v11  ;;  %v274_v16 = vmul.f32 1.0614054, %v255_v12  ;;  %v258_v22 = vmul.f32 %v388_v17, %v518_v0  ;;  %vm263_vm7 = vweird.f32 %v388_v17  ;;  %vm234_vm9 = vmor %vm232_vm8, %vm233_vm6  ;;  %v390_v50 = vpop.eup %389 }
 0x1b2   :  { %v272_v18 = vmul.f32 1.0614054, %v225_v15  ;;  %v229_v24 = vsub.f32 1.0, %v228_v19  ;;  %vm264_vm12 = vmor %vm262_vm10, %vm263_vm7  ;;  %v315_v7 = vmul.f32 %v311_v61, %v512_v51  ;;  %v198_v51 = vsel %vm194_vm14, 1.0, %v398_v23 }
 0x1b3   :  { %v278_v21 = vadd.f32 -1.4531521, %v274_v16  ;;  %v259_v28 = vsub.f32 1.0, %v258_v22  ;;  %v392_v13 = vpop.eup %391  ;;  %v318_v16 = vmul.f32 1.442695, %v313_v3 }
 0x1b4   :  { %v276_v20 = vadd.f32 -1.4531521, %v272_v18  ;;  %v230_v31 = vmul.f32 %v386_v14, %v229_v24  ;;  %v322_v49 = vmul.f32 1.442695, %v315_v7  ;;  %v196_v24 = vsel %vm192_vm15, 1.0, %v398_v23 }
 0x1b5   :  { %v282_v25 = vmul.f32 %v278_v21, %v255_v12  ;;  %v260_v37 = vmul.f32 %v388_v17, %v259_v28  ;;  %393 = vpow2.f32 %v318_v16 }
 0x1b6   :  { %v280_v29 = vmul.f32 %v276_v20, %v225_v15  ;;  %v231_v40 = vadd.f32 %v386_v14, %v230_v31  ;;  %395 = vpow2.f32 %v322_v49 }
 0x1b7   :  { %v286_v36 = vadd.f32 1.4214138, %v282_v25  ;;  %v261_v48 = vadd.f32 %v388_v17, %v260_v37 }
 0x1b8   :  { %v284_v39 = vadd.f32 1.4214138, %v280_v29  ;;  %v235_v53 = vsel %vm234_vm9, %v386_v14, %v231_v40  ;;  %v184_v29 = vmul.f32 0.5, %v488_v33 }
 0x1b9   :  { %v290_v42 = vmul.f32 %v286_v36, %v255_v12  ;;  %v240_v56 = vsel %vm237_vm11, %v239_v43, %v235_v53  ;;  %v265_v57 = vsel %vm264_vm12, %v388_v17, %v261_v48  ;;  %v197_v48 = vsel %vm193_vm0, 1.0, %v398_v23 }
 0x1ba   :  { %v288_v52 = vmul.f32 %v284_v39, %v225_v15  ;;  %v273_v59 = vmul.f32 1.0614054, %v240_v56  ;;  %v270_v60 = vsel %vm267_vm13, %v269_v54, %v265_v57  ;;  %v199_v53 = vsel %vm195_vm1, 1.0, %v398_v23 }
 0x1bb   :  { %v294_v55 = vadd.f32 -0.28449672, %v290_v42  ;;  %v275_v63 = vmul.f32 1.0614054, %v270_v60  ;;  %v394_v40 = vpop.eup %393  ;;  %v187_v57 = vmul.f32 0.5, %v500_v45 }
 0x1bc   :  { %v292_v58 = vadd.f32 -0.28449672, %v288_v52  ;;  %v277_v1 = vadd.f32 -1.4531521, %v273_v59  ;;  %v396_v42 = vpop.eup %395 }
 0x1bd   :  { %v298_v62 = vmul.f32 %v294_v55, %v255_v12  ;;  %v279_v4 = vadd.f32 -1.4531521, %v275_v63  ;;  %v185_v55 = vmul.f32 0.5, %v498_v44 }
 0x1be   :  { %v296_v0 = vmul.f32 %v292_v58, %v225_v15  ;;  %v281_v6 = vmul.f32 %v277_v1, %v240_v56 }
 0x1bf   :  { %v302_v2 = vadd.f32 0.2548296, %v298_v62  ;;  %v283_v9 = vmul.f32 %v279_v4, %v270_v60 }
 0x1c0   :  { %v300_v5 = vadd.f32 0.2548296, %v296_v0  ;;  %v285_v11 = vadd.f32 1.4214138, %v281_v6 }
 0x1c1   :  { %v306_v8 = vmul.f32 %v302_v2, %v255_v12  ;;  %v287_v17 = vadd.f32 1.4214138, %v283_v9 }
 0x1c2   :  { %v304_v10 = vmul.f32 %v300_v5, %v225_v15  ;;  %v289_v19 = vmul.f32 %v285_v11, %v240_v56 }
 0x1c3   :  { %v326_v14 = vmul.f32 %v390_v50, %v306_v8  ;;  %v291_v22 = vmul.f32 %v287_v17, %v270_v60 }
 0x1c4   :  { %v324_v18 = vmul.f32 %v392_v13, %v304_v10  ;;  %v293_v12 = vadd.f32 -0.28449672, %v289_v19 }
 0x1c5   :  { %v330_v21 = vsub.f32 1.0, %v326_v14  ;;  %v295_v25 = vadd.f32 -0.28449672, %v291_v22 }
 0x1c6   :  { %v328_v20 = vsub.f32 1.0, %v324_v18  ;;  %v297_v34 = vmul.f32 %v293_v12, %v240_v56 }
 0x1c7   :  { %v334_v15 = vmul.f32 %v330_v21, %v198_v51  ;;  %v299_v35 = vmul.f32 %v295_v25, %v270_v60 }
 0x1c8   :  { %v332_v26 = vmul.f32 %v328_v20, %v196_v24  ;;  %v301_v32 = vadd.f32 0.2548296, %v297_v34 }
 0x1c9   :  { %v338_v28 = vadd.f32 1.0, %v334_v15  ;;  %v303_v37 = vadd.f32 0.2548296, %v299_v35 }
 0x1ca   :  { %v336_v31 = vadd.f32 1.0, %v332_v26  ;;  %v305_v39 = vmul.f32 %v301_v32, %v240_v56 }
 0x1cb   :  { %v342_v36 = vmul.f32 %v338_v28, %v186_v27  ;;  %v307_v41 = vmul.f32 %v303_v37, %v270_v60 }
 0x1cc   :  { %v340_v38 = vmul.f32 %v336_v31, %v184_v29  ;;  %v325_v30 = vmul.f32 %v394_v40, %v305_v39 }
 0x1cd   :  { %346 = vst [vmem:[%s560_s5 + $0x10] sm:$0xff] %v342_v36  ;;  %v327_v33 = vmul.f32 %v396_v42, %v307_v41 }
 0x1ce   :  { %344 = vst [vmem:[%s560_s5] sm:$0xff] %v340_v38  ;;  %v329_v43 = vsub.f32 1.0, %v325_v30 }
 0x1cf   :  { %v331_v50 = vsub.f32 1.0, %v327_v33 }
 0x1d0   :  { %v333_v52 = vmul.f32 %v329_v43, %v197_v48 }
 0x1d1   :  { %v335_v54 = vmul.f32 %v331_v50, %v199_v53 }
 0x1d2   :  { %v337_v56 = vadd.f32 1.0, %v333_v52 }
 0x1d3   :  { %v339_v58 = vadd.f32 1.0, %v335_v54 }
 0x1d4   :  { %v341_v59 = vmul.f32 %v337_v56, %v185_v55 }
 0x1d5   :  { %v343_v60 = vmul.f32 %v339_v58, %v187_v57 }
 0x1d6   :  { %345 = vst [vmem:[%s560_s5 + $0x8] sm:$0xff] %v341_v59 }
 0x1d7   :  { %347 = vst [vmem:[%s560_s5 + $0x18] sm:$0xff] %v343_v60 }

// kernel: _lambda_.31
= control target key start
LH: loop header
LB: loop body
LE: loop exit
PB: predicated region body
PF: predicated region fallthrough
CT: control target
= control target key end

     0   :  { %s963_s24 = smov 0   ;;  %s965_s25 = smov 0   ;;  %s1047_s0 = inlined_call_operand.vmem [shape: f32[8,16,8], index: 0, kind: input, shape index: {}]   ;;  %s1048_s1 = inlined_call_operand.vmem [shape: f32[8,16,8], index: 1, kind: input, shape index: {}]   ;;  %s1049_s2 = inlined_call_operand.vmem [shape: f32[8,16,8], index: 2, kind: input, shape index: {}]   ;;  %s1050_s3 = inlined_call_operand.vmem [shape: f32[8,16,4], index: 3, kind: input, shape index: {}]   ;;  %s1051_s4 = inlined_call_operand.vmem [shape: f32[8,16,4], index: 4, kind: input, shape index: {}]   ;;  %s1052_s5 = inlined_call_operand.vmem [shape: f32[4,16], index: 5, kind: input, shape index: {}]   ;;  %s1053_s6 = inlined_call_operand.vmem [shape: f32[4,16], index: 6, kind: input, shape index: {}]   ;;  %s1054_s7 = inlined_call_operand.vmem [shape: f32[8,16,8], index: 7, kind: output, shape index: {}]  }
   0x1   :  { %s967_s26 = smov 0  }
   0x2 LB: > { %s29_s27 = sadd.s32 1, %s914_s25  ;;  %p825_p0 = scmp.ge.s32.totalorder %s918_s26, 1  ;;  %s918_s26 = sphi %s967_s26, %s17_s26   ;;  %s914_s25 = sphi %s965_s25, %s1056_s25   ;;  %s910_s24 = sphi %s963_s24, %s1055_s24  }
   0x3   : > { %p31_p1 = scmp.ge.s32.totalorder %s29_s27, 8  ;;  %p321_p2 = scmp.lt.s32.totalorder %s918_s26, 9 }
   0x5   : > { %s1058_s27 = smov (%p31_p1, %s29_s27), 0  ;;  %p322_p3 = pnand %p825_p0, %p321_p2 }
   0x6   : > { %p389_p4 = scmp.lt.s32.totalorder (!%p322_p3), %s910_s24, 7 }
   0x7   : > { %325 = sbr.rel (%p322_p3) target bundleno = 661 (0x295), region = 48 }
   0xc   : > { %vm447_vm0 = vcmask 64512   ;;  %v484_v0 = vld [vmem:[%s1052_s5] sm:$0xf]  ;;  %vm495_vm1 = vcmask 1043456   ;;  %v920_v1 = vmov 0.0   ;;  %s1060_s24 = smov (!%p389_p4, %s910_s24), 7 }
   0xd   : > { %448 = vst.msk [vmem:[#allocation4] sm:$0xff] %vm447_vm0, %v920_v1  ;;  %842 = vmatpush.msk.msra.mxu2 %vm495_vm1, %v484_v0  ;;  %v487_v2 = vld [vmem:[%s1053_s6] sm:$0xf]  ;;  %s989_s9 = sshll.u32 %s1060_s24, 4  ;;  %vm488_vm2 = vcmask 31744   ;;  %vm442_vm3 = vcmask 7168  }
   0xe   : > { %449 = vst.msk [vmem:[#allocation4 + $0x8] sm:$0xff] %vm447_vm0, %v920_v1  ;;  %839 = vmatpush.msk.msra.mxu1 %vm495_vm1, %v487_v2  ;;  %s402_s12 = scalar_lea.vmem %s1048_s1, %s989_s9  ;;  %s418_s15 = scalar_lea.vmem %s1050_s3, %s989_s9  ;;  %v921_v14 = vmov -inf   ;;  %vm558_vm4 = vcmask 130048   ;;  %v922_v29 = vmov 0  }
   0xf   : > { %v453_v3 = vld [vmem:[%s402_s12] sm:$0xff]  ;;  %v454_v4 = vld [vmem:[%s402_s12 + $0x8] sm:$0xff]  ;;  %s423_s18 = scalar_lea.vmem %s1051_s4, %s989_s9  ;;  %s393_s21 = scalar_lea.vmem %s1047_s0, %s989_s9  ;;  %443 = vst.msk [vmem:[#allocation2] sm:$0xff] %vm442_vm3, %v921_v14  ;;  %881 = vset.pattern.permute.xlu1 %v922_v29  ;;  %882 = vset.pattern.permute.xlu0 %v922_v29 }
  0x10   : > { %v482_v5 = vld [vmem:[%s418_s15] sm:$0xff]  ;;  %v455_v6 = vpack.c.bf16 %v454_v4, %v453_v3  ;;  %v451_v10 = vld [vmem:[%s393_s21 + $0x8] sm:$0xff]  ;;  %444 = vst.msk [vmem:[#allocation2 + $0x8] sm:$0xff] %vm442_vm3, %v921_v14  ;;  %883 = vset.pattern.permute.xlu2 %v922_v29  ;;  %s412_s24 = scalar_lea.vmem %s1049_s2, %s989_s9  ;;  %s436_s30 = scalar_lea.vmem %s1054_s7, %s989_s9 }
  0x11   : > { %843 = vmatmul.msk.f32.vlgmr.msra.gmra.mxu2 %vm488_vm2, %v482_v5  ;;  %v485_v7 = vld [vmem:[%s423_s18] sm:$0xff]  ;;  %v483_v11 = vld [vmem:[%s418_s15 + $0x8] sm:$0xff]  ;;  %445 = vst.msk [vmem:[#allocation3] sm:$0xff] %vm442_vm3, %v920_v1 }
  0x12   : > { %840 = vmatmul.msk.f32.vlgmr.msra.gmra.mxu1 %vm488_vm2, %v485_v7  ;;  %v464_v8 = vsel %vm447_vm0, %v455_v6, 0  ;;  %v450_v9 = vld [vmem:[%s393_s21] sm:$0xff]  ;;  %v486_v13 = vld [vmem:[%s423_s18 + $0x8] sm:$0xff]  ;;  %446 = vst.msk [vmem:[#allocation3 + $0x8] sm:$0xff] %vm442_vm3, %v920_v1 }
  0x13   : > { %473 = vmatpush.bf16.xpose.msra.mxu0 %v464_v8  ;;  %v452_v12 = vpack.c.bf16 %v451_v10, %v450_v9  ;;  %v456_v42 = vld [vmem:[%s412_s24] sm:$0xff]  ;;  %v457_v43 = vld [vmem:[%s412_s24 + $0x8] sm:$0xff] }
  0x14   : > { %v458_v44 = vpack.c.bf16 %v457_v43, %v456_v42  ;;  %v604_v3 = vld [vmem:[#allocation4] sm:$0xff] }
  0x15   : > { %v605_v9 = vld [vmem:[#allocation4 + $0x8] sm:$0xff] }
  0x16   : > { %v556_v30 = vld [vmem:[#allocation2] sm:$0xff]  ;;  %629 = vmatpush.bf16.msra.mxu3 %v458_v44 }
  0x17   : > { %v557_v35 = vld [vmem:[#allocation2 + $0x8] sm:$0xff] }
  0x18   : > { %v589_v56 = vld [vmem:[#allocation3] sm:$0xff] }
  0x19   : > { %844 = vmatmul.msk.f32.gmra.mxu2 %vm488_vm2, %v483_v11  ;;  %v590_v60 = vld [vmem:[#allocation3 + $0x8] sm:$0xff] }
  0x1a   : > { %841 = vmatmul.msk.f32.gmra.mxu1 %vm488_vm2, %v486_v13  ;;  %838 = vmatmul.msk.bf16.vlgmr.msra.gmra.mxu0 %vm447_vm0, %v452_v12 }
  0x8f   : > { %v516_v15 = vpop.f32.mrf.mxu1 }
  0x94   : > { %v548_v16 = vpop.f32.mrf.mxu2 }
  0x95   : > { %v549_v17 = vadd.f32 %v548_v16, %v516_v15 }
  0x97   : > { %v475_v18 = vpop.f32.mrf.mxu0  ;;  %v519_v21 = vpop.f32.mrf.mxu1 }
  0x98   : > { %v480_v19 = vmul.f32 0.35355338, %v475_v18 }
  0x9a   : > { %v554_v20 = vadd.f32 %v549_v17, %v480_v19 }
  0x9c   : > { %v551_v22 = vpop.f32.mrf.mxu2  ;;  %v559_v23 = vsel %vm558_vm4, %v554_v20, -inf }
  0x9d   : > { %560 = vmax.xlane.f32.xlu0 %v559_v23  ;;  %v552_v24 = vadd.f32 %v551_v22, %v519_v21 }
  0x9f   : > { %v477_v25 = vpop.f32.mrf.mxu0 }
  0xa0   : > { %v481_v26 = vmul.f32 0.35355338, %v477_v25 }
  0xa2   : > { %v555_v27 = vadd.f32 %v552_v24, %v481_v26 }
  0xa4   : > { %v562_v28 = vsel %vm558_vm4, %v555_v27, -inf }
  0xa5   : > { %563 = vmax.xlane.f32.xlu0 %v562_v28 }
 0x110   : > { %v561_v31 = vpop.xlane.xlu0 %560 }
 0x111   : > { %v565_v32 = vmax.f32 %v556_v30, %v561_v31 }
 0x113   : > { %v567_v33 = vsub.f32 %v556_v30, %v565_v32  ;;  %640 = vst.msk [vmem:[#allocation2] sm:$0xff] %vm442_vm3, %v565_v32  ;;  %575 = vperm.xlu1 %881, %v565_v32  }
 0x115   : > { %v569_v34 = vmul.f32 1.442695, %v567_v33 }
 0x117   : > { %884 = vpow2.f32 %v569_v34 }
 0x118   : > { %v564_v36 = vpop.xlane.xlu0 %563 }
 0x119   : > { %v566_v37 = vmax.f32 %v557_v35, %v564_v36 }
 0x11b   : > { %v568_v38 = vsub.f32 %v557_v35, %v566_v37  ;;  %641 = vst.msk [vmem:[#allocation2 + $0x8] sm:$0xff] %vm442_vm3, %v566_v37  ;;  %580 = vperm.xlu1 %881, %v566_v37  }
 0x11d   : > { %v885_v39 = vpop.eup %884  ;;  %v571_v40 = vmul.f32 1.442695, %v568_v38 }
 0x11e   : > { %608 = vperm.xlu0 %882, %v885_v39   ;;  %v591_v57 = vmul.f32 %v885_v39, %v589_v56 }
 0x11f   : > { %886 = vpow2.f32 %v571_v40 }
 0x125   : > { %v887_v41 = vpop.eup %886 }
 0x126   : > { %613 = vperm.xlu1 %881, %v887_v41   ;;  %v592_v61 = vmul.f32 %v887_v41, %v590_v60 }
 0x185   : > { %v576_v45 = vpop.permute.xlu1 %575 }
 0x186   : > { %v583_v46 = vsub.f32 %v554_v20, %v576_v45 }
 0x188   : > { %v585_v47 = vmul.f32 1.442695, %v583_v46 }
 0x18a   : > { %888 = vpow2.f32 %v585_v47 }
 0x18d   : > { %v581_v48 = vpop.permute.xlu1 %580 }
 0x18e   : > { %v584_v49 = vsub.f32 %v555_v27, %v581_v48 }
 0x190   : > { %v889_v50 = vpop.eup %888  ;;  %v587_v51 = vmul.f32 1.442695, %v584_v49  ;;  %v609_v4 = vpop.permute.xlu0 %608 }
 0x191   : > { %v593_v52 = vsel %vm558_vm4, %v889_v50, 0.0  ;;  %v616_v5 = vmul.f32 %v609_v4, %v604_v3 }
 0x192   : > { %890 = vpow2.f32 %v587_v51  ;;  %594 = vadd.xlane.f32.xlu2 %v593_v52 }
 0x198   : > { %v891_v53 = vpop.eup %890  ;;  %v614_v10 = vpop.permute.xlu1 %613 }
 0x199   : > { %v596_v54 = vsel %vm558_vm4, %v891_v53, 0.0  ;;  %v618_v55 = vpack.c.bf16 %v891_v53, %v889_v50  ;;  %v617_v11 = vmul.f32 %v614_v10, %v605_v9 }
 0x19a   : > { %597 = vadd.xlane.f32.xlu2 %v596_v54 }
 0x19b   : > { %845 = vmatmul.msk.bf16.vlgmr.msra.gmra.mxu3 %vm558_vm4, %v618_v55 }
 0x205   : > { %v595_v58 = vpop.xlane.xlu2 %594 }
 0x206   : > { %v599_v59 = vadd.f32 %v595_v58, %v591_v57 }
 0x208   : > { %602 = vst.msk [vmem:[#allocation3] sm:$0xff] %vm442_vm3, %v599_v59 }
 0x20d   : > { %v598_v62 = vpop.xlane.xlu2 %597 }
 0x20e   : > { %v600_v63 = vadd.f32 %v598_v62, %v592_v61 }
 0x20f   : > { %v647_v0 = vld [vmem:[#allocation3] sm:$0xff] }
 0x210   : > { %603 = vst.msk [vmem:[#allocation3 + $0x8] sm:$0xff] %vm442_vm3, %v600_v63  ;;  %892 = vrcp.f32 %v647_v0 }
 0x216   : > { %v893_v1 = vpop.eup %892 }
 0x217   : > { %653 = vperm.xlu2 %883, %v893_v1   ;;  %v648_v2 = vld [vmem:[#allocation3 + $0x8] sm:$0xff] }
 0x218   : > { %894 = vrcp.f32 %v648_v2 }
 0x21e   : > { %v895_v6 = vpop.eup %894  ;;  %v631_v7 = vpop.f32.mrf.mxu3 }
 0x21f   : > { %v636_v8 = vadd.f32 %v631_v7, %v616_v5  ;;  %658 = vperm.xlu1 %881, %v895_v6  }
 0x221   : > { %638 = vst.msk [vmem:[#allocation4] sm:$0xff] %vm447_vm0, %v636_v8 }
 0x226   : > { %v633_v12 = vpop.f32.mrf.mxu3 }
 0x227   : > { %v637_v13 = vadd.f32 %v633_v12, %v617_v11 }
 0x228   : > { %v645_v15 = vld [vmem:[#allocation4] sm:$0xff] }
 0x229   : > { %639 = vst.msk [vmem:[#allocation4 + $0x8] sm:$0xff] %vm447_vm0, %v637_v13 }
 0x230   : > { %v646_v17 = vld [vmem:[#allocation4 + $0x8] sm:$0xff] }
 0x271   : > { %v654_v14 = vpop.permute.xlu2 %653 }
 0x272   : > { %v661_v16 = vmul.f32 %v654_v14, %v645_v15 }
 0x274   : > { %663 = vst.msk [vmem:[%s436_s30] sm:$0xff] %vm447_vm0, %v661_v16 }
 0x291   : > { %v659_v18 = vpop.permute.xlu1 %658 }
 0x292   : > { %v662_v19 = vmul.f32 %v659_v18, %v646_v17 }
 0x294   : > { %664 = vst.msk [vmem:[%s436_s30 + $0x8] sm:$0xff] %vm447_vm0, %v662_v19 }
 0x295 PF: > { %s17_s26 = sadd.s32 1, %s918_s26   ;;  %s1055_s24 = smov %s914_s25 }
 0x296   : > { %p14_p5 = scmp.ge.s32.totalorder %s17_s26, 10   ;;  %s1056_s25 = smov %s1058_s27 }
 0x298   :  { %16 = sbr.rel (!%p14_p5) target bundleno = 2 (0x2), region = 104 }

// kernel: _lambda_.45
= control target key start
LH: loop header
LB: loop body
LE: loop exit
PB: predicated region body
PF: predicated region fallthrough
CT: control target
= control target key end

     0   :  { %vm47_vm0 = vcmask 261120   ;;  %vm73_vm1 = vcmask 130048   ;;  %v221_v21 = vmov 16.0   ;;  %s318_s1 = inlined_call_operand.vmem [shape: bf16[32,16], index: 1, kind: input, shape index: {}]   ;;  %s319_s0 = inlined_call_operand.vmem [shape: f32[32,32], index: 0, kind: input, shape index: {}]   ;;  %s320_s2 = inlined_call_operand.vmem [shape: f32[1,16], index: 2, kind: input, shape index: {}]   ;;  %s321_s3 = inlined_call_operand.vmem [shape: f32[1,16], index: 3, kind: input, shape index: {}]   ;;  %s322_s4 = inlined_call_operand.vmem [shape: f32[1,16], index: 4, kind: input, shape index: {}]   ;;  %s323_s5 = inlined_call_operand.vmem [shape: f32[32,16], index: 5, kind: output, shape index: {}]  }
   0x1   :  { %v204_v0 = vld [vmem:[%s318_s1 + $0x8] sm:$0xff]  ;;  %v203_v1 = vld [vmem:[%s318_s1] sm:$0xff]  ;;  %v23_v4 = vld [vmem:[%s319_s0 + $0x10] sm:$0xff]  ;;  %211 = vrcp.f32 %v221_v21 }
   0x2   :  { %v21_v2 = vld [vmem:[%s319_s0] sm:$0xff]  ;;  %v22_v3 = vld [vmem:[%s319_s0 + $0x8] sm:$0xff]  ;;  %60 = vmatpush.bf16.msra.mxu0 %v204_v0  ;;  %205 = vmatpush.bf16.msra.mxu1 %v204_v0  ;;  %v24_v5 = vld [vmem:[%s319_s0 + $0x18] sm:$0xff] }
   0x3   :  { %v25_v6 = vpack.c.bf16 %v22_v3, %v21_v2  ;;  %v26_v7 = vpack.c.bf16 %v24_v5, %v23_v4  ;;  %v208_v8 = vld [vmem:[%s320_s2] ss:$0 sm:$0xff] }
   0x6   :  { %61 = vmatpush.bf16.msra.mxu0 %v203_v1  ;;  %206 = vmatpush.bf16.msra.mxu1 %v203_v1 }
   0x7   :  { %v212_v22 = vpop.eup %211 }
   0x8   :  { %v87_v23 = vmul.f32 16.0, %v212_v22  ;;  %vm91_vm2 = vweird.f32 %v212_v22 }
   0x9   :  { %201 = vmatmul.msk.bf16.vlgmr.msra.gmra.mxu0 %vm47_vm0, %v25_v6  ;;  %202 = vmatmul.msk.bf16.vlgmr.msra.gmra.mxu1 %vm47_vm0, %v26_v7 }
   0xa   :  { %v88_v24 = vsub.f32 1.0, %v87_v23 }
   0xc   :  { %v89_v25 = vmul.f32 %v212_v22, %v88_v24 }
   0xe   :  { %v90_v26 = vadd.f32 %v212_v22, %v89_v25 }
  0x10   :  { %v92_v27 = vsel %vm91_vm2, %v212_v22, %v90_v26 }
  0x86   :  { %v63_v9 = vpop.f32.mrf.mxu0  ;;  %v68_v10 = vpop.f32.mrf.mxu1 }
  0x87   :  { %v64_v11 = vadd.f32 %v208_v8, %v63_v9  ;;  %v69_v12 = vadd.f32 %v208_v8, %v68_v10  ;;  %v209_v10 = vld [vmem:[%s321_s3] ss:$0 sm:$0xff] }
  0x89   :  { %v80_v13 = vsel %vm73_vm1, %v69_v12, 0.0  ;;  %v74_v14 = vsel %vm73_vm1, %v64_v11, 0.0 }
  0x8a   :  { %81 = vadd.xlane.f32.xlu1 %v80_v13  ;;  %75 = vadd.xlane.f32.xlu0 %v74_v14 }
  0x8e   :  { %v65_v15 = vpop.f32.mrf.mxu0  ;;  %v70_v16 = vpop.f32.mrf.mxu1 }
  0x8f   :  { %v66_v17 = vadd.f32 %v208_v8, %v65_v15  ;;  %v71_v18 = vadd.f32 %v208_v8, %v70_v16  ;;  %v210_v15 = vld [vmem:[%s322_s4] ss:$0 sm:$0xff] }
  0x91   :  { %v83_v19 = vsel %vm73_vm1, %v71_v18, 0.0  ;;  %v77_v20 = vsel %vm73_vm1, %v66_v17, 0.0 }
  0x92   :  { %84 = vadd.xlane.f32.xlu1 %v83_v19  ;;  %78 = vadd.xlane.f32.xlu0 %v77_v20 }
  0xfd   :  { %v82_v28 = vpop.xlane.xlu1 %81  ;;  %v76_v29 = vpop.xlane.xlu0 %75 }
  0xfe   :  { %v95_v30 = vmul.f32 %v92_v27, %v82_v28  ;;  %v93_v31 = vmul.f32 %v92_v27, %v76_v29 }
 0x100   :  { %v277_v32 = vsub.f32 %v69_v12, %v95_v30  ;;  %v97_v33 = vsub.f32 %v64_v11, %v93_v31 }
 0x102   :  { %v103_v34 = vmul.f32 %v277_v32, %v277_v32  ;;  %v101_v35 = vmul.f32 %v97_v33, %v97_v33 }
 0x104   :  { %v111_v36 = vsel %vm73_vm1, %v103_v34, 0.0  ;;  %v105_v37 = vsel %vm73_vm1, %v101_v35, 0.0 }
 0x105   :  { %v85_v38 = vpop.xlane.xlu1 %84  ;;  %112 = vadd.xlane.f32.xlu0 %v111_v36  ;;  %106 = vadd.xlane.f32.xlu2 %v105_v37  ;;  %v79_v39 = vpop.xlane.xlu0 %78 }
 0x106   :  { %v96_v40 = vmul.f32 %v92_v27, %v85_v38  ;;  %v94_v41 = vmul.f32 %v92_v27, %v79_v39 }
 0x108   :  { %v283_v42 = vsub.f32 %v71_v18, %v96_v40  ;;  %v285_v43 = vsub.f32 %v66_v17, %v94_v41 }
 0x10a   :  { %v104_v44 = vmul.f32 %v283_v42, %v283_v42  ;;  %v102_v45 = vmul.f32 %v285_v43, %v285_v43 }
 0x10c   :  { %v114_v46 = vsel %vm73_vm1, %v104_v44, 0.0  ;;  %v108_v47 = vsel %vm73_vm1, %v102_v45, 0.0 }
 0x10d   :  { %115 = vadd.xlane.f32.xlu1 %v114_v46  ;;  %109 = vadd.xlane.f32.xlu2 %v108_v47 }
 0x178   :  { %v107_v48 = vpop.xlane.xlu2 %106  ;;  %v113_v49 = vpop.xlane.xlu0 %112 }
 0x179   :  { %v117_v50 = vmul.f32 %v107_v48, %v92_v27  ;;  %v119_v51 = vmul.f32 %v113_v49, %v92_v27 }
 0x17b   :  { %v121_v52 = vadd.f32 1e-06, %v117_v50  ;;  %v123_v53 = vadd.f32 1e-06, %v119_v51 }
 0x17d   :  { %213 = vrsqrt.f32 %v121_v52  ;;  %vm131_vm5 = vweird.f32 %v121_v52  ;;  %vm151_vm7 = vweird.f32 %v123_v53 }
 0x17e   :  { %215 = vrsqrt.f32 %v123_v53 }
 0x180   :  { %v116_v54 = vpop.xlane.xlu1 %115  ;;  %v110_v55 = vpop.xlane.xlu2 %109 }
 0x181   :  { %v120_v56 = vmul.f32 %v116_v54, %v92_v27  ;;  %v118_v57 = vmul.f32 %v110_v55, %v92_v27 }
 0x183   :  { %v214_v58 = vpop.eup %213  ;;  %v124_v59 = vadd.f32 1e-06, %v120_v56  ;;  %v122_v60 = vadd.f32 1e-06, %v118_v57 }
 0x184   :  { %v216_v61 = vpop.eup %215  ;;  %v126_v62 = vmul.f32 %v214_v58, %v121_v52  ;;  %vm132_vm3 = vweird.f32 %v214_v58 }
 0x185   :  { %v146_v63 = vmul.f32 %v216_v61, %v123_v53  ;;  %217 = vrsqrt.f32 %v124_v59  ;;  %vm152_vm4 = vweird.f32 %v216_v61  ;;  %vm133_vm6 = vmor %vm131_vm5, %vm132_vm3  ;;  %vm161_vm11 = vweird.f32 %v124_v59 }
 0x186   :  { %v127_v0 = vmul.f32 %v214_v58, %v126_v62  ;;  %219 = vrsqrt.f32 %v122_v60  ;;  %vm153_vm8 = vmor %vm151_vm7, %vm152_vm4  ;;  %vm141_vm13 = vweird.f32 %v122_v60 }
 0x187   :  { %v147_v1 = vmul.f32 %v216_v61, %v146_v63 }
 0x188   :  { %v128_v2 = vmul.f32 0.5, %v127_v0 }
 0x189   :  { %v148_v3 = vmul.f32 0.5, %v147_v1 }
 0x18a   :  { %v129_v4 = vsub.f32 1.5, %v128_v2 }
 0x18b   :  { %v218_v5 = vpop.eup %217  ;;  %v149_v6 = vsub.f32 1.5, %v148_v3 }
 0x18c   :  { %v220_v7 = vpop.eup %219  ;;  %v130_v8 = vmul.f32 %v214_v58, %v129_v4  ;;  %v156_v9 = vmul.f32 %v218_v5, %v124_v59  ;;  %vm162_vm9 = vweird.f32 %v218_v5 }
 0x18d   :  { %v150_v11 = vmul.f32 %v216_v61, %v149_v6  ;;  %v136_v12 = vmul.f32 %v220_v7, %v122_v60  ;;  %vm142_vm10 = vweird.f32 %v220_v7  ;;  %vm163_vm12 = vmor %vm161_vm11, %vm162_vm9 }
 0x18e   :  { %v134_v13 = vsel %vm133_vm6, %v214_v58, %v130_v8  ;;  %v157_v14 = vmul.f32 %v218_v5, %v156_v9  ;;  %vm143_vm14 = vmor %vm141_vm13, %vm142_vm10 }
 0x18f   :  { %v165_v16 = vmul.f32 %v134_v13, %v97_v33  ;;  %v154_v17 = vsel %vm153_vm8, %v216_v61, %v150_v11  ;;  %v137_v18 = vmul.f32 %v220_v7, %v136_v12 }
 0x190   :  { %v167_v19 = vmul.f32 %v154_v17, %v277_v32  ;;  %v158_v20 = vmul.f32 0.5, %v157_v14 }
 0x191   :  { %v173_v21 = vmul.f32 %v209_v10, %v165_v16  ;;  %v138_v22 = vmul.f32 0.5, %v137_v18 }
 0x192   :  { %v175_v23 = vmul.f32 %v209_v10, %v167_v19  ;;  %v159_v24 = vsub.f32 1.5, %v158_v20 }
 0x193   :  { %v181_v25 = vadd.f32 %v210_v15, %v173_v21  ;;  %v139_v26 = vsub.f32 1.5, %v138_v22 }
 0x194   :  { %v183_v27 = vadd.f32 %v210_v15, %v175_v23  ;;  %v160_v28 = vmul.f32 %v218_v5, %v159_v24 }
 0x195   :  { %185 = vst.msk [vmem:[%s323_s5] sm:$0xff] %vm73_vm1, %v181_v25  ;;  %v140_v29 = vmul.f32 %v220_v7, %v139_v26 }
 0x196   :  { %187 = vst.msk [vmem:[%s323_s5 + $0x10] sm:$0xff] %vm73_vm1, %v183_v27  ;;  %v164_v30 = vsel %vm163_vm12, %v218_v5, %v160_v28 }
 0x197   :  { %v168_v31 = vmul.f32 %v164_v30, %v283_v42  ;;  %v144_v32 = vsel %vm143_vm14, %v220_v7, %v140_v29 }
 0x198   :  { %v166_v33 = vmul.f32 %v144_v32, %v285_v43 }
 0x199   :  { %v176_v34 = vmul.f32 %v209_v10, %v168_v31 }
 0x19a   :  { %v174_v35 = vmul.f32 %v209_v10, %v166_v33 }
 0x19b   :  { %v184_v36 = vadd.f32 %v210_v15, %v176_v34 }
 0x19c   :  { %v182_v37 = vadd.f32 %v210_v15, %v174_v35 }
 0x19d   :  { %188 = vst.msk [vmem:[%s323_s5 + $0x18] sm:$0xff] %vm73_vm1, %v184_v36 }
 0x19e   :  { %186 = vst.msk [vmem:[%s323_s5 + $0x8] sm:$0xff] %vm73_vm1, %v182_v37 }

// kernel: _lambda_.47
= control target key start
LH: loop header
LB: loop body
LE: loop exit
PB: predicated region body
PF: predicated region fallthrough
CT: control target
= control target key end

     0   :  { %vm13_vm0 = vcmask 130048   ;;  %s108_s0 = inlined_call_operand.vmem [shape: f32[2,16,16], index: 0, kind: input, shape index: {}]   ;;  %s109_s1 = inlined_call_operand.hbm [shape: f32[2,16], index: 1, kind: output, shape index: {}]  }
   0x1   :  { %v9_v0 = vld [vmem:[%s108_s0] sm:$0xff]  ;;  %v10_v1 = vld [vmem:[%s108_s0 + $0x8] sm:$0xff]  ;;  %v11_v2 = vld [vmem:[%s108_s0 + $0x10] sm:$0xff] }
   0x2   :  { %v12_v3 = vld [vmem:[%s108_s0 + $0x18] sm:$0xff]  ;;  %v14_v4 = vsel %vm13_vm0, %v9_v0, -inf  ;;  %v15_v5 = vsel %vm13_vm0, %v10_v1, -inf  ;;  %v23_v6 = vsel %vm13_vm0, %v11_v2, -inf }
   0x3   :  { %6 = vsyncpa [#allocation3], 0  ;;  %v16_v7 = vmax.f32 %v14_v4, %v15_v5  ;;  %v24_v8 = vsel %vm13_vm0, %v12_v3, -inf  ;;  %s82_s14 = smov [#allocation2]   ;;  %s46_s17 = sshll.u32 %s109_s1, 4  ;;  %vm34_vm1 = vcmask 1041409   ;;  %s47_s17 = int_to_ptr.hbm [resolvable:$true] %s46_s17 }
   0x4   :  { %v25_v9 = vmax.f32 %v23_v6, %v24_v8  ;;  %s44_s15 = sshll.u32 %s82_s14, 4  ;;  %vm37_vm2 = vcmask 123904   ;;  %s45_s15 = int_to_ptr.vmem [resolvable:$true] %s44_s15 }
   0x5   :  { %v17_v10 = vrot.slane %v16_v7, 4 }
   0x6   :  { %v26_v11 = vrot.slane %v25_v9, 4 }
   0x7   :  { %v18_v12 = vmax.f32 %v16_v7, %v17_v10 }
   0x8   :  { %v27_v13 = vmax.f32 %v25_v9, %v26_v11 }
   0x9   :  { %v19_v14 = vrot.slane %v18_v12, 2 }
   0xa   :  { %v28_v15 = vrot.slane %v27_v13, 2 }
   0xb   :  { %v20_v16 = vmax.f32 %v18_v12, %v19_v14 }
   0xc   :  { %v29_v17 = vmax.f32 %v27_v13, %v28_v15 }
   0xd   :  { %v21_v18 = vrot.slane %v20_v16, 1 }
   0xe   :  { %v30_v19 = vrot.slane %v29_v17, 1 }
   0xf   :  { %v22_v20 = vmax.f32 %v20_v16, %v21_v18 }
  0x10   :  { %v31_v21 = vmax.f32 %v29_v17, %v30_v19 }
  0x12   :  { %v35_v22 = vsel %vm34_vm1, %v31_v21, %v22_v20 }
  0x13   :  { %38 = vst.msk [vmem:[#allocation2] sm:$0x3] %vm37_vm2, %v35_v22 }
  0x14   :  { %49 = dma.vmem_to_hbm [thread:$0]  %s45_s15, 32, %s47_s17, [#allocation3]  }
  0x15   :  { %80 = dma.done.wait [#allocation3], 32  }
  0x16   :  { %81 = vsyncadd [#allocation3], 4294967264 }
  0x17   :  { %54 = vsyncpa [#allocation3], 1 }

// kernel: _lambda_.46
= control target key start
LH: loop header
LB: loop body
LE: loop exit
PB: predicated region body
PF: predicated region fallthrough
CT: control target
= control target key end

     0   :  { %vm109_vm0 = vcmask 130048   ;;  %v342_v42 = vmov 16.0   ;;  %s474_s1 = inlined_call_operand.vmem [shape: bf16[144,16], index: 1, kind: input, shape index: {}]   ;;  %s475_s0 = inlined_call_operand.vmem [shape: f32[32,144], index: 0, kind: input, shape index: {}]   ;;  %s476_s2 = inlined_call_operand.vmem [shape: f32[1,16], index: 2, kind: input, shape index: {}]   ;;  %s477_s3 = inlined_call_operand.vmem [shape: f32[1,16], index: 3, kind: input, shape index: {}]   ;;  %s478_s4 = inlined_call_operand.vmem [shape: f32[1,16], index: 4, kind: input, shape index: {}]   ;;  %s479_s5 = inlined_call_operand.vmem [shape: f32[32,16], index: 5, kind: output, shape index: {}]  }
   0x1   :  { %v318_v0 = vld [vmem:[%s474_s1 + $0x38] sm:$0xff]  ;;  %v319_v1 = vld [vmem:[%s474_s1 + $0x40] sm:$0xff]  ;;  %v22_v2 = vld [vmem:[%s475_s0 + $0x8] sm:$0xff]  ;;  %332 = vrcp.f32 %v342_v42 }
   0x2   :  { %116 = vmatpush.bf16.msra.mxu0 %v318_v0  ;;  %320 = vmatpush.bf16.msra.mxu2 %v318_v0  ;;  %v317_v3 = vld [vmem:[%s474_s1 + $0x30] sm:$0xff]  ;;  %v24_v4 = vld [vmem:[%s475_s0 + $0x18] sm:$0xff]  ;;  %v316_v6 = vld [vmem:[%s474_s1 + $0x28] sm:$0xff] }
   0x3   :  { %142 = vmatpush.bf16.msra.mxu1 %v319_v1  ;;  %v30_v5 = vpack.c.bf16 %v24_v4, %v22_v2  ;;  %v315_v7 = vld [vmem:[%s474_s1 + $0x20] sm:$0xff]  ;;  %v314_v8 = vld [vmem:[%s474_s1 + $0x18] sm:$0xff]  ;;  %v26_v9 = vld [vmem:[%s475_s0 + $0x28] sm:$0xff] }
   0x4   :  { %v28_v10 = vld [vmem:[%s475_s0 + $0x38] sm:$0xff]  ;;  %v313_v11 = vld [vmem:[%s474_s1 + $0x10] sm:$0xff]  ;;  %v312_v13 = vld [vmem:[%s474_s1 + $0x8] sm:$0xff] }
   0x5   :  { %v32_v12 = vpack.c.bf16 %v28_v10, %v26_v9  ;;  %v311_v14 = vld [vmem:[%s474_s1] sm:$0xff]  ;;  %v23_v16 = vld [vmem:[%s475_s0 + $0x10] sm:$0xff] }
   0x6   :  { %117 = vmatpush.bf16.msra.mxu0 %v317_v3  ;;  %321 = vmatpush.bf16.msra.mxu2 %v317_v3  ;;  %v21_v15 = vld [vmem:[%s475_s0] sm:$0xff]  ;;  %v27_v18 = vld [vmem:[%s475_s0 + $0x30] sm:$0xff] }
   0x7   :  { %309 = vmatmul.msk.bf16.vlgmr.msra.gmra.mxu1 %vm109_vm0, %v30_v5  ;;  %v25_v17 = vld [vmem:[%s475_s0 + $0x20] sm:$0xff]  ;;  %v29_v19 = vpack.c.bf16 %v23_v16, %v21_v15  ;;  %v333_v43 = vpop.eup %332 }
   0x8   :  { %v31_v20 = vpack.c.bf16 %v27_v18, %v25_v17  ;;  %v329_v23 = vld [vmem:[%s476_s2] ss:$0 sm:$0xff]  ;;  %v167_v44 = vmul.f32 16.0, %v333_v43  ;;  %vm171_vm1 = vweird.f32 %v333_v43 }
   0xa   :  { %118 = vmatpush.bf16.msra.mxu0 %v316_v6  ;;  %322 = vmatpush.bf16.msra.mxu2 %v316_v6  ;;  %v168_v45 = vsub.f32 1.0, %v167_v44 }
   0xc   :  { %v169_v46 = vmul.f32 %v333_v43, %v168_v45 }
   0xe   :  { %119 = vmatpush.bf16.msra.mxu0 %v315_v7  ;;  %323 = vmatpush.bf16.msra.mxu2 %v315_v7  ;;  %v170_v47 = vadd.f32 %v333_v43, %v169_v46 }
  0x10   :  { %v172_v48 = vsel %vm171_vm1, %v333_v43, %v170_v47 }
  0x12   :  { %120 = vmatpush.bf16.msra.mxu0 %v314_v8  ;;  %324 = vmatpush.bf16.msra.mxu2 %v314_v8 }
  0x16   :  { %121 = vmatpush.bf16.msra.mxu0 %v313_v11  ;;  %325 = vmatpush.bf16.msra.mxu2 %v313_v11 }
  0x17   :  { %310 = vmatmul.msk.bf16.gmra.mxu1 %vm109_vm0, %v32_v12 }
  0x1a   :  { %122 = vmatpush.bf16.msra.mxu0 %v312_v13  ;;  %326 = vmatpush.bf16.msra.mxu2 %v312_v13 }
  0x1e   :  { %123 = vmatpush.bf16.msra.mxu0 %v311_v14  ;;  %327 = vmatpush.bf16.msra.mxu2 %v311_v14 }
  0x21   :  { %124 = vmatmul.bf16.vlgmr.msra.gmra.mxu0 %v29_v19  ;;  %129 = vmatmul.bf16.vlgmr.msra.gmra.mxu2 %v31_v20 }
  0x84   :  { %v144_v21 = vpop.f32.mrf.mxu1 }
  0x8c   :  { %v146_v22 = vpop.f32.mrf.mxu1 }
  0x94   :  { %v149_v28 = vpop.f32.mrf.mxu1 }
  0x9c   :  { %v151_v39 = vpop.f32.mrf.mxu1 }
  0x9e   :  { %v125_v24 = vpop.f32.mrf.mxu0 }
  0x9f   :  { %v126_v25 = vadd.f32 %v329_v23, %v125_v24 }
  0xa1   :  { %v145_v26 = vadd.f32 %v144_v21, %v126_v25 }
  0xa3   :  { %v154_v27 = vsel %vm109_vm0, %v145_v26, 0.0 }
  0xa4   :  { %v130_v29 = vpop.f32.mrf.mxu2  ;;  %155 = vadd.xlane.f32.xlu0 %v154_v27 }
  0xa5   :  { %v131_v30 = vadd.f32 %v329_v23, %v130_v29 }
  0xa6   :  { %v127_v31 = vpop.f32.mrf.mxu0 }
  0xa7   :  { %v128_v32 = vadd.f32 %v329_v23, %v127_v31  ;;  %v150_v33 = vadd.f32 %v149_v28, %v131_v30  ;;  %v330_v28 = vld [vmem:[%s477_s3] ss:$0 sm:$0xff] }
  0xa9   :  { %v160_v34 = vsel %vm109_vm0, %v150_v33, 0.0  ;;  %v147_v35 = vadd.f32 %v146_v22, %v128_v32  ;;  %v331_v32 = vld [vmem:[%s478_s4] ss:$0 sm:$0xff] }
  0xaa   :  { %161 = vadd.xlane.f32.xlu1 %v160_v34 }
  0xab   :  { %v157_v36 = vsel %vm109_vm0, %v147_v35, 0.0 }
  0xac   :  { %v132_v37 = vpop.f32.mrf.mxu2  ;;  %158 = vadd.xlane.f32.xlu0 %v157_v36 }
  0xad   :  { %v133_v38 = vadd.f32 %v329_v23, %v132_v37 }
  0xaf   :  { %v152_v40 = vadd.f32 %v151_v39, %v133_v38 }
  0xb1   :  { %v163_v41 = vsel %vm109_vm0, %v152_v40, 0.0 }
  0xb2   :  { %164 = vadd.xlane.f32.xlu1 %v163_v41 }
 0x117   :  { %v156_v49 = vpop.xlane.xlu0 %155 }
 0x118   :  { %v173_v50 = vmul.f32 %v172_v48, %v156_v49 }
 0x11a   :  { %v177_v51 = vsub.f32 %v145_v26, %v173_v50 }
 0x11c   :  { %v181_v52 = vmul.f32 %v177_v51, %v177_v51 }
 0x11d   :  { %v162_v53 = vpop.xlane.xlu1 %161 }
 0x11e   :  { %v175_v54 = vmul.f32 %v172_v48, %v162_v53  ;;  %v185_v55 = vsel %vm109_vm0, %v181_v52, 0.0 }
 0x11f   :  { %186 = vadd.xlane.f32.xlu2 %v185_v55  ;;  %v159_v56 = vpop.xlane.xlu0 %158 }
 0x120   :  { %v434_v57 = vsub.f32 %v150_v33, %v175_v54  ;;  %v174_v58 = vmul.f32 %v172_v48, %v159_v56 }
 0x122   :  { %v436_v59 = vsub.f32 %v147_v35, %v174_v58  ;;  %v183_v60 = vmul.f32 %v434_v57, %v434_v57 }
 0x124   :  { %v191_v61 = vsel %vm109_vm0, %v183_v60, 0.0  ;;  %v182_v62 = vmul.f32 %v436_v59, %v436_v59 }
 0x125   :  { %v165_v63 = vpop.xlane.xlu1 %164  ;;  %192 = vadd.xlane.f32.xlu0 %v191_v61 }
 0x126   :  { %v176_v0 = vmul.f32 %v172_v48, %v165_v63  ;;  %v188_v1 = vsel %vm109_vm0, %v182_v62, 0.0 }
 0x127   :  { %189 = vadd.xlane.f32.xlu2 %v188_v1 }
 0x128   :  { %v444_v2 = vsub.f32 %v152_v40, %v176_v0 }
 0x12a   :  { %v184_v3 = vmul.f32 %v444_v2, %v444_v2 }
 0x12c   :  { %v194_v4 = vsel %vm109_vm0, %v184_v3, 0.0 }
 0x12d   :  { %195 = vadd.xlane.f32.xlu1 %v194_v4 }
 0x192   :  { %v187_v5 = vpop.xlane.xlu2 %186 }
 0x193   :  { %v197_v6 = vmul.f32 %v187_v5, %v172_v48 }
 0x195   :  { %v201_v7 = vadd.f32 1e-06, %v197_v6 }
 0x197   :  { %334 = vrsqrt.f32 %v201_v7  ;;  %vm211_vm3 = vweird.f32 %v201_v7 }
 0x198   :  { %v193_v8 = vpop.xlane.xlu0 %192 }
 0x199   :  { %v199_v9 = vmul.f32 %v193_v8, %v172_v48 }
 0x19a   :  { %v190_v10 = vpop.xlane.xlu2 %189 }
 0x19b   :  { %v203_v11 = vadd.f32 1e-06, %v199_v9  ;;  %v198_v12 = vmul.f32 %v190_v10, %v172_v48 }
 0x19d   :  { %v335_v13 = vpop.eup %334  ;;  %336 = vrsqrt.f32 %v203_v11  ;;  %v202_v14 = vadd.f32 1e-06, %v198_v12  ;;  %vm231_vm6 = vweird.f32 %v203_v11 }
 0x19e   :  { %v206_v15 = vmul.f32 %v335_v13, %v201_v7  ;;  %vm212_vm2 = vweird.f32 %v335_v13 }
 0x19f   :  { %338 = vrsqrt.f32 %v202_v14  ;;  %vm213_vm4 = vmor %vm211_vm3, %vm212_vm2  ;;  %vm221_vm9 = vweird.f32 %v202_v14 }
 0x1a0   :  { %v207_v16 = vmul.f32 %v335_v13, %v206_v15  ;;  %v196_v17 = vpop.xlane.xlu1 %195 }
 0x1a1   :  { %v200_v18 = vmul.f32 %v196_v17, %v172_v48 }
 0x1a2   :  { %v208_v19 = vmul.f32 0.5, %v207_v16 }
 0x1a3   :  { %v337_v20 = vpop.eup %336  ;;  %v204_v21 = vadd.f32 1e-06, %v200_v18 }
 0x1a4   :  { %v209_v22 = vsub.f32 1.5, %v208_v19  ;;  %v226_v23 = vmul.f32 %v337_v20, %v203_v11  ;;  %vm232_vm5 = vweird.f32 %v337_v20 }
 0x1a5   :  { %v339_v24 = vpop.eup %338  ;;  %340 = vrsqrt.f32 %v204_v21  ;;  %vm233_vm8 = vmor %vm231_vm6, %vm232_vm5  ;;  %vm241_vm12 = vweird.f32 %v204_v21 }
 0x1a6   :  { %v210_v25 = vmul.f32 %v335_v13, %v209_v22  ;;  %v227_v26 = vmul.f32 %v337_v20, %v226_v23  ;;  %v216_v27 = vmul.f32 %v339_v24, %v202_v14  ;;  %vm222_vm7 = vweird.f32 %v339_v24 }
 0x1a7   :  { %vm223_vm10 = vmor %vm221_vm9, %vm222_vm7 }
 0x1a8   :  { %v214_v29 = vsel %vm213_vm4, %v335_v13, %v210_v25  ;;  %v228_v30 = vmul.f32 0.5, %v227_v26  ;;  %v217_v31 = vmul.f32 %v339_v24, %v216_v27 }
 0x1a9   :  { %v245_v33 = vmul.f32 %v214_v29, %v177_v51 }
 0x1aa   :  { %v229_v34 = vsub.f32 1.5, %v228_v30  ;;  %v218_v35 = vmul.f32 0.5, %v217_v31 }
 0x1ab   :  { %v341_v36 = vpop.eup %340  ;;  %v253_v37 = vmul.f32 %v330_v28, %v245_v33 }
 0x1ac   :  { %v230_v38 = vmul.f32 %v337_v20, %v229_v34  ;;  %v219_v39 = vsub.f32 1.5, %v218_v35  ;;  %v236_v40 = vmul.f32 %v341_v36, %v204_v21  ;;  %vm242_vm11 = vweird.f32 %v341_v36 }
 0x1ad   :  { %v261_v41 = vadd.f32 %v331_v32, %v253_v37  ;;  %vm243_vm13 = vmor %vm241_vm12, %vm242_vm11 }
 0x1ae   :  { %v234_v42 = vsel %vm233_vm8, %v337_v20, %v230_v38  ;;  %v220_v43 = vmul.f32 %v339_v24, %v219_v39  ;;  %v237_v44 = vmul.f32 %v341_v36, %v236_v40 }
 0x1af   :  { %265 = vst.msk [vmem:[%s479_s5] sm:$0xff] %vm109_vm0, %v261_v41  ;;  %v247_v45 = vmul.f32 %v234_v42, %v434_v57 }
 0x1b0   :  { %v224_v46 = vsel %vm223_vm10, %v339_v24, %v220_v43  ;;  %v238_v47 = vmul.f32 0.5, %v237_v44 }
 0x1b1   :  { %v255_v48 = vmul.f32 %v330_v28, %v247_v45  ;;  %v246_v49 = vmul.f32 %v224_v46, %v436_v59 }
 0x1b2   :  { %v239_v50 = vsub.f32 1.5, %v238_v47 }
 0x1b3   :  { %v263_v51 = vadd.f32 %v331_v32, %v255_v48  ;;  %v254_v52 = vmul.f32 %v330_v28, %v246_v49 }
 0x1b4   :  { %v240_v53 = vmul.f32 %v341_v36, %v239_v50 }
 0x1b5   :  { %267 = vst.msk [vmem:[%s479_s5 + $0x10] sm:$0xff] %vm109_vm0, %v263_v51  ;;  %v262_v54 = vadd.f32 %v331_v32, %v254_v52 }
 0x1b6   :  { %v244_v55 = vsel %vm243_vm13, %v341_v36, %v240_v53 }
 0x1b7   :  { %266 = vst.msk [vmem:[%s479_s5 + $0x8] sm:$0xff] %vm109_vm0, %v262_v54  ;;  %v248_v56 = vmul.f32 %v244_v55, %v444_v2 }
 0x1b9   :  { %v256_v57 = vmul.f32 %v330_v28, %v248_v56 }
 0x1bb   :  { %v264_v58 = vadd.f32 %v331_v32, %v256_v57 }
 0x1bd   :  { %268 = vst.msk [vmem:[%s479_s5 + $0x18] sm:$0xff] %vm109_vm0, %v264_v58 }

</bundles_post_ra>
